<compile_context>
chip_gen: v6e
topology: v6e:2x2x1
jax: 0.10.0
libtpu: 0.0.40
codegen_flags: <defaults>
</compile_context>

<pallas_src>
import jax
import jax.numpy as jnp
from jax.experimental import pallas as pl
from jax.experimental.pallas import tpu as pltpu


_VMEM_LIMIT = 32 * 1024 * 1024


def _cparams(*sem):
    return pltpu.CompilerParams(dimension_semantics=sem,
                                vmem_limit_bytes=_VMEM_LIMIT)


def _round_up(x, m):
    return ((x + m - 1) // m) * m


def _softmax(x, axis):
    m = jnp.max(x, axis=axis, keepdims=True)
    e = jnp.exp(x - m)
    return e * pl.reciprocal(jnp.sum(e, axis=axis, keepdims=True), approx=True)


# ----------------------------------------------------------------------------
# Tiled dense matmul (+bias):  bf16 MXU, f32 accumulate, M tiled & parallel
# ----------------------------------------------------------------------------
def _dense_kernel(x_ref, w_ref, b_ref, o_ref):
    o_ref[...] = (
        jnp.dot(x_ref[...], w_ref[...], preferred_element_type=jnp.float32)
        + b_ref[...])


def dense(x, w, b, tile_m=256):
    """x: (M, K), w: (K, N), b: (N,) -> (M, N) f32."""
    M, K = x.shape
    N = w.shape[1]
    tm = min(tile_m, _round_up(M, 8))
    Mp = _round_up(M, tm)
    if Mp != M:
        x = jnp.pad(x, ((0, Mp - M), (0, 0)))
    out = pl.pallas_call(
        _dense_kernel,
        grid=(Mp // tm,),
        in_specs=[
            pl.BlockSpec((tm, K), lambda i: (i, 0)),
            pl.BlockSpec((K, N), lambda i: (0, 0)),
            pl.BlockSpec((1, N), lambda i: (0, 0)),
        ],
        out_specs=pl.BlockSpec((tm, N), lambda i: (i, 0)),
        out_shape=jax.ShapeDtypeStruct((Mp, N), jnp.float32),
        compiler_params=_cparams("parallel"),
    )(x.astype(jnp.bfloat16), w.astype(jnp.bfloat16),
      b.reshape(1, N).astype(jnp.float32))
    return out[:M] if Mp != M else out


# ----------------------------------------------------------------------------
# Fused embedding: word proj + char conv (relu + maxpool) + 2 highway layers
# (shared by context & query rows in a single pallas_call)
# ----------------------------------------------------------------------------
def _emb_kernel(wv_ref, cw_ref, wproj_ref, cwgt_ref, cb_ref,
                wt1_ref, bt1_ref, wg1_ref, bg1_ref,
                wt2_ref, bt2_ref, wg2_ref, bg2_ref, o_ref):
    # word projection (bf16 matmul, f32 acc)
    wp = jnp.dot(wv_ref[...], wproj_ref[...], preferred_element_type=jnp.float32)
    # char "conv" as im2col matmul + relu + max over conv positions
    ch = jax.lax.dot_general(cw_ref[...], cwgt_ref[...],
                             (((2,), (0,)), ((), ())),
                             preferred_element_type=jnp.float32)     # (tm, P, h)
    ch = jnp.maximum(ch + cb_ref[...][None], 0.0)
    ch = jnp.max(ch, axis=1)                                          # (tm, h)
    e = jnp.concatenate([wp, ch], axis=-1)                            # (tm, 2h)
    # two highway layers, kept resident in vregs/VMEM
    for wt_r, bt_r, wg_r, bg_r in ((wt1_ref, bt1_ref, wg1_ref, bg1_ref),
                                   (wt2_ref, bt2_ref, wg2_ref, bg2_ref)):
        eb = e.astype(jnp.bfloat16)
        t = jnp.maximum(
            jnp.dot(eb, wt_r[...], preferred_element_type=jnp.float32)
            + bt_r[...], 0.0)
        g = jax.nn.sigmoid(
            jnp.dot(eb, wg_r[...], preferred_element_type=jnp.float32)
            + bg_r[...])
        e = g * t + (1.0 - g) * e
    o_ref[...] = e


def embedding_fused(w_emb2d, char_windows, p):
    M, Dw = w_emb2d.shape
    P, CK = char_windows.shape[1], char_windows.shape[2]
    h = p["w_proj"].shape[1]
    hw = p["highway"]
    tm = min(256, _round_up(M, 8))
    Mp = _round_up(M, tm)
    if Mp != M:
        w_emb2d = jnp.pad(w_emb2d, ((0, Mp - M), (0, 0)))
        char_windows = jnp.pad(char_windows, ((0, Mp - M), (0, 0), (0, 0)))
    hw_specs = [pl.BlockSpec(s, lambda i: (0, 0))
                for s in ((2 * h, 2 * h), (1, 2 * h),
                          (2 * h, 2 * h), (1, 2 * h)) * 2]
    out = pl.pallas_call(
        _emb_kernel,
        grid=(Mp // tm,),
        in_specs=[
            pl.BlockSpec((tm, Dw), lambda i: (i, 0)),
            pl.BlockSpec((tm, P, CK), lambda i: (i, 0, 0)),
            pl.BlockSpec((Dw, h), lambda i: (0, 0)),
            pl.BlockSpec((CK, h), lambda i: (0, 0)),
            pl.BlockSpec((1, h), lambda i: (0, 0)),
        ] + hw_specs,
        out_specs=pl.BlockSpec((tm, 2 * h), lambda i: (i, 0)),
        out_shape=jax.ShapeDtypeStruct((Mp, 2 * h), jnp.float32),
        compiler_params=_cparams("parallel"),
    )(w_emb2d.astype(jnp.bfloat16), char_windows.astype(jnp.bfloat16),
      p["w_proj"].astype(jnp.bfloat16), p["char_w"].astype(jnp.bfloat16),
      p["char_b"].reshape(1, h),
      hw[0]["wt"].astype(jnp.bfloat16), hw[0]["bt"].reshape(1, 2 * h),
      hw[0]["wg"].astype(jnp.bfloat16), hw[0]["bg"].reshape(1, 2 * h),
      hw[1]["wt"].astype(jnp.bfloat16), hw[1]["bt"].reshape(1, 2 * h),
      hw[1]["wg"].astype(jnp.bfloat16), hw[1]["bg"].reshape(1, 2 * h))
    return out[:M] if Mp != M else out


def embedding_forward(p, inputs):
    """inputs: list of (c_idxs (B,L,W), w_idxs (B,L)) -> list of (B,L,2h+2)."""
    k = p["char_k"]
    row_blocks = []
    metas = []
    for c_idxs, w_idxs in inputs:
        B, L = w_idxs.shape
        w_emb = jnp.take(p["word_vectors"], w_idxs, axis=0)          # (B, L, Dw)
        c_emb = jnp.take(p["char_vectors"], c_idxs, axis=0)          # (B, L, W, Dc)
        Wc, Dc = c_emb.shape[2], c_emb.shape[3]
        P = Wc - k + 1
        windows = jnp.stack(
            [c_emb[:, :, i:i + k, :].reshape(B, L, k * Dc) for i in range(P)],
            axis=2)
        row_blocks.append((w_emb.reshape(B * L, -1),
                           windows.reshape(B * L, P, k * Dc)))
        metas.append((B, L, w_idxs))
    # one fused embedding kernel call over all rows (context + query)
    e_all = embedding_fused(jnp.concatenate([r[0] for r in row_blocks], axis=0),
                            jnp.concatenate([r[1] for r in row_blocks], axis=0),
                            p)
    outs = []
    off = 0
    for B, L, w_idxs in metas:
        e = e_all[off:off + B * L].reshape(B, L, -1)
        off += B * L
        # TODO(synk): the original Embedding's exact "+2" extra features are not
        # in the provided snippet; using (non-pad mask, normalized position).
        mask_f = (w_idxs != 0).astype(jnp.float32)[..., None]
        pos_f = jnp.broadcast_to(
            (jnp.arange(L, dtype=jnp.float32) / L)[None, :, None], (B, L, 1))
        outs.append(jnp.concatenate([e, mask_f, pos_f], axis=-1))
    return outs


# ----------------------------------------------------------------------------
# Bidirectional LSTM: recurrence inside a Pallas kernel, state in VMEM scratch.
# Both directions share ONE block-diagonal recurrent matmul (N = 8H lanes) and
# ONE set of 2H-wide gate non-linearities per step.
# ----------------------------------------------------------------------------
def _bilstm_kernel(xw_ref, whh_ref, o_ref, h_sc, c_sc):
    @pl.when(pl.program_id(0) == 0)
    def _():
        h_sc[...] = jnp.zeros_like(h_sc)
        c_sc[...] = jnp.zeros_like(c_sc)

    HH = h_sc.shape[1]                       # 2H  (layout: [fwd H | bwd H])
    whh = whh_ref[...]
    tt = xw_ref.shape[0]

    @pl.loop(0, tt)
    def _(t):
        # gates for BOTH directions in one matmul: (B, 2H) @ (2H, 8H)
        g = xw_ref[t] + jnp.dot(h_sc[...], whh,
                                preferred_element_type=jnp.float32)
        i_g = jax.nn.sigmoid(g[:, 0 * HH:1 * HH])
        f_g = jax.nn.sigmoid(g[:, 1 * HH:2 * HH])
        g_g = jnp.tanh(g[:, 2 * HH:3 * HH])
        o_g = jax.nn.sigmoid(g[:, 3 * HH:4 * HH])
        c_n = f_g * c_sc[...] + i_g * g_g
        h_n = o_g * jnp.tanh(c_n)
        o_ref[t] = h_n
        h_sc[...] = h_n
        c_sc[...] = c_n


def _interleave_gate_cols(wf, wb):
    # wf, wb: (4H, K) -> (K, 8H) columns [i_f,i_b,f_f,f_b,g_f,g_b,o_f,o_b]
    K = wf.shape[1]
    H = wf.shape[0] // 4
    return jnp.concatenate([wf.T.reshape(K, 4, H), wb.T.reshape(K, 4, H)],
                           axis=2).reshape(K, 8 * H)


def _interleave_gate_bias(bf, bb):
    H = bf.shape[0] // 4
    return jnp.concatenate([bf.reshape(4, H), bb.reshape(4, H)],
                           axis=1).reshape(8 * H)


def _blockdiag_hh(wf, wb):
    # wf, wb: (4H, H) -> (2H, 8H) block-diagonal recurrent weights matching the
    # [h_f | h_b] state layout and the per-gate [fwd | bwd] gate layout.
    H = wf.shape[1]
    wfT = wf.T.reshape(H, 4, H)
    wbT = wb.T.reshape(H, 4, H)
    z = jnp.zeros_like(wfT)
    top = jnp.concatenate([wfT, z], axis=2)          # h_f -> fwd gate columns
    bot = jnp.concatenate([z, wbT], axis=2)          # h_b -> bwd gate columns
    return jnp.concatenate([top, bot], axis=0).reshape(2 * H, 8 * H)


def lstm_bidir_layer(xs, lp):
    """xs: list of (B, L_i, Din) sharing this layer's weights."""
    Din = xs[0].shape[-1]
    H = lp["w_ih_f"].shape[0] // 4
    w_cat = _interleave_gate_cols(lp["w_ih_f"], lp["w_ih_b"])        # (Din, 8H)
    b_cat = _interleave_gate_bias(lp["b_ih_f"] + lp["b_hh_f"],
                                  lp["b_ih_b"] + lp["b_hh_b"])       # (8H,)
    whh_blk = _blockdiag_hh(lp["w_hh_f"], lp["w_hh_b"])              # (2H, 8H)

    # one fused lane-dense input projection (both directions, all sequences)
    flat = [x.reshape(-1, Din) for x in xs]
    xw_all = dense(jnp.concatenate(flat, axis=0), w_cat, b_cat)

    is_bwd = ((jnp.arange(8 * H) // H) % 2 == 1)
    outs = []
    off = 0
    for x in xs:
        B, L, _ = x.shape
        xw = xw_all[off:off + B * L].reshape(B, L, 8 * H)
        off += B * L
        xw_tm = jnp.swapaxes(xw, 0, 1)                               # (L, B, 8H)
        # per kernel step: fwd gate columns from time t, bwd from time L-1-t
        xw_step = jnp.where(is_bwd[None, None, :], xw_tm[::-1], xw_tm)

        tt = 8 if L % 8 == 0 else L
        hs = pl.pallas_call(
            _bilstm_kernel,
            grid=(L // tt,),
            in_specs=[
                pl.BlockSpec((tt, B, 8 * H), lambda t: (t, 0, 0)),
                pl.BlockSpec((2 * H, 8 * H), lambda t: (0, 0)),
            ],
            out_specs=pl.BlockSpec((tt, B, 2 * H), lambda t: (t, 0, 0)),
            out_shape=jax.ShapeDtypeStruct((L, B, 2 * H), jnp.float32),
            scratch_shapes=[pltpu.VMEM((B, 2 * H), jnp.float32),
                            pltpu.VMEM((B, 2 * H), jnp.float32)],
            compiler_params=_cparams("arbitrary"),
        )(xw_step, whh_blk)
        hf = jnp.swapaxes(hs[:, :, :H], 0, 1)                        # (B, L, H)
        hb = jnp.swapaxes(hs[::-1, :, H:], 0, 1)                     # (B, L, H)
        outs.append(jnp.concatenate([hf, hb], axis=-1))
    return outs


def rnn_encoder(xs, lengths, layers):
    # TODO(synk): pack_padded_sequence length handling not replicated; the full
    # padded sequence is processed and padded positions are masked downstream.
    hs = xs
    for lp in layers:
        hs = lstm_bidir_layer(hs, lp)
    return hs


# ----------------------------------------------------------------------------
# Fused BiDAF trilinear attention (C2Q + DCN-style Q2C) + self-attention
# ----------------------------------------------------------------------------
def _att_selfatt_kernel(c_ref, q_ref, cmc_ref, cmr_ref, qmr_ref,
                        wc_ref, wq_ref, wcq_ref, ab_ref,
                        w1_ref, w2_ref, w3_ref, sb_ref, o_ref):
    c = c_ref[0]            # (Lc, D) f32
    q = q_ref[0]            # (Lq, D) f32
    cmc = cmc_ref[0]        # (Lc, 1)
    cmr = cmr_ref[0]        # (1, Lc)
    qmr = qmr_ref[0]        # (1, Lq)
    cb = c.astype(jnp.bfloat16)
    qb = q.astype(jnp.bfloat16)
    # S_ij = c_i.wc + q_j.wq + (c_i*q_j).wcq + bias
    # c_i.wc is a VPU lane-reduction; q_j.wq is folded into the bf16 MXU matmul
    # by adding wq (broadcast over rows) to the lhs -> no degenerate N=1 matmul.
    s0 = jnp.sum(c * wc_ref[...], axis=-1, keepdims=True)            # (Lc, 1)
    lhs = (c * wcq_ref[...] + wq_ref[...]).astype(jnp.bfloat16)      # (Lc, D)
    s = s0 + ab_ref[0, 0] + jax.lax.dot_general(
        lhs, qb, (((1,), (1,)), ((), ())), preferred_element_type=jnp.float32)
    s1 = _softmax(jnp.where(qmr > 0.0, s, -1e30), axis=-1)           # C2Q
    s2 = _softmax(jnp.where(cmc > 0.0, s, -1e30), axis=0)            # Q2C
    a = jnp.dot(s1.astype(jnp.bfloat16), qb, preferred_element_type=jnp.float32)
    qc = jax.lax.dot_general(s2.astype(jnp.bfloat16), cb,
                             (((0,), (0,)), ((), ())),
                             preferred_element_type=jnp.float32)     # (Lq, D)
    bb = jnp.dot(s1.astype(jnp.bfloat16), qc.astype(jnp.bfloat16),
                 preferred_element_type=jnp.float32)                 # (Lc, D)
    g = jnp.concatenate([c, a, c * a, c * bb], axis=-1)              # (Lc, 4D)
    # TODO(synk): the original SelfAtt module body is not in the provided
    # snippet; masked trilinear self-attention with a residual is used.
    gb = g.astype(jnp.bfloat16)
    t0 = jnp.sum(g * w1_ref[...], axis=-1, keepdims=True)
    lhs2 = (g * w3_ref[...] + w2_ref[...]).astype(jnp.bfloat16)
    t = t0 + sb_ref[0, 0] + jax.lax.dot_general(
        lhs2, gb, (((1,), (1,)), ((), ())), preferred_element_type=jnp.float32)
    pw = _softmax(jnp.where(cmr > 0.0, t, -1e30), axis=-1)
    o_ref[0] = g + jnp.dot(pw.astype(jnp.bfloat16), gb,
                           preferred_element_type=jnp.float32)


def bidaf_self_attention(c, q, c_mask, q_mask, pa, ps):
    B, Lc, D = c.shape
    Lq = q.shape[1]
    cmc = c_mask.astype(jnp.float32).reshape(B, Lc, 1)
    cmr = c_mask.astype(jnp.float32).reshape(B, 1, Lc)
    qmr = q_mask.astype(jnp.float32).reshape(B, 1, Lq)
    return pl.pallas_call(
        _att_selfatt_kernel,
        grid=(B,),
        in_specs=[
            pl.BlockSpec((1, Lc, D), lambda b: (b, 0, 0)),
            pl.BlockSpec((1, Lq, D), lambda b: (b, 0, 0)),
            pl.BlockSpec((1, Lc, 1), lambda b: (b, 0, 0)),
            pl.BlockSpec((1, 1, Lc), lambda b: (b, 0, 0)),
            pl.BlockSpec((1, 1, Lq), lambda b: (b, 0, 0)),
            pl.BlockSpec((1, D), lambda b: (0, 0)),
            pl.BlockSpec((1, D), lambda b: (0, 0)),
            pl.BlockSpec((1, D), lambda b: (0, 0)),
            pl.BlockSpec((1, 1), lambda b: (0, 0)),
            pl.BlockSpec((1, 4 * D), lambda b: (0, 0)),
            pl.BlockSpec((1, 4 * D), lambda b: (0, 0)),
            pl.BlockSpec((1, 4 * D), lambda b: (0, 0)),
            pl.BlockSpec((1, 1), lambda b: (0, 0)),
        ],
        out_specs=pl.BlockSpec((1, Lc, 4 * D), lambda b: (b, 0, 0)),
        out_shape=jax.ShapeDtypeStruct((B, Lc, 4 * D), jnp.float32),
        compiler_params=_cparams("parallel"),
    )(c, q, cmc, cmr, qmr, pa["wc"], pa["wq"], pa["wcq"], pa["bias"],
      ps["w1"], ps["w2"], ps["w3"], ps["bias"])


# ----------------------------------------------------------------------------
# Fused output layer: both logit projections (VPU reductions) + masked
# log-softmax in a single pallas_call
# ----------------------------------------------------------------------------
def _output_kernel(att_ref, mod_ref, mod2_ref, m_ref, wa1_ref, wm1_ref,
                   wa2_ref, wm2_ref, b_ref, o_ref):
    att = att_ref[0]        # (Lc, 8H)
    mod = mod_ref[0]        # (Lc, 2H)
    mod2 = mod2_ref[0]      # (Lc, 2H)
    m = m_ref[0]            # (Lc, 1)
    l1 = (jnp.sum(att * wa1_ref[...], axis=-1, keepdims=True)
          + jnp.sum(mod * wm1_ref[...], axis=-1, keepdims=True) + b_ref[0, 0])
    l2 = (jnp.sum(att * wa2_ref[...], axis=-1, keepdims=True)
          + jnp.sum(mod2 * wm2_ref[...], axis=-1, keepdims=True) + b_ref[0, 1])
    l = jnp.concatenate([l1, l2], axis=-1)            # (Lc, 2)
    l = jnp.where(m > 0.0, l, -1e30)
    zmax = jnp.max(l, axis=0, keepdims=True)
    z = l - zmax
    o_ref[0] = z - jnp.log(jnp.sum(jnp.exp(z), axis=0, keepdims=True))


def bidaf_output(p, att, mod, c_mask, c_len):
    B, Lc, Datt = att.shape
    Dm = mod.shape[-1]
    mod2, = rnn_encoder([mod], (c_len,), p["rnn"])
    mf = c_mask.astype(jnp.float32).reshape(B, Lc, 1)
    bsum = jnp.concatenate([p["att_lin1_b"] + p["mod_lin1_b"],
                            p["att_lin2_b"] + p["mod_lin2_b"]]).reshape(1, 2)
    logp = pl.pallas_call(
        _output_kernel,
        grid=(B,),
        in_specs=[
            pl.BlockSpec((1, Lc, Datt), lambda b: (b, 0, 0)),
            pl.BlockSpec((1, Lc, Dm), lambda b: (b, 0, 0)),
            pl.BlockSpec((1, Lc, Dm), lambda b: (b, 0, 0)),
            pl.BlockSpec((1, Lc, 1), lambda b: (b, 0, 0)),
            pl.BlockSpec((1, Datt), lambda b: (0, 0)),
            pl.BlockSpec((1, Dm), lambda b: (0, 0)),
            pl.BlockSpec((1, Datt), lambda b: (0, 0)),
            pl.BlockSpec((1, Dm), lambda b: (0, 0)),
            pl.BlockSpec((1, 2), lambda b: (0, 0)),
        ],
        out_specs=pl.BlockSpec((1, Lc, 2), lambda b: (b, 0, 0)),
        out_shape=jax.ShapeDtypeStruct((B, Lc, 2), jnp.float32),
        compiler_params=_cparams("parallel"),
    )(att, mod, mod2, mf,
      p["att_lin1_w"], p["mod_lin1_w"], p["att_lin2_w"], p["mod_lin2_w"], bsum)
    return logp[:, :, 0], logp[:, :, 1]


# ----------------------------------------------------------------------------
# Full forward pass
# ----------------------------------------------------------------------------
def bidaf_forward(params, cc_idxs, qc_idxs, cw_idxs, qw_idxs):
    c_mask = cw_idxs != 0
    q_mask = qw_idxs != 0
    c_len = c_mask.sum(-1)
    q_len = q_mask.sum(-1)
    c_emb, q_emb = embedding_forward(
        params["emb"], [(cc_idxs, cw_idxs), (qc_idxs, qw_idxs)])
    c_enc, q_enc = rnn_encoder([c_emb, q_emb], (c_len, q_len), params["enc"])
    att = bidaf_self_attention(c_enc, q_enc, c_mask, q_mask,
                               params["att"], params["self_att"])
    mod, = rnn_encoder([att], (c_len,), params["mod"])
    return bidaf_output(params["out"], att, mod, c_mask, c_len)


# ----------------------------------------------------------------------------
# Deterministic parameter init
# ----------------------------------------------------------------------------
def init_params(key, vocab_w=50, vocab_c=30, word_dim=16, char_dim=8,
                hidden=8, char_k=3):
    H = 2 * hidden  # == BiDAF.self.hidden_size
    keys = iter(jax.random.split(key, 128))

    def nrm(shape, scale=0.1):
        return (scale * jax.random.normal(next(keys), shape)).astype(jnp.float32)

    def lstm_layer(din, h):
        return dict(
            w_ih_f=nrm((4 * h, din)), b_ih_f=jnp.zeros((4 * h,), jnp.float32),
            w_hh_f=nrm((4 * h, h)), b_hh_f=jnp.zeros((4 * h,), jnp.float32),
            w_ih_b=nrm((4 * h, din)), b_ih_b=jnp.zeros((4 * h,), jnp.float32),
            w_hh_b=nrm((4 * h, h)), b_hh_b=jnp.zeros((4 * h,), jnp.float32),
        )

    emb = dict(
        word_vectors=nrm((vocab_w, word_dim), 1.0),
        char_vectors=nrm((vocab_c, char_dim), 1.0),
        w_proj=nrm((word_dim, hidden)),
        char_w=nrm((char_k * char_dim, hidden)),
        char_b=jnp.zeros((hidden,), jnp.float32),
        char_k=char_k,
        highway=[dict(wt=nrm((H, H)), bt=jnp.zeros((H,), jnp.float32),
                      wg=nrm((H, H)), bg=jnp.zeros((H,), jnp.float32))
                 for _ in range(2)],
    )
    params = dict(
        emb=emb,
        enc=[lstm_layer(H + 2, H)],
        att=dict(wc=nrm((1, 2 * H)), wq=nrm((1, 2 * H)), wcq=nrm((1, 2 * H)),
                 bias=jnp.zeros((1, 1), jnp.float32)),
        self_att=dict(w1=nrm((1, 8 * H)), w2=nrm((1, 8 * H)), w3=nrm((1, 8 * H)),
                      bias=jnp.zeros((1, 1), jnp.float32)),
        mod=[lstm_layer(8 * H, H), lstm_layer(2 * H, H)],
        out=dict(
            att_lin1_w=nrm((1, 8 * H)), att_lin1_b=jnp.zeros((1,), jnp.float32),
            mod_lin1_w=nrm((1, 2 * H)), mod_lin1_b=jnp.zeros((1,), jnp.float32),
            att_lin2_w=nrm((1, 8 * H)), att_lin2_b=jnp.zeros((1,), jnp.float32),
            mod_lin2_w=nrm((1, 2 * H)), mod_lin2_b=jnp.zeros((1,), jnp.float32),
            rnn=[lstm_layer(2 * H, H)],
        ),
    )
    return params


# ----------------------------------------------------------------------------
if __name__ == "__main__":
    key = jax.random.PRNGKey(0)
    kp, k1, k2, k3, k4 = jax.random.split(key, 5)

    B, Lc, Lq, Wch = 2, 16, 8, 8
    vocab_w, vocab_c = 50, 30

    params = init_params(kp)

    cw_idxs = jax.random.randint(k1, (B, Lc), 1, vocab_w).astype(jnp.int32)
    qw_idxs = jax.random.randint(k2, (B, Lq), 1, vocab_w).astype(jnp.int32)
    # introduce padding (idx 0) so the masks are non-trivial
    cw_idxs = cw_idxs.at[1, 12:].set(0)
    qw_idxs = qw_idxs.at[1, 6:].set(0)
    cc_idxs = jax.random.randint(k3, (B, Lc, Wch), 1, vocab_c).astype(jnp.int32)
    qc_idxs = jax.random.randint(k4, (B, Lq, Wch), 1, vocab_c).astype(jnp.int32)

    fwd = jax.jit(lambda cc, qc, cw, qw: bidaf_forward(params, cc, qc, cw, qw))
    log_p1, log_p2 = fwd(cc_idxs, qc_idxs, cw_idxs, qw_idxs)
    jax.block_until_ready((log_p1, log_p2))

    assert log_p1.shape == (B, Lc) and log_p2.shape == (B, Lc)
    assert bool(jnp.all(jnp.isfinite(log_p1))) and bool(jnp.all(jnp.isfinite(log_p2)))
    print("KERNEL_OK")
</pallas_src>

<mosaic_0001>
module attributes {stable_mosaic.version = 11 : i64} {
  func.func @_emb_kernel(%arg0: i32, %arg1: memref<48x16xbf16, #tpu.memory_space<vmem>>, %arg2: memref<48x6x24xbf16, #tpu.memory_space<vmem>>, %arg3: memref<16x8xbf16, #tpu.memory_space<vmem>>, %arg4: memref<24x8xbf16, #tpu.memory_space<vmem>>, %arg5: memref<1x8xf32, #tpu.memory_space<vmem>>, %arg6: memref<16x16xbf16, #tpu.memory_space<vmem>>, %arg7: memref<1x16xf32, #tpu.memory_space<vmem>>, %arg8: memref<16x16xbf16, #tpu.memory_space<vmem>>, %arg9: memref<1x16xf32, #tpu.memory_space<vmem>>, %arg10: memref<16x16xbf16, #tpu.memory_space<vmem>>, %arg11: memref<1x16xf32, #tpu.memory_space<vmem>>, %arg12: memref<16x16xbf16, #tpu.memory_space<vmem>>, %arg13: memref<1x16xf32, #tpu.memory_space<vmem>>, %arg14: memref<48x16xf32, #tpu.memory_space<vmem>>) attributes {dimension_semantics = [#tpu.dimension_semantics<parallel>], iteration_bounds = array<i64: 1>, scalar_prefetch = 0 : i64, scratch_operands = 0 : i64, tpu.core_type = #tpu.core_type<tc>, window_params = [{transform_indices = @transform_0, window_bounds = array<i64: 48, 16>}, {transform_indices = @transform_1, window_bounds = array<i64: 48, 6, 24>}, {pipeline_mode = #tpu.pipeline_mode<synchronous>, transform_indices = @transform_2, window_bounds = array<i64: 16, 8>}, {pipeline_mode = #tpu.pipeline_mode<synchronous>, transform_indices = @transform_3, window_bounds = array<i64: 24, 8>}, {pipeline_mode = #tpu.pipeline_mode<synchronous>, transform_indices = @transform_4, window_bounds = array<i64: 1, 8>}, {pipeline_mode = #tpu.pipeline_mode<synchronous>, transform_indices = @transform_5, window_bounds = array<i64: 16, 16>}, {pipeline_mode = #tpu.pipeline_mode<synchronous>, transform_indices = @transform_6, window_bounds = array<i64: 1, 16>}, {pipeline_mode = #tpu.pipeline_mode<synchronous>, transform_indices = @transform_7, window_bounds = array<i64: 16, 16>}, {pipeline_mode = #tpu.pipeline_mode<synchronous>, transform_indices = @transform_8, window_bounds = array<i64: 1, 16>}, {pipeline_mode = #tpu.pipeline_mode<synchronous>, transform_indices = @transform_9, window_bounds = array<i64: 16, 16>}, {pipeline_mode = #tpu.pipeline_mode<synchronous>, transform_indices = @transform_10, window_bounds = array<i64: 1, 16>}, {pipeline_mode = #tpu.pipeline_mode<synchronous>, transform_indices = @transform_11, window_bounds = array<i64: 16, 16>}, {pipeline_mode = #tpu.pipeline_mode<synchronous>, transform_indices = @transform_12, window_bounds = array<i64: 1, 16>}, {transform_indices = @transform_13, window_bounds = array<i64: 48, 16>}]} {
    %c0 = arith.constant 0 : index
    %c0_0 = arith.constant 0 : index
    %0 = vector.load %arg1[%c0, %c0_0] : memref<48x16xbf16, #tpu.memory_space<vmem>>, vector<48x16xbf16>
    %c0_1 = arith.constant 0 : index
    %c0_2 = arith.constant 0 : index
    %1 = vector.load %arg3[%c0_1, %c0_2] : memref<16x8xbf16, #tpu.memory_space<vmem>>, vector<16x8xbf16>
    %cst = arith.constant dense<0.000000e+00> : vector<48x8xf32>
    %2 = tpu.matmul %0, %1, %cst {dimension_numbers = #tpu.dot_dimension_numbers<[1], [0], [0], [1], [0, 0, 1, 1], [], []>} : vector<48x16xbf16>, vector<16x8xbf16>, vector<48x8xf32> -> vector<48x8xf32>
    %c0_3 = arith.constant 0 : index
    %c0_4 = arith.constant 0 : index
    %c0_5 = arith.constant 0 : index
    %3 = vector.load %arg2[%c0_3, %c0_4, %c0_5] : memref<48x6x24xbf16, #tpu.memory_space<vmem>>, vector<48x6x24xbf16>
    %c0_6 = arith.constant 0 : index
    %c0_7 = arith.constant 0 : index
    %4 = vector.load %arg4[%c0_6, %c0_7] : memref<24x8xbf16, #tpu.memory_space<vmem>>, vector<24x8xbf16>
    %cst_8 = arith.constant dense<0.000000e+00> : vector<48x6x8xf32>
    %5 = tpu.matmul %3, %4, %cst_8 {dimension_numbers = #tpu.dot_dimension_numbers<[2], [0], [0, 1], [1], [0, 0, 0, 1, 1, 1], [], []>} : vector<48x6x24xbf16>, vector<24x8xbf16>, vector<48x6x8xf32> -> vector<48x6x8xf32>
    %c0_9 = arith.constant 0 : index
    %c0_10 = arith.constant 0 : index
    %6 = vector.load %arg5[%c0_9, %c0_10] : memref<1x8xf32, #tpu.memory_space<vmem>>, vector<1x8xf32>
    %7 = vector.shape_cast %6 : vector<1x8xf32> to vector<1x1x8xf32>
    %8 = vector.broadcast %7 : vector<1x1x8xf32> to vector<48x6x8xf32>
    %9 = arith.addf %5, %8 : vector<48x6x8xf32>
    %cst_11 = arith.constant 0.000000e+00 : f32
    %10 = vector.broadcast %cst_11 : f32 to vector<48x6x8xf32>
    %11 = arith.maximumf %9, %10 : vector<48x6x8xf32>
    %cst_12 = arith.constant dense<0xFF800000> : vector<48x8xf32>
    %12 = vector.multi_reduction <maximumf>, %11, %cst_12 [1] : vector<48x6x8xf32> to vector<48x8xf32>
    %13 = tpu.concatenate %2, %12 in 1 : vector<48x8xf32>, vector<48x8xf32> -> vector<48x16xf32>
    %14 = arith.truncf %13 : vector<48x16xf32> to vector<48x16xbf16>
    %c0_13 = arith.constant 0 : index
    %c0_14 = arith.constant 0 : index
    %15 = vector.load %arg6[%c0_13, %c0_14] : memref<16x16xbf16, #tpu.memory_space<vmem>>, vector<16x16xbf16>
    %cst_15 = arith.constant dense<0.000000e+00> : vector<48x16xf32>
    %16 = tpu.matmul %14, %15, %cst_15 {dimension_numbers = #tpu.dot_dimension_numbers<[1], [0], [0], [1], [0, 0, 1, 1], [], []>} : vector<48x16xbf16>, vector<16x16xbf16>, vector<48x16xf32> -> vector<48x16xf32>
    %c0_16 = arith.constant 0 : index
    %c0_17 = arith.constant 0 : index
    %17 = vector.load %arg7[%c0_16, %c0_17] : memref<1x16xf32, #tpu.memory_space<vmem>>, vector<1x16xf32>
    %18 = vector.broadcast %17 : vector<1x16xf32> to vector<48x16xf32>
    %19 = arith.addf %16, %18 : vector<48x16xf32>
    %cst_18 = arith.constant 0.000000e+00 : f32
    %20 = vector.broadcast %cst_18 : f32 to vector<48x16xf32>
    %21 = arith.maximumf %19, %20 : vector<48x16xf32>
    %c0_19 = arith.constant 0 : index
    %c0_20 = arith.constant 0 : index
    %22 = vector.load %arg8[%c0_19, %c0_20] : memref<16x16xbf16, #tpu.memory_space<vmem>>, vector<16x16xbf16>
    %cst_21 = arith.constant dense<0.000000e+00> : vector<48x16xf32>
    %23 = tpu.matmul %14, %22, %cst_21 {dimension_numbers = #tpu.dot_dimension_numbers<[1], [0], [0], [1], [0, 0, 1, 1], [], []>} : vector<48x16xbf16>, vector<16x16xbf16>, vector<48x16xf32> -> vector<48x16xf32>
    %c0_22 = arith.constant 0 : index
    %c0_23 = arith.constant 0 : index
    %24 = vector.load %arg9[%c0_22, %c0_23] : memref<1x16xf32, #tpu.memory_space<vmem>>, vector<1x16xf32>
    %25 = vector.broadcast %24 : vector<1x16xf32> to vector<48x16xf32>
    %26 = arith.addf %23, %25 : vector<48x16xf32>
    %27 = arith.negf %26 : vector<48x16xf32>
    %28 = math.exp %27 : vector<48x16xf32>
    %cst_24 = arith.constant 1.000000e+00 : f32
    %29 = vector.broadcast %cst_24 : f32 to vector<48x16xf32>
    %30 = arith.addf %29, %28 : vector<48x16xf32>
    %31 = arith.divf %29, %30 : vector<48x16xf32>
    %32 = arith.mulf %31, %21 : vector<48x16xf32>
    %cst_25 = arith.constant 1.000000e+00 : f32
    %33 = vector.broadcast %cst_25 : f32 to vector<48x16xf32>
    %34 = arith.subf %33, %31 : vector<48x16xf32>
    %35 = arith.mulf %34, %13 : vector<48x16xf32>
    %36 = arith.addf %32, %35 : vector<48x16xf32>
    %37 = arith.truncf %36 : vector<48x16xf32> to vector<48x16xbf16>
    %c0_26 = arith.constant 0 : index
    %c0_27 = arith.constant 0 : index
    %38 = vector.load %arg10[%c0_26, %c0_27] : memref<16x16xbf16, #tpu.memory_space<vmem>>, vector<16x16xbf16>
    %cst_28 = arith.constant dense<0.000000e+00> : vector<48x16xf32>
    %39 = tpu.matmul %37, %38, %cst_28 {dimension_numbers = #tpu.dot_dimension_numbers<[1], [0], [0], [1], [0, 0, 1, 1], [], []>} : vector<48x16xbf16>, vector<16x16xbf16>, vector<48x16xf32> -> vector<48x16xf32>
    %c0_29 = arith.constant 0 : index
    %c0_30 = arith.constant 0 : index
    %40 = vector.load %arg11[%c0_29, %c0_30] : memref<1x16xf32, #tpu.memory_space<vmem>>, vector<1x16xf32>
    %41 = vector.broadcast %40 : vector<1x16xf32> to vector<48x16xf32>
    %42 = arith.addf %39, %41 : vector<48x16xf32>
    %cst_31 = arith.constant 0.000000e+00 : f32
    %43 = vector.broadcast %cst_31 : f32 to vector<48x16xf32>
    %44 = arith.maximumf %42, %43 : vector<48x16xf32>
    %c0_32 = arith.constant 0 : index
    %c0_33 = arith.constant 0 : index
    %45 = vector.load %arg12[%c0_32, %c0_33] : memref<16x16xbf16, #tpu.memory_space<vmem>>, vector<16x16xbf16>
    %cst_34 = arith.constant dense<0.000000e+00> : vector<48x16xf32>
    %46 = tpu.matmul %37, %45, %cst_34 {dimension_numbers = #tpu.dot_dimension_numbers<[1], [0], [0], [1], [0, 0, 1, 1], [], []>} : vector<48x16xbf16>, vector<16x16xbf16>, vector<48x16xf32> -> vector<48x16xf32>
    %c0_35 = arith.constant 0 : index
    %c0_36 = arith.constant 0 : index
    %47 = vector.load %arg13[%c0_35, %c0_36] : memref<1x16xf32, #tpu.memory_space<vmem>>, vector<1x16xf32>
    %48 = vector.broadcast %47 : vector<1x16xf32> to vector<48x16xf32>
    %49 = arith.addf %46, %48 : vector<48x16xf32>
    %50 = arith.negf %49 : vector<48x16xf32>
    %51 = math.exp %50 : vector<48x16xf32>
    %cst_37 = arith.constant 1.000000e+00 : f32
    %52 = vector.broadcast %cst_37 : f32 to vector<48x16xf32>
    %53 = arith.addf %52, %51 : vector<48x16xf32>
    %54 = arith.divf %52, %53 : vector<48x16xf32>
    %55 = arith.mulf %54, %44 : vector<48x16xf32>
    %cst_38 = arith.constant 1.000000e+00 : f32
    %56 = vector.broadcast %cst_38 : f32 to vector<48x16xf32>
    %57 = arith.subf %56, %54 : vector<48x16xf32>
    %58 = arith.mulf %57, %36 : vector<48x16xf32>
    %59 = arith.addf %55, %58 : vector<48x16xf32>
    %c0_39 = arith.constant 0 : index
    %c0_40 = arith.constant 0 : index
    %60 = vector.load %arg14[%c0_39, %c0_40] : memref<48x16xf32, #tpu.memory_space<vmem>>, vector<48x16xf32>
    tpu.vector_store %arg14[%c0_39, %c0_40], %59 {strides = array<i32>} : memref<48x16xf32, #tpu.memory_space<vmem>>, vector<48x16xf32>,
    return
  }
  func.func @transform_0(%arg0: i32) -> (i32, i32) {
    %c0_i32 = arith.constant 0 : i32
    %c0_i32_0 = arith.constant 0 : i32
    return %arg0, %c0_i32 : i32, i32
  }
  func.func @transform_1(%arg0: i32) -> (i32, i32, i32) {
    %c0_i32 = arith.constant 0 : i32
    %c0_i32_0 = arith.constant 0 : i32
    %c0_i32_1 = arith.constant 0 : i32
    return %arg0, %c0_i32, %c0_i32_0 : i32, i32, i32
  }
  func.func @transform_2(%arg0: i32) -> (i32, i32) {
    %c0_i32 = arith.constant 0 : i32
    %c0_i32_0 = arith.constant 0 : i32
    %c0_i32_1 = arith.constant 0 : i32
    return %c0_i32, %c0_i32_0 : i32, i32
  }
  func.func @transform_3(%arg0: i32) -> (i32, i32) {
    %c0_i32 = arith.constant 0 : i32
    %c0_i32_0 = arith.constant 0 : i32
    %c0_i32_1 = arith.constant 0 : i32
    return %c0_i32, %c0_i32_0 : i32, i32
  }
  func.func @transform_4(%arg0: i32) -> (i32, i32) {
    %c0_i32 = arith.constant 0 : i32
    %c0_i32_0 = arith.constant 0 : i32
    %c0_i32_1 = arith.constant 0 : i32
    return %c0_i32, %c0_i32_0 : i32, i32
  }
  func.func @transform_5(%arg0: i32) -> (i32, i32) {
    %c0_i32 = arith.constant 0 : i32
    %c0_i32_0 = arith.constant 0 : i32
    %c0_i32_1 = arith.constant 0 : i32
    return %c0_i32, %c0_i32_0 : i32, i32
  }
  func.func @transform_6(%arg0: i32) -> (i32, i32) {
    %c0_i32 = arith.constant 0 : i32
    %c0_i32_0 = arith.constant 0 : i32
    %c0_i32_1 = arith.constant 0 : i32
    return %c0_i32, %c0_i32_0 : i32, i32
  }
  func.func @transform_7(%arg0: i32) -> (i32, i32) {
    %c0_i32 = arith.constant 0 : i32
    %c0_i32_0 = arith.constant 0 : i32
    %c0_i32_1 = arith.constant 0 : i32
    return %c0_i32, %c0_i32_0 : i32, i32
  }
  func.func @transform_8(%arg0: i32) -> (i32, i32) {
    %c0_i32 = arith.constant 0 : i32
    %c0_i32_0 = arith.constant 0 : i32
    %c0_i32_1 = arith.constant 0 : i32
    return %c0_i32, %c0_i32_0 : i32, i32
  }
  func.func @transform_9(%arg0: i32) -> (i32, i32) {
    %c0_i32 = arith.constant 0 : i32
    %c0_i32_0 = arith.constant 0 : i32
    %c0_i32_1 = arith.constant 0 : i32
    return %c0_i32, %c0_i32_0 : i32, i32
  }
  func.func @transform_10(%arg0: i32) -> (i32, i32) {
    %c0_i32 = arith.constant 0 : i32
    %c0_i32_0 = arith.constant 0 : i32
    %c0_i32_1 = arith.constant 0 : i32
    return %c0_i32, %c0_i32_0 : i32, i32
  }
  func.func @transform_11(%arg0: i32) -> (i32, i32) {
    %c0_i32 = arith.constant 0 : i32
    %c0_i32_0 = arith.constant 0 : i32
    %c0_i32_1 = arith.constant 0 : i32
    return %c0_i32, %c0_i32_0 : i32, i32
  }
  func.func @transform_12(%arg0: i32) -> (i32, i32) {
    %c0_i32 = arith.constant 0 : i32
    %c0_i32_0 = arith.constant 0 : i32
    %c0_i32_1 = arith.constant 0 : i32
    return %c0_i32, %c0_i32_0 : i32, i32
  }
  func.func @transform_13(%arg0: i32) -> (i32, i32) {
    %c0_i32 = arith.constant 0 : i32
    %c0_i32_0 = arith.constant 0 : i32
    return %arg0, %c0_i32 : i32, i32
  }
}

module attributes {stable_mosaic.version = 11 : i64} {
  func.func @_dense_kernel(%arg0: i32, %arg1: memref<48x18xbf16, #tpu.memory_space<vmem>>, %arg2: memref<18x128xbf16, #tpu.memory_space<vmem>>, %arg3: memref<1x128xf32, #tpu.memory_space<vmem>>, %arg4: memref<48x128xf32, #tpu.memory_space<vmem>>) attributes {dimension_semantics = [#tpu.dimension_semantics<parallel>], iteration_bounds = array<i64: 1>, scalar_prefetch = 0 : i64, scratch_operands = 0 : i64, tpu.core_type = #tpu.core_type<tc>, window_params = [{transform_indices = @transform_0, window_bounds = array<i64: 48, 18>}, {pipeline_mode = #tpu.pipeline_mode<synchronous>, transform_indices = @transform_1, window_bounds = array<i64: 18, 128>}, {pipeline_mode = #tpu.pipeline_mode<synchronous>, transform_indices = @transform_2, window_bounds = array<i64: 1, 128>}, {transform_indices = @transform_3, window_bounds = array<i64: 48, 128>}]} {
    %c0 = arith.constant 0 : index
    %c0_0 = arith.constant 0 : index
    %0 = vector.load %arg1[%c0, %c0_0] : memref<48x18xbf16, #tpu.memory_space<vmem>>, vector<48x18xbf16>
    %c0_1 = arith.constant 0 : index
    %c0_2 = arith.constant 0 : index
    %1 = vector.load %arg2[%c0_1, %c0_2] : memref<18x128xbf16, #tpu.memory_space<vmem>>, vector<18x128xbf16>
    %cst = arith.constant dense<0.000000e+00> : vector<48x128xf32>
    %2 = tpu.matmul %0, %1, %cst {dimension_numbers = #tpu.dot_dimension_numbers<[1], [0], [0], [1], [0, 0, 1, 1], [], []>} : vector<48x18xbf16>, vector<18x128xbf16>, vector<48x128xf32> -> vector<48x128xf32>
    %c0_3 = arith.constant 0 : index
    %c0_4 = arith.constant 0 : index
    %3 = vector.load %arg3[%c0_3, %c0_4] : memref<1x128xf32, #tpu.memory_space<vmem>>, vector<1x128xf32>
    %4 = vector.broadcast %3 : vector<1x128xf32> to vector<48x128xf32>
    %5 = arith.addf %2, %4 : vector<48x128xf32>
    %c0_5 = arith.constant 0 : index
    %c0_6 = arith.constant 0 : index
    %6 = vector.load %arg4[%c0_5, %c0_6] : memref<48x128xf32, #tpu.memory_space<vmem>>, vector<48x128xf32>
    tpu.vector_store %arg4[%c0_5, %c0_6], %5 {strides = array<i32>} : memref<48x128xf32, #tpu.memory_space<vmem>>, vector<48x128xf32>,
    return
  }
  func.func @transform_0(%arg0: i32) -> (i32, i32) {
    %c0_i32 = arith.constant 0 : i32
    %c0_i32_0 = arith.constant 0 : i32
    return %arg0, %c0_i32 : i32, i32
  }
  func.func @transform_1(%arg0: i32) -> (i32, i32) {
    %c0_i32 = arith.constant 0 : i32
    %c0_i32_0 = arith.constant 0 : i32
    %c0_i32_1 = arith.constant 0 : i32
    return %c0_i32, %c0_i32_0 : i32, i32
  }
  func.func @transform_2(%arg0: i32) -> (i32, i32) {
    %c0_i32 = arith.constant 0 : i32
    %c0_i32_0 = arith.constant 0 : i32
    %c0_i32_1 = arith.constant 0 : i32
    return %c0_i32, %c0_i32_0 : i32, i32
  }
  func.func @transform_3(%arg0: i32) -> (i32, i32) {
    %c0_i32 = arith.constant 0 : i32
    %c0_i32_0 = arith.constant 0 : i32
    return %arg0, %c0_i32 : i32, i32
  }
}

module attributes {stable_mosaic.version = 11 : i64} {
  func.func @_bilstm_kernel(%arg0: i32, %arg1: memref<8x2x128xf32, #tpu.memory_space<vmem>>, %arg2: memref<32x128xf32, #tpu.memory_space<vmem>>, %arg3: memref<8x2x32xf32, #tpu.memory_space<vmem>>, %arg4: memref<2x32xf32, #tpu.memory_space<vmem>>, %arg5: memref<2x32xf32, #tpu.memory_space<vmem>>) attributes {dimension_semantics = [#tpu.dimension_semantics<arbitrary>], iteration_bounds = array<i64: 1>, scalar_prefetch = 0 : i64, scratch_operands = 2 : i64, tpu.core_type = #tpu.core_type<tc>, window_params = [{transform_indices = @transform_0, window_bounds = array<i64: 8, 2, 128>}, {pipeline_mode = #tpu.pipeline_mode<synchronous>, transform_indices = @transform_1, window_bounds = array<i64: 32, 128>}, {transform_indices = @transform_2, window_bounds = array<i64: 8, 2, 32>}]} {
    %c0_i32 = arith.constant 0 : i32
    %0 = arith.cmpi eq, %arg0, %c0_i32 : i32
    %1 = arith.extui %0 : i1 to i32
    %c0_i32_0 = arith.constant 0 : i32
    %2 = arith.cmpi ne, %1, %c0_i32_0 : i32
    scf.if %2 {
      %cst = arith.constant 0.000000e+00 : f32
      %5 = vector.broadcast %cst : f32 to vector<2x32xf32>
      %c0_4 = arith.constant 0 : index
      %c0_5 = arith.constant 0 : index
      %6 = vector.load %arg4[%c0_4, %c0_5] : memref<2x32xf32, #tpu.memory_space<vmem>>, vector<2x32xf32>
      tpu.vector_store %arg4[%c0_4, %c0_5], %5 {strides = array<i32>} : memref<2x32xf32, #tpu.memory_space<vmem>>, vector<2x32xf32>,
      %cst_6 = arith.constant 0.000000e+00 : f32
      %7 = vector.broadcast %cst_6 : f32 to vector<2x32xf32>
      %c0_7 = arith.constant 0 : index
      %c0_8 = arith.constant 0 : index
      %8 = vector.load %arg5[%c0_7, %c0_8] : memref<2x32xf32, #tpu.memory_space<vmem>>, vector<2x32xf32>
      tpu.vector_store %arg5[%c0_7, %c0_8], %7 {strides = array<i32>} : memref<2x32xf32, #tpu.memory_space<vmem>>, vector<2x32xf32>,
    } else {
    }
    %c0 = arith.constant 0 : index
    %c0_1 = arith.constant 0 : index
    %3 = vector.load %arg2[%c0, %c0_1] : memref<32x128xf32, #tpu.memory_space<vmem>>, vector<32x128xf32>
    %c0_i32_2 = arith.constant 0 : i32
    %c8_i32 = arith.constant 8 : i32
    %4 = arith.addi %c0_i32_2, %c8_i32 : i32
    %c1_i32 = arith.constant 1 : i32
    scf.for %arg6 = %c0_i32_2 to %4 step %c1_i32  : i32 {
      %c1_i32_4 = arith.constant 1 : i32
      %5 = arith.muli %arg6, %c1_i32_4 : i32
      %c0_i32_5 = arith.constant 0 : i32
      %6 = arith.addi %c0_i32_5, %5 : i32
      %7 = arith.index_cast %6 : i32 to index
      %c0_6 = arith.constant 0 : index
      %c0_7 = arith.constant 0 : index
      %8 = vector.load %arg1[%7, %c0_6, %c0_7] : memref<8x2x128xf32, #tpu.memory_space<vmem>>, vector<1x2x128xf32>
      %9 = vector.shape_cast %8 : vector<1x2x128xf32> to vector<2x128xf32>
      %c0_8 = arith.constant 0 : index
      %c0_9 = arith.constant 0 : index
      %10 = vector.load %arg4[%c0_8, %c0_9] : memref<2x32xf32, #tpu.memory_space<vmem>>, vector<2x32xf32>
      %cst = arith.constant dense<0.000000e+00> : vector<2x128xf32>
      %11 = tpu.matmul %10, %3, %cst {dimension_numbers = #tpu.dot_dimension_numbers<[1], [0], [0], [1], [0, 0, 1, 1], [], []>} : vector<2x32xf32>, vector<32x128xf32>, vector<2x128xf32> -> vector<2x128xf32>
      %12 = arith.addf %9, %11 : vector<2x128xf32>
      %13 = vector.extract_strided_slice %12 {offsets = [0, 0], sizes = [2, 32], strides = [1, 1]} : vector<2x128xf32> to vector<2x32xf32>
      %14 = arith.negf %13 : vector<2x32xf32>
      %15 = math.exp %14 : vector<2x32xf32>
      %cst_10 = arith.constant 1.000000e+00 : f32
      %16 = vector.broadcast %cst_10 : f32 to vector<2x32xf32>
      %17 = arith.addf %16, %15 : vector<2x32xf32>
      %18 = arith.divf %16, %17 : vector<2x32xf32>
      %19 = vector.extract_strided_slice %12 {offsets = [0, 32], sizes = [2, 32], strides = [1, 1]} : vector<2x128xf32> to vector<2x32xf32>
      %20 = arith.negf %19 : vector<2x32xf32>
      %21 = math.exp %20 : vector<2x32xf32>
      %cst_11 = arith.constant 1.000000e+00 : f32
      %22 = vector.broadcast %cst_11 : f32 to vector<2x32xf32>
      %23 = arith.addf %22, %21 : vector<2x32xf32>
      %24 = arith.divf %22, %23 : vector<2x32xf32>
      %25 = vector.extract_strided_slice %12 {offsets = [0, 64], sizes = [2, 32], strides = [1, 1]} : vector<2x128xf32> to vector<2x32xf32>
      %26 = math.tanh %25 : vector<2x32xf32>
      %27 = vector.extract_strided_slice %12 {offsets = [0, 96], sizes = [2, 32], strides = [1, 1]} : vector<2x128xf32> to vector<2x32xf32>
      %28 = arith.negf %27 : vector<2x32xf32>
      %29 = math.exp %28 : vector<2x32xf32>
      %cst_12 = arith.constant 1.000000e+00 : f32
      %30 = vector.broadcast %cst_12 : f32 to vector<2x32xf32>
      %31 = arith.addf %30, %29 : vector<2x32xf32>
      %32 = arith.divf %30, %31 : vector<2x32xf32>
      %c0_13 = arith.constant 0 : index
      %c0_14 = arith.constant 0 : index
      %33 = vector.load %arg5[%c0_13, %c0_14] : memref<2x32xf32, #tpu.memory_space<vmem>>, vector<2x32xf32>
      %34 = arith.mulf %24, %33 : vector<2x32xf32>
      %35 = arith.mulf %18, %26 : vector<2x32xf32>
      %36 = arith.addf %34, %35 : vector<2x32xf32>
      %37 = math.tanh %36 : vector<2x32xf32>
      %38 = arith.mulf %32, %37 : vector<2x32xf32>
      %39 = arith.index_cast %6 : i32 to index
      %c0_15 = arith.constant 0 : index
      %c0_16 = arith.constant 0 : index
      %40 = vector.load %arg3[%39, %c0_15, %c0_16] : memref<8x2x32xf32, #tpu.memory_space<vmem>>, vector<1x2x32xf32>
      %41 = vector.shape_cast %40 : vector<1x2x32xf32> to vector<2x32xf32>
      %42 = vector.shape_cast %38 : vector<2x32xf32> to vector<1x2x32xf32>
      tpu.vector_store %arg3[%39, %c0_15, %c0_16], %42 {strides = array<i32>} : memref<8x2x32xf32, #tpu.memory_space<vmem>>, vector<1x2x32xf32>,
      %c0_17 = arith.constant 0 : index
      %c0_18 = arith.constant 0 : index
      %43 = vector.load %arg4[%c0_17, %c0_18] : memref<2x32xf32, #tpu.memory_space<vmem>>, vector<2x32xf32>
      tpu.vector_store %arg4[%c0_17, %c0_18], %38 {strides = array<i32>} : memref<2x32xf32, #tpu.memory_space<vmem>>, vector<2x32xf32>,
      %c0_19 = arith.constant 0 : index
      %c0_20 = arith.constant 0 : index
      %44 = vector.load %arg5[%c0_19, %c0_20] : memref<2x32xf32, #tpu.memory_space<vmem>>, vector<2x32xf32>
      tpu.vector_store %arg5[%c0_19, %c0_20], %36 {strides = array<i32>} : memref<2x32xf32, #tpu.memory_space<vmem>>, vector<2x32xf32>,
    }
    %c8_i32_3 = arith.constant 8 : i32
    return
  }
  func.func @transform_0(%arg0: i32) -> (i32, i32, i32) {
    %c0_i32 = arith.constant 0 : i32
    %c0_i32_0 = arith.constant 0 : i32
    %c0_i32_1 = arith.constant 0 : i32
    return %arg0, %c0_i32, %c0_i32_0 : i32, i32, i32
  }
  func.func @transform_1(%arg0: i32) -> (i32, i32) {
    %c0_i32 = arith.constant 0 : i32
    %c0_i32_0 = arith.constant 0 : i32
    %c0_i32_1 = arith.constant 0 : i32
    return %c0_i32, %c0_i32_0 : i32, i32
  }
  func.func @transform_2(%arg0: i32) -> (i32, i32, i32) {
    %c0_i32 = arith.constant 0 : i32
    %c0_i32_0 = arith.constant 0 : i32
    %c0_i32_1 = arith.constant 0 : i32
    return %arg0, %c0_i32, %c0_i32_0 : i32, i32, i32
  }
}

module attributes {stable_mosaic.version = 11 : i64} {
  func.func @_bilstm_kernel(%arg0: i32, %arg1: memref<8x2x128xf32, #tpu.memory_space<vmem>>, %arg2: memref<32x128xf32, #tpu.memory_space<vmem>>, %arg3: memref<8x2x32xf32, #tpu.memory_space<vmem>>, %arg4: memref<2x32xf32, #tpu.memory_space<vmem>>, %arg5: memref<2x32xf32, #tpu.memory_space<vmem>>) attributes {dimension_semantics = [#tpu.dimension_semantics<arbitrary>], iteration_bounds = array<i64: 2>, scalar_prefetch = 0 : i64, scratch_operands = 2 : i64, tpu.core_type = #tpu.core_type<tc>, window_params = [{transform_indices = @transform_0, window_bounds = array<i64: 8, 2, 128>}, {pipeline_mode = #tpu.pipeline_mode<synchronous>, transform_indices = @transform_1, window_bounds = array<i64: 32, 128>}, {transform_indices = @transform_2, window_bounds = array<i64: 8, 2, 32>}]} {
    %c0_i32 = arith.constant 0 : i32
    %0 = arith.cmpi eq, %arg0, %c0_i32 : i32
    %1 = arith.extui %0 : i1 to i32
    %c0_i32_0 = arith.constant 0 : i32
    %2 = arith.cmpi ne, %1, %c0_i32_0 : i32
    scf.if %2 {
      %cst = arith.constant 0.000000e+00 : f32
      %5 = vector.broadcast %cst : f32 to vector<2x32xf32>
      %c0_4 = arith.constant 0 : index
      %c0_5 = arith.constant 0 : index
      %6 = vector.load %arg4[%c0_4, %c0_5] : memref<2x32xf32, #tpu.memory_space<vmem>>, vector<2x32xf32>
      tpu.vector_store %arg4[%c0_4, %c0_5], %5 {strides = array<i32>} : memref<2x32xf32, #tpu.memory_space<vmem>>, vector<2x32xf32>,
      %cst_6 = arith.constant 0.000000e+00 : f32
      %7 = vector.broadcast %cst_6 : f32 to vector<2x32xf32>
      %c0_7 = arith.constant 0 : index
      %c0_8 = arith.constant 0 : index
      %8 = vector.load %arg5[%c0_7, %c0_8] : memref<2x32xf32, #tpu.memory_space<vmem>>, vector<2x32xf32>
      tpu.vector_store %arg5[%c0_7, %c0_8], %7 {strides = array<i32>} : memref<2x32xf32, #tpu.memory_space<vmem>>, vector<2x32xf32>,
    } else {
    }
    %c0 = arith.constant 0 : index
    %c0_1 = arith.constant 0 : index
    %3 = vector.load %arg2[%c0, %c0_1] : memref<32x128xf32, #tpu.memory_space<vmem>>, vector<32x128xf32>
    %c0_i32_2 = arith.constant 0 : i32
    %c8_i32 = arith.constant 8 : i32
    %4 = arith.addi %c0_i32_2, %c8_i32 : i32
    %c1_i32 = arith.constant 1 : i32
    scf.for %arg6 = %c0_i32_2 to %4 step %c1_i32  : i32 {
      %c1_i32_4 = arith.constant 1 : i32
      %5 = arith.muli %arg6, %c1_i32_4 : i32
      %c0_i32_5 = arith.constant 0 : i32
      %6 = arith.addi %c0_i32_5, %5 : i32
      %7 = arith.index_cast %6 : i32 to index
      %c0_6 = arith.constant 0 : index
      %c0_7 = arith.constant 0 : index
      %8 = vector.load %arg1[%7, %c0_6, %c0_7] : memref<8x2x128xf32, #tpu.memory_space<vmem>>, vector<1x2x128xf32>
      %9 = vector.shape_cast %8 : vector<1x2x128xf32> to vector<2x128xf32>
      %c0_8 = arith.constant 0 : index
      %c0_9 = arith.constant 0 : index
      %10 = vector.load %arg4[%c0_8, %c0_9] : memref<2x32xf32, #tpu.memory_space<vmem>>, vector<2x32xf32>
      %cst = arith.constant dense<0.000000e+00> : vector<2x128xf32>
      %11 = tpu.matmul %10, %3, %cst {dimension_numbers = #tpu.dot_dimension_numbers<[1], [0], [0], [1], [0, 0, 1, 1], [], []>} : vector<2x32xf32>, vector<32x128xf32>, vector<2x128xf32> -> vector<2x128xf32>
      %12 = arith.addf %9, %11 : vector<2x128xf32>
      %13 = vector.extract_strided_slice %12 {offsets = [0, 0], sizes = [2, 32], strides = [1, 1]} : vector<2x128xf32> to vector<2x32xf32>
      %14 = arith.negf %13 : vector<2x32xf32>
      %15 = math.exp %14 : vector<2x32xf32>
      %cst_10 = arith.constant 1.000000e+00 : f32
      %16 = vector.broadcast %cst_10 : f32 to vector<2x32xf32>
      %17 = arith.addf %16, %15 : vector<2x32xf32>
      %18 = arith.divf %16, %17 : vector<2x32xf32>
      %19 = vector.extract_strided_slice %12 {offsets = [0, 32], sizes = [2, 32], strides = [1, 1]} : vector<2x128xf32> to vector<2x32xf32>
      %20 = arith.negf %19 : vector<2x32xf32>
      %21 = math.exp %20 : vector<2x32xf32>
      %cst_11 = arith.constant 1.000000e+00 : f32
      %22 = vector.broadcast %cst_11 : f32 to vector<2x32xf32>
      %23 = arith.addf %22, %21 : vector<2x32xf32>
      %24 = arith.divf %22, %23 : vector<2x32xf32>
      %25 = vector.extract_strided_slice %12 {offsets = [0, 64], sizes = [2, 32], strides = [1, 1]} : vector<2x128xf32> to vector<2x32xf32>
      %26 = math.tanh %25 : vector<2x32xf32>
      %27 = vector.extract_strided_slice %12 {offsets = [0, 96], sizes = [2, 32], strides = [1, 1]} : vector<2x128xf32> to vector<2x32xf32>
      %28 = arith.negf %27 : vector<2x32xf32>
      %29 = math.exp %28 : vector<2x32xf32>
      %cst_12 = arith.constant 1.000000e+00 : f32
      %30 = vector.broadcast %cst_12 : f32 to vector<2x32xf32>
      %31 = arith.addf %30, %29 : vector<2x32xf32>
      %32 = arith.divf %30, %31 : vector<2x32xf32>
      %c0_13 = arith.constant 0 : index
      %c0_14 = arith.constant 0 : index
      %33 = vector.load %arg5[%c0_13, %c0_14] : memref<2x32xf32, #tpu.memory_space<vmem>>, vector<2x32xf32>
      %34 = arith.mulf %24, %33 : vector<2x32xf32>
      %35 = arith.mulf %18, %26 : vector<2x32xf32>
      %36 = arith.addf %34, %35 : vector<2x32xf32>
      %37 = math.tanh %36 : vector<2x32xf32>
      %38 = arith.mulf %32, %37 : vector<2x32xf32>
      %39 = arith.index_cast %6 : i32 to index
      %c0_15 = arith.constant 0 : index
      %c0_16 = arith.constant 0 : index
      %40 = vector.load %arg3[%39, %c0_15, %c0_16] : memref<8x2x32xf32, #tpu.memory_space<vmem>>, vector<1x2x32xf32>
      %41 = vector.shape_cast %40 : vector<1x2x32xf32> to vector<2x32xf32>
      %42 = vector.shape_cast %38 : vector<2x32xf32> to vector<1x2x32xf32>
      tpu.vector_store %arg3[%39, %c0_15, %c0_16], %42 {strides = array<i32>} : memref<8x2x32xf32, #tpu.memory_space<vmem>>, vector<1x2x32xf32>,
      %c0_17 = arith.constant 0 : index
      %c0_18 = arith.constant 0 : index
      %43 = vector.load %arg4[%c0_17, %c0_18] : memref<2x32xf32, #tpu.memory_space<vmem>>, vector<2x32xf32>
      tpu.vector_store %arg4[%c0_17, %c0_18], %38 {strides = array<i32>} : memref<2x32xf32, #tpu.memory_space<vmem>>, vector<2x32xf32>,
      %c0_19 = arith.constant 0 : index
      %c0_20 = arith.constant 0 : index
      %44 = vector.load %arg5[%c0_19, %c0_20] : memref<2x32xf32, #tpu.memory_space<vmem>>, vector<2x32xf32>
      tpu.vector_store %arg5[%c0_19, %c0_20], %36 {strides = array<i32>} : memref<2x32xf32, #tpu.memory_space<vmem>>, vector<2x32xf32>,
    }
    %c8_i32_3 = arith.constant 8 : i32
    return
  }
  func.func @transform_0(%arg0: i32) -> (i32, i32, i32) {
    %c0_i32 = arith.constant 0 : i32
    %c0_i32_0 = arith.constant 0 : i32
    %c0_i32_1 = arith.constant 0 : i32
    return %arg0, %c0_i32, %c0_i32_0 : i32, i32, i32
  }
  func.func @transform_1(%arg0: i32) -> (i32, i32) {
    %c0_i32 = arith.constant 0 : i32
    %c0_i32_0 = arith.constant 0 : i32
    %c0_i32_1 = arith.constant 0 : i32
    return %c0_i32, %c0_i32_0 : i32, i32
  }
  func.func @transform_2(%arg0: i32) -> (i32, i32, i32) {
    %c0_i32 = arith.constant 0 : i32
    %c0_i32_0 = arith.constant 0 : i32
    %c0_i32_1 = arith.constant 0 : i32
    return %arg0, %c0_i32, %c0_i32_0 : i32, i32, i32
  }
}

module attributes {stable_mosaic.version = 11 : i64} {
  func.func @_dense_kernel(%arg0: i32, %arg1: memref<32x128xbf16, #tpu.memory_space<vmem>>, %arg2: memref<128x128xbf16, #tpu.memory_space<vmem>>, %arg3: memref<1x128xf32, #tpu.memory_space<vmem>>, %arg4: memref<32x128xf32, #tpu.memory_space<vmem>>) attributes {dimension_semantics = [#tpu.dimension_semantics<parallel>], iteration_bounds = array<i64: 1>, scalar_prefetch = 0 : i64, scratch_operands = 0 : i64, tpu.core_type = #tpu.core_type<tc>, window_params = [{transform_indices = @transform_0, window_bounds = array<i64: 32, 128>}, {pipeline_mode = #tpu.pipeline_mode<synchronous>, transform_indices = @transform_1, window_bounds = array<i64: 128, 128>}, {pipeline_mode = #tpu.pipeline_mode<synchronous>, transform_indices = @transform_2, window_bounds = array<i64: 1, 128>}, {transform_indices = @transform_3, window_bounds = array<i64: 32, 128>}]} {
    %c0 = arith.constant 0 : index
    %c0_0 = arith.constant 0 : index
    %0 = vector.load %arg1[%c0, %c0_0] : memref<32x128xbf16, #tpu.memory_space<vmem>>, vector<32x128xbf16>
    %c0_1 = arith.constant 0 : index
    %c0_2 = arith.constant 0 : index
    %1 = vector.load %arg2[%c0_1, %c0_2] : memref<128x128xbf16, #tpu.memory_space<vmem>>, vector<128x128xbf16>
    %cst = arith.constant dense<0.000000e+00> : vector<32x128xf32>
    %2 = tpu.matmul %0, %1, %cst {dimension_numbers = #tpu.dot_dimension_numbers<[1], [0], [0], [1], [0, 0, 1, 1], [], []>} : vector<32x128xbf16>, vector<128x128xbf16>, vector<32x128xf32> -> vector<32x128xf32>
    %c0_3 = arith.constant 0 : index
    %c0_4 = arith.constant 0 : index
    %3 = vector.load %arg3[%c0_3, %c0_4] : memref<1x128xf32, #tpu.memory_space<vmem>>, vector<1x128xf32>
    %4 = vector.broadcast %3 : vector<1x128xf32> to vector<32x128xf32>
    %5 = arith.addf %2, %4 : vector<32x128xf32>
    %c0_5 = arith.constant 0 : index
    %c0_6 = arith.constant 0 : index
    %6 = vector.load %arg4[%c0_5, %c0_6] : memref<32x128xf32, #tpu.memory_space<vmem>>, vector<32x128xf32>
    tpu.vector_store %arg4[%c0_5, %c0_6], %5 {strides = array<i32>} : memref<32x128xf32, #tpu.memory_space<vmem>>, vector<32x128xf32>,
    return
  }
  func.func @transform_0(%arg0: i32) -> (i32, i32) {
    %c0_i32 = arith.constant 0 : i32
    %c0_i32_0 = arith.constant 0 : i32
    return %arg0, %c0_i32 : i32, i32
  }
  func.func @transform_1(%arg0: i32) -> (i32, i32) {
    %c0_i32 = arith.constant 0 : i32
    %c0_i32_0 = arith.constant 0 : i32
    %c0_i32_1 = arith.constant 0 : i32
    return %c0_i32, %c0_i32_0 : i32, i32
  }
  func.func @transform_2(%arg0: i32) -> (i32, i32) {
    %c0_i32 = arith.constant 0 : i32
    %c0_i32_0 = arith.constant 0 : i32
    %c0_i32_1 = arith.constant 0 : i32
    return %c0_i32, %c0_i32_0 : i32, i32
  }
  func.func @transform_3(%arg0: i32) -> (i32, i32) {
    %c0_i32 = arith.constant 0 : i32
    %c0_i32_0 = arith.constant 0 : i32
    return %arg0, %c0_i32 : i32, i32
  }
}

module attributes {stable_mosaic.version = 11 : i64} {
  func.func @_att_selfatt_kernel(%arg0: i32, %arg1: memref<1x16x32xf32, #tpu.memory_space<vmem>>, %arg2: memref<1x8x32xf32, #tpu.memory_space<vmem>>, %arg3: memref<1x16x1xf32, #tpu.memory_space<vmem>>, %arg4: memref<1x1x16xf32, #tpu.memory_space<vmem>>, %arg5: memref<1x1x8xf32, #tpu.memory_space<vmem>>, %arg6: memref<1x32xf32, #tpu.memory_space<vmem>>, %arg7: memref<1x32xf32, #tpu.memory_space<vmem>>, %arg8: memref<1x32xf32, #tpu.memory_space<vmem>>, %arg9: memref<1x1xf32, #tpu.memory_space<vmem>>, %arg10: memref<1x128xf32, #tpu.memory_space<vmem>>, %arg11: memref<1x128xf32, #tpu.memory_space<vmem>>, %arg12: memref<1x128xf32, #tpu.memory_space<vmem>>, %arg13: memref<1x1xf32, #tpu.memory_space<vmem>>, %arg14: memref<1x16x128xf32, #tpu.memory_space<vmem>>) attributes {dimension_semantics = [#tpu.dimension_semantics<parallel>], iteration_bounds = array<i64: 2>, scalar_prefetch = 0 : i64, scratch_operands = 0 : i64, tpu.core_type = #tpu.core_type<tc>, window_params = [{transform_indices = @transform_0, window_bounds = array<i64: 1, 16, 32>}, {transform_indices = @transform_1, window_bounds = array<i64: 1, 8, 32>}, {transform_indices = @transform_2, window_bounds = array<i64: 1, 16, 1>}, {transform_indices = @transform_3, window_bounds = array<i64: 1, 1, 16>}, {transform_indices = @transform_4, window_bounds = array<i64: 1, 1, 8>}, {pipeline_mode = #tpu.pipeline_mode<synchronous>, transform_indices = @transform_5, window_bounds = array<i64: 1, 32>}, {pipeline_mode = #tpu.pipeline_mode<synchronous>, transform_indices = @transform_6, window_bounds = array<i64: 1, 32>}, {pipeline_mode = #tpu.pipeline_mode<synchronous>, transform_indices = @transform_7, window_bounds = array<i64: 1, 32>}, {pipeline_mode = #tpu.pipeline_mode<synchronous>, transform_indices = @transform_8, window_bounds = array<i64: 1, 1>}, {pipeline_mode = #tpu.pipeline_mode<synchronous>, transform_indices = @transform_9, window_bounds = array<i64: 1, 128>}, {pipeline_mode = #tpu.pipeline_mode<synchronous>, transform_indices = @transform_10, window_bounds = array<i64: 1, 128>}, {pipeline_mode = #tpu.pipeline_mode<synchronous>, transform_indices = @transform_11, window_bounds = array<i64: 1, 128>}, {pipeline_mode = #tpu.pipeline_mode<synchronous>, transform_indices = @transform_12, window_bounds = array<i64: 1, 1>}, {transform_indices = @transform_13, window_bounds = array<i64: 1, 16, 128>}]} {
    %c0 = arith.constant 0 : index
    %c0_0 = arith.constant 0 : index
    %c0_1 = arith.constant 0 : index
    %0 = vector.load %arg1[%c0, %c0_0, %c0_1] : memref<1x16x32xf32, #tpu.memory_space<vmem>>, vector<1x16x32xf32>
    %1 = vector.shape_cast %0 : vector<1x16x32xf32> to vector<16x32xf32>
    %c0_2 = arith.constant 0 : index
    %c0_3 = arith.constant 0 : index
    %c0_4 = arith.constant 0 : index
    %2 = vector.load %arg2[%c0_2, %c0_3, %c0_4] : memref<1x8x32xf32, #tpu.memory_space<vmem>>, vector<1x8x32xf32>
    %3 = vector.shape_cast %2 : vector<1x8x32xf32> to vector<8x32xf32>
    %c0_5 = arith.constant 0 : index
    %c0_6 = arith.constant 0 : index
    %c0_7 = arith.constant 0 : index
    %4 = vector.load %arg3[%c0_5, %c0_6, %c0_7] : memref<1x16x1xf32, #tpu.memory_space<vmem>>, vector<1x16x1xf32>
    %5 = vector.shape_cast %4 : vector<1x16x1xf32> to vector<16x1xf32>
    %c0_8 = arith.constant 0 : index
    %c0_9 = arith.constant 0 : index
    %c0_10 = arith.constant 0 : index
    %6 = vector.load %arg4[%c0_8, %c0_9, %c0_10] : memref<1x1x16xf32, #tpu.memory_space<vmem>>, vector<1x1x16xf32>
    %7 = vector.shape_cast %6 : vector<1x1x16xf32> to vector<1x16xf32>
    %c0_11 = arith.constant 0 : index
    %c0_12 = arith.constant 0 : index
    %c0_13 = arith.constant 0 : index
    %8 = vector.load %arg5[%c0_11, %c0_12, %c0_13] : memref<1x1x8xf32, #tpu.memory_space<vmem>>, vector<1x1x8xf32>
    %9 = vector.shape_cast %8 : vector<1x1x8xf32> to vector<1x8xf32>
    %10 = arith.truncf %1 : vector<16x32xf32> to vector<16x32xbf16>
    %11 = arith.truncf %3 : vector<8x32xf32> to vector<8x32xbf16>
    %c0_14 = arith.constant 0 : index
    %c0_15 = arith.constant 0 : index
    %12 = vector.load %arg6[%c0_14, %c0_15] : memref<1x32xf32, #tpu.memory_space<vmem>>, vector<1x32xf32>
    %13 = vector.broadcast %12 : vector<1x32xf32> to vector<16x32xf32>
    %14 = arith.mulf %1, %13 : vector<16x32xf32>
    %cst = arith.constant dense<0.000000e+00> : vector<16xf32>
    %15 = vector.multi_reduction <add>, %14, %cst [1] : vector<16x32xf32> to vector<16xf32>
    %16 = vector.shape_cast %15 : vector<16xf32> to vector<16x1xf32>
    %c0_16 = arith.constant 0 : index
    %c0_17 = arith.constant 0 : index
    %17 = vector.load %arg8[%c0_16, %c0_17] : memref<1x32xf32, #tpu.memory_space<vmem>>, vector<1x32xf32>
    %18 = vector.broadcast %17 : vector<1x32xf32> to vector<16x32xf32>
    %19 = arith.mulf %1, %18 : vector<16x32xf32>
    %c0_18 = arith.constant 0 : index
    %c0_19 = arith.constant 0 : index
    %20 = vector.load %arg7[%c0_18, %c0_19] : memref<1x32xf32, #tpu.memory_space<vmem>>, vector<1x32xf32>
    %21 = vector.broadcast %20 : vector<1x32xf32> to vector<16x32xf32>
    %22 = arith.addf %19, %21 : vector<16x32xf32>
    %23 = arith.truncf %22 : vector<16x32xf32> to vector<16x32xbf16>
    %c0_20 = arith.constant 0 : index
    %c0_21 = arith.constant 0 : index
    %24 = vector.load %arg9[%c0_20, %c0_21] : memref<1x1xf32, #tpu.memory_space<vmem>>, vector<1x1xf32>
    %25 = vector.extract %24[0, 0] : f32 from vector<1x1xf32>
    %26 = vector.broadcast %25 : f32 to vector<16x1xf32>
    %27 = arith.addf %16, %26 : vector<16x1xf32>
    %cst_22 = arith.constant dense<0.000000e+00> : vector<16x8xf32>
    %28 = tpu.matmul %23, %11, %cst_22 {dimension_numbers = #tpu.dot_dimension_numbers<[1], [1], [0], [0], [0, 0, 1, 0], [], []>} : vector<16x32xbf16>, vector<8x32xbf16>, vector<16x8xf32> -> vector<16x8xf32>
    %29 = vector.broadcast %27 : vector<16x1xf32> to vector<16x8xf32>
    %30 = arith.addf %29, %28 : vector<16x8xf32>
    %cst_23 = arith.constant 0.000000e+00 : f32
    %31 = vector.broadcast %cst_23 : f32 to vector<1x8xf32>
    %32 = arith.cmpf ogt, %9, %31 : vector<1x8xf32>
    %cst_24 = arith.constant -1.000000e+30 : f32
    %33 = vector.shape_cast %32 : vector<1x8xi1> to vector<1x8xi1>
    %34 = vector.broadcast %33 : vector<1x8xi1> to vector<16x8xi1>
    %35 = vector.broadcast %cst_24 : f32 to vector<16x8xf32>
    %36 = arith.select %34, %30, %35 : vector<16x8xi1>, vector<16x8xf32>
    %cst_25 = arith.constant dense<0xFF800000> : vector<16xf32>
    %37 = vector.multi_reduction <maximumf>, %36, %cst_25 [1] : vector<16x8xf32> to vector<16xf32>
    %38 = vector.shape_cast %37 : vector<16xf32> to vector<16x1xf32>
    %39 = vector.broadcast %38 : vector<16x1xf32> to vector<16x8xf32>
    %40 = arith.subf %36, %39 : vector<16x8xf32>
    %41 = math.exp %40 : vector<16x8xf32>
    %cst_26 = arith.constant dense<0.000000e+00> : vector<16xf32>
    %42 = vector.multi_reduction <add>, %41, %cst_26 [1] : vector<16x8xf32> to vector<16xf32>
    %43 = vector.shape_cast %42 : vector<16xf32> to vector<16x1xf32>
    %44 = tpu.reciprocal %43 {approx = true} : vector<16x1xf32> -> vector<16x1xf32>
    %45 = vector.broadcast %44 : vector<16x1xf32> to vector<16x8xf32>
    %46 = arith.mulf %41, %45 : vector<16x8xf32>
    %cst_27 = arith.constant 0.000000e+00 : f32
    %47 = vector.broadcast %cst_27 : f32 to vector<16x1xf32>
    %48 = arith.cmpf ogt, %5, %47 : vector<16x1xf32>
    %cst_28 = arith.constant -1.000000e+30 : f32
    %49 = vector.shape_cast %48 : vector<16x1xi1> to vector<16x1xi1>
    %50 = vector.broadcast %49 : vector<16x1xi1> to vector<16x8xi1>
    %51 = vector.broadcast %cst_28 : f32 to vector<16x8xf32>
    %52 = arith.select %50, %30, %51 : vector<16x8xi1>, vector<16x8xf32>
    %cst_29 = arith.constant dense<0xFF800000> : vector<8xf32>
    %53 = vector.multi_reduction <maximumf>, %52, %cst_29 [0] : vector<16x8xf32> to vector<8xf32>
    %54 = vector.shape_cast %53 : vector<8xf32> to vector<1x8xf32>
    %55 = vector.broadcast %54 : vector<1x8xf32> to vector<16x8xf32>
    %56 = arith.subf %52, %55 : vector<16x8xf32>
    %57 = math.exp %56 : vector<16x8xf32>
    %cst_30 = arith.constant dense<0.000000e+00> : vector<8xf32>
    %58 = vector.multi_reduction <add>, %57, %cst_30 [0] : vector<16x8xf32> to vector<8xf32>
    %59 = vector.shape_cast %58 : vector<8xf32> to vector<1x8xf32>
    %60 = tpu.reciprocal %59 {approx = true} : vector<1x8xf32> -> vector<1x8xf32>
    %61 = vector.broadcast %60 : vector<1x8xf32> to vector<16x8xf32>
    %62 = arith.mulf %57, %61 : vector<16x8xf32>
    %63 = arith.truncf %46 : vector<16x8xf32> to vector<16x8xbf16>
    %cst_31 = arith.constant dense<0.000000e+00> : vector<16x32xf32>
    %64 = tpu.matmul %63, %11, %cst_31 {dimension_numbers = #tpu.dot_dimension_numbers<[1], [0], [0], [1], [0, 0, 1, 1], [], []>} : vector<16x8xbf16>, vector<8x32xbf16>, vector<16x32xf32> -> vector<16x32xf32>
    %65 = arith.truncf %62 : vector<16x8xf32> to vector<16x8xbf16>
    %cst_32 = arith.constant dense<0.000000e+00> : vector<8x32xf32>
    %66 = tpu.matmul %65, %10, %cst_32 {dimension_numbers = #tpu.dot_dimension_numbers<[0], [0], [1], [1], [0, 1, 1, 1], [], []>} : vector<16x8xbf16>, vector<16x32xbf16>, vector<8x32xf32> -> vector<8x32xf32>
    %67 = arith.truncf %46 : vector<16x8xf32> to vector<16x8xbf16>
    %68 = arith.truncf %66 : vector<8x32xf32> to vector<8x32xbf16>
    %cst_33 = arith.constant dense<0.000000e+00> : vector<16x32xf32>
    %69 = tpu.matmul %67, %68, %cst_33 {dimension_numbers = #tpu.dot_dimension_numbers<[1], [0], [0], [1], [0, 0, 1, 1], [], []>} : vector<16x8xbf16>, vector<8x32xbf16>, vector<16x32xf32> -> vector<16x32xf32>
    %70 = arith.mulf %1, %64 : vector<16x32xf32>
    %71 = arith.mulf %1, %69 : vector<16x32xf32>
    %72 = tpu.concatenate %1, %64, %70, %71 in 1 : vector<16x32xf32>, vector<16x32xf32>, vector<16x32xf32>, vector<16x32xf32> -> vector<16x128xf32>
    %73 = arith.truncf %72 : vector<16x128xf32> to vector<16x128xbf16>
    %c0_34 = arith.constant 0 : index
    %c0_35 = arith.constant 0 : index
    %74 = vector.load %arg10[%c0_34, %c0_35] : memref<1x128xf32, #tpu.memory_space<vmem>>, vector<1x128xf32>
    %75 = vector.broadcast %74 : vector<1x128xf32> to vector<16x128xf32>
    %76 = arith.mulf %72, %75 : vector<16x128xf32>
    %cst_36 = arith.constant dense<0.000000e+00> : vector<16xf32>
    %77 = vector.multi_reduction <add>, %76, %cst_36 [1] : vector<16x128xf32> to vector<16xf32>
    %78 = vector.shape_cast %77 : vector<16xf32> to vector<16x1xf32>
    %c0_37 = arith.constant 0 : index
    %c0_38 = arith.constant 0 : index
    %79 = vector.load %arg12[%c0_37, %c0_38] : memref<1x128xf32, #tpu.memory_space<vmem>>, vector<1x128xf32>
    %80 = vector.broadcast %79 : vector<1x128xf32> to vector<16x128xf32>
    %81 = arith.mulf %72, %80 : vector<16x128xf32>
    %c0_39 = arith.constant 0 : index
    %c0_40 = arith.constant 0 : index
    %82 = vector.load %arg11[%c0_39, %c0_40] : memref<1x128xf32, #tpu.memory_space<vmem>>, vector<1x128xf32>
    %83 = vector.broadcast %82 : vector<1x128xf32> to vector<16x128xf32>
    %84 = arith.addf %81, %83 : vector<16x128xf32>
    %85 = arith.truncf %84 : vector<16x128xf32> to vector<16x128xbf16>
    %c0_41 = arith.constant 0 : index
    %c0_42 = arith.constant 0 : index
    %86 = vector.load %arg13[%c0_41, %c0_42] : memref<1x1xf32, #tpu.memory_space<vmem>>, vector<1x1xf32>
    %87 = vector.extract %86[0, 0] : f32 from vector<1x1xf32>
    %88 = vector.broadcast %87 : f32 to vector<16x1xf32>
    %89 = arith.addf %78, %88 : vector<16x1xf32>
    %cst_43 = arith.constant dense<0.000000e+00> : vector<16x16xf32>
    %90 = tpu.matmul %85, %73, %cst_43 {dimension_numbers = #tpu.dot_dimension_numbers<[1], [1], [0], [0], [0, 0, 1, 0], [], []>} : vector<16x128xbf16>, vector<16x128xbf16>, vector<16x16xf32> -> vector<16x16xf32>
    %91 = vector.broadcast %89 : vector<16x1xf32> to vector<16x16xf32>
    %92 = arith.addf %91, %90 : vector<16x16xf32>
    %cst_44 = arith.constant 0.000000e+00 : f32
    %93 = vector.broadcast %cst_44 : f32 to vector<1x16xf32>
    %94 = arith.cmpf ogt, %7, %93 : vector<1x16xf32>
    %cst_45 = arith.constant -1.000000e+30 : f32
    %95 = vector.shape_cast %94 : vector<1x16xi1> to vector<1x16xi1>
    %96 = vector.broadcast %95 : vector<1x16xi1> to vector<16x16xi1>
    %97 = vector.broadcast %cst_45 : f32 to vector<16x16xf32>
    %98 = arith.select %96, %92, %97 : vector<16x16xi1>, vector<16x16xf32>
    %cst_46 = arith.constant dense<0xFF800000> : vector<16xf32>
    %99 = vector.multi_reduction <maximumf>, %98, %cst_46 [1] : vector<16x16xf32> to vector<16xf32>
    %100 = vector.shape_cast %99 : vector<16xf32> to vector<16x1xf32>
    %101 = vector.broadcast %100 : vector<16x1xf32> to vector<16x16xf32>
    %102 = arith.subf %98, %101 : vector<16x16xf32>
    %103 = math.exp %102 : vector<16x16xf32>
    %cst_47 = arith.constant dense<0.000000e+00> : vector<16xf32>
    %104 = vector.multi_reduction <add>, %103, %cst_47 [1] : vector<16x16xf32> to vector<16xf32>
    %105 = vector.shape_cast %104 : vector<16xf32> to vector<16x1xf32>
    %106 = tpu.reciprocal %105 {approx = true} : vector<16x1xf32> -> vector<16x1xf32>
    %107 = vector.broadcast %106 : vector<16x1xf32> to vector<16x16xf32>
    %108 = arith.mulf %103, %107 : vector<16x16xf32>
    %109 = arith.truncf %108 : vector<16x16xf32> to vector<16x16xbf16>
    %cst_48 = arith.constant dense<0.000000e+00> : vector<16x128xf32>
    %110 = tpu.matmul %109, %73, %cst_48 {dimension_numbers = #tpu.dot_dimension_numbers<[1], [0], [0], [1], [0, 0, 1, 1], [], []>} : vector<16x16xbf16>, vector<16x128xbf16>, vector<16x128xf32> -> vector<16x128xf32>
    %111 = arith.addf %72, %110 : vector<16x128xf32>
    %c0_49 = arith.constant 0 : index
    %c0_50 = arith.constant 0 : index
    %c0_51 = arith.constant 0 : index
    %112 = vector.load %arg14[%c0_49, %c0_50, %c0_51] : memref<1x16x128xf32, #tpu.memory_space<vmem>>, vector<1x16x128xf32>
    %113 = vector.shape_cast %112 : vector<1x16x128xf32> to vector<16x128xf32>
    %114 = vector.shape_cast %111 : vector<16x128xf32> to vector<1x16x128xf32>
    tpu.vector_store %arg14[%c0_49, %c0_50, %c0_51], %114 {strides = array<i32>} : memref<1x16x128xf32, #tpu.memory_space<vmem>>, vector<1x16x128xf32>,
    return
  }
  func.func @transform_0(%arg0: i32) -> (i32, i32, i32) {
    %c0_i32 = arith.constant 0 : i32
    %c0_i32_0 = arith.constant 0 : i32
    %c0_i32_1 = arith.constant 0 : i32
    return %arg0, %c0_i32, %c0_i32_0 : i32, i32, i32
  }
  func.func @transform_1(%arg0: i32) -> (i32, i32, i32) {
    %c0_i32 = arith.constant 0 : i32
    %c0_i32_0 = arith.constant 0 : i32
    %c0_i32_1 = arith.constant 0 : i32
    return %arg0, %c0_i32, %c0_i32_0 : i32, i32, i32
  }
  func.func @transform_2(%arg0: i32) -> (i32, i32, i32) {
    %c0_i32 = arith.constant 0 : i32
    %c0_i32_0 = arith.constant 0 : i32
    %c0_i32_1 = arith.constant 0 : i32
    return %arg0, %c0_i32, %c0_i32_0 : i32, i32, i32
  }
  func.func @transform_3(%arg0: i32) -> (i32, i32, i32) {
    %c0_i32 = arith.constant 0 : i32
    %c0_i32_0 = arith.constant 0 : i32
    %c0_i32_1 = arith.constant 0 : i32
    return %arg0, %c0_i32, %c0_i32_0 : i32, i32, i32
  }
  func.func @transform_4(%arg0: i32) -> (i32, i32, i32) {
    %c0_i32 = arith.constant 0 : i32
    %c0_i32_0 = arith.constant 0 : i32
    %c0_i32_1 = arith.constant 0 : i32
    return %arg0, %c0_i32, %c0_i32_0 : i32, i32, i32
  }
  func.func @transform_5(%arg0: i32) -> (i32, i32) {
    %c0_i32 = arith.constant 0 : i32
    %c0_i32_0 = arith.constant 0 : i32
    %c0_i32_1 = arith.constant 0 : i32
    return %c0_i32, %c0_i32_0 : i32, i32
  }
  func.func @transform_6(%arg0: i32) -> (i32, i32) {
    %c0_i32 = arith.constant 0 : i32
    %c0_i32_0 = arith.constant 0 : i32
    %c0_i32_1 = arith.constant 0 : i32
    return %c0_i32, %c0_i32_0 : i32, i32
  }
  func.func @transform_7(%arg0: i32) -> (i32, i32) {
    %c0_i32 = arith.constant 0 : i32
    %c0_i32_0 = arith.constant 0 : i32
    %c0_i32_1 = arith.constant 0 : i32
    return %c0_i32, %c0_i32_0 : i32, i32
  }
  func.func @transform_8(%arg0: i32) -> (i32, i32) {
    %c0_i32 = arith.constant 0 : i32
    %c0_i32_0 = arith.constant 0 : i32
    %c0_i32_1 = arith.constant 0 : i32
    return %c0_i32, %c0_i32_0 : i32, i32
  }
  func.func @transform_9(%arg0: i32) -> (i32, i32) {
    %c0_i32 = arith.constant 0 : i32
    %c0_i32_0 = arith.constant 0 : i32
    %c0_i32_1 = arith.constant 0 : i32
    return %c0_i32, %c0_i32_0 : i32, i32
  }
  func.func @transform_10(%arg0: i32) -> (i32, i32) {
    %c0_i32 = arith.constant 0 : i32
    %c0_i32_0 = arith.constant 0 : i32
    %c0_i32_1 = arith.constant 0 : i32
    return %c0_i32, %c0_i32_0 : i32, i32
  }
  func.func @transform_11(%arg0: i32) -> (i32, i32) {
    %c0_i32 = arith.constant 0 : i32
    %c0_i32_0 = arith.constant 0 : i32
    %c0_i32_1 = arith.constant 0 : i32
    return %c0_i32, %c0_i32_0 : i32, i32
  }
  func.func @transform_12(%arg0: i32) -> (i32, i32) {
    %c0_i32 = arith.constant 0 : i32
    %c0_i32_0 = arith.constant 0 : i32
    %c0_i32_1 = arith.constant 0 : i32
    return %c0_i32, %c0_i32_0 : i32, i32
  }
  func.func @transform_13(%arg0: i32) -> (i32, i32, i32) {
    %c0_i32 = arith.constant 0 : i32
    %c0_i32_0 = arith.constant 0 : i32
    %c0_i32_1 = arith.constant 0 : i32
    return %arg0, %c0_i32, %c0_i32_0 : i32, i32, i32
  }
}

module attributes {stable_mosaic.version = 11 : i64} {
  func.func @_dense_kernel(%arg0: i32, %arg1: memref<32x32xbf16, #tpu.memory_space<vmem>>, %arg2: memref<32x128xbf16, #tpu.memory_space<vmem>>, %arg3: memref<1x128xf32, #tpu.memory_space<vmem>>, %arg4: memref<32x128xf32, #tpu.memory_space<vmem>>) attributes {dimension_semantics = [#tpu.dimension_semantics<parallel>], iteration_bounds = array<i64: 1>, scalar_prefetch = 0 : i64, scratch_operands = 0 : i64, tpu.core_type = #tpu.core_type<tc>, window_params = [{transform_indices = @transform_0, window_bounds = array<i64: 32, 32>}, {pipeline_mode = #tpu.pipeline_mode<synchronous>, transform_indices = @transform_1, window_bounds = array<i64: 32, 128>}, {pipeline_mode = #tpu.pipeline_mode<synchronous>, transform_indices = @transform_2, window_bounds = array<i64: 1, 128>}, {transform_indices = @transform_3, window_bounds = array<i64: 32, 128>}]} {
    %c0 = arith.constant 0 : index
    %c0_0 = arith.constant 0 : index
    %0 = vector.load %arg1[%c0, %c0_0] : memref<32x32xbf16, #tpu.memory_space<vmem>>, vector<32x32xbf16>
    %c0_1 = arith.constant 0 : index
    %c0_2 = arith.constant 0 : index
    %1 = vector.load %arg2[%c0_1, %c0_2] : memref<32x128xbf16, #tpu.memory_space<vmem>>, vector<32x128xbf16>
    %cst = arith.constant dense<0.000000e+00> : vector<32x128xf32>
    %2 = tpu.matmul %0, %1, %cst {dimension_numbers = #tpu.dot_dimension_numbers<[1], [0], [0], [1], [0, 0, 1, 1], [], []>} : vector<32x32xbf16>, vector<32x128xbf16>, vector<32x128xf32> -> vector<32x128xf32>
    %c0_3 = arith.constant 0 : index
    %c0_4 = arith.constant 0 : index
    %3 = vector.load %arg3[%c0_3, %c0_4] : memref<1x128xf32, #tpu.memory_space<vmem>>, vector<1x128xf32>
    %4 = vector.broadcast %3 : vector<1x128xf32> to vector<32x128xf32>
    %5 = arith.addf %2, %4 : vector<32x128xf32>
    %c0_5 = arith.constant 0 : index
    %c0_6 = arith.constant 0 : index
    %6 = vector.load %arg4[%c0_5, %c0_6] : memref<32x128xf32, #tpu.memory_space<vmem>>, vector<32x128xf32>
    tpu.vector_store %arg4[%c0_5, %c0_6], %5 {strides = array<i32>} : memref<32x128xf32, #tpu.memory_space<vmem>>, vector<32x128xf32>,
    return
  }
  func.func @transform_0(%arg0: i32) -> (i32, i32) {
    %c0_i32 = arith.constant 0 : i32
    %c0_i32_0 = arith.constant 0 : i32
    return %arg0, %c0_i32 : i32, i32
  }
  func.func @transform_1(%arg0: i32) -> (i32, i32) {
    %c0_i32 = arith.constant 0 : i32
    %c0_i32_0 = arith.constant 0 : i32
    %c0_i32_1 = arith.constant 0 : i32
    return %c0_i32, %c0_i32_0 : i32, i32
  }
  func.func @transform_2(%arg0: i32) -> (i32, i32) {
    %c0_i32 = arith.constant 0 : i32
    %c0_i32_0 = arith.constant 0 : i32
    %c0_i32_1 = arith.constant 0 : i32
    return %c0_i32, %c0_i32_0 : i32, i32
  }
  func.func @transform_3(%arg0: i32) -> (i32, i32) {
    %c0_i32 = arith.constant 0 : i32
    %c0_i32_0 = arith.constant 0 : i32
    return %arg0, %c0_i32 : i32, i32
  }
}

module attributes {stable_mosaic.version = 11 : i64} {
  func.func @_output_kernel(%arg0: i32, %arg1: memref<1x16x128xf32, #tpu.memory_space<vmem>>, %arg2: memref<1x16x32xf32, #tpu.memory_space<vmem>>, %arg3: memref<1x16x32xf32, #tpu.memory_space<vmem>>, %arg4: memref<1x16x1xf32, #tpu.memory_space<vmem>>, %arg5: memref<1x128xf32, #tpu.memory_space<vmem>>, %arg6: memref<1x32xf32, #tpu.memory_space<vmem>>, %arg7: memref<1x128xf32, #tpu.memory_space<vmem>>, %arg8: memref<1x32xf32, #tpu.memory_space<vmem>>, %arg9: memref<1x2xf32, #tpu.memory_space<vmem>>, %arg10: memref<1x16x2xf32, #tpu.memory_space<vmem>>) attributes {dimension_semantics = [#tpu.dimension_semantics<parallel>], iteration_bounds = array<i64: 2>, scalar_prefetch = 0 : i64, scratch_operands = 0 : i64, tpu.core_type = #tpu.core_type<tc>, window_params = [{transform_indices = @transform_0, window_bounds = array<i64: 1, 16, 128>}, {transform_indices = @transform_1, window_bounds = array<i64: 1, 16, 32>}, {transform_indices = @transform_2, window_bounds = array<i64: 1, 16, 32>}, {transform_indices = @transform_3, window_bounds = array<i64: 1, 16, 1>}, {pipeline_mode = #tpu.pipeline_mode<synchronous>, transform_indices = @transform_4, window_bounds = array<i64: 1, 128>}, {pipeline_mode = #tpu.pipeline_mode<synchronous>, transform_indices = @transform_5, window_bounds = array<i64: 1, 32>}, {pipeline_mode = #tpu.pipeline_mode<synchronous>, transform_indices = @transform_6, window_bounds = array<i64: 1, 128>}, {pipeline_mode = #tpu.pipeline_mode<synchronous>, transform_indices = @transform_7, window_bounds = array<i64: 1, 32>}, {pipeline_mode = #tpu.pipeline_mode<synchronous>, transform_indices = @transform_8, window_bounds = array<i64: 1, 2>}, {transform_indices = @transform_9, window_bounds = array<i64: 1, 16, 2>}]} {
    %c0 = arith.constant 0 : index
    %c0_0 = arith.constant 0 : index
    %c0_1 = arith.constant 0 : index
    %0 = vector.load %arg1[%c0, %c0_0, %c0_1] : memref<1x16x128xf32, #tpu.memory_space<vmem>>, vector<1x16x128xf32>
    %1 = vector.shape_cast %0 : vector<1x16x128xf32> to vector<16x128xf32>
    %c0_2 = arith.constant 0 : index
    %c0_3 = arith.constant 0 : index
    %c0_4 = arith.constant 0 : index
    %2 = vector.load %arg2[%c0_2, %c0_3, %c0_4] : memref<1x16x32xf32, #tpu.memory_space<vmem>>, vector<1x16x32xf32>
    %3 = vector.shape_cast %2 : vector<1x16x32xf32> to vector<16x32xf32>
    %c0_5 = arith.constant 0 : index
    %c0_6 = arith.constant 0 : index
    %c0_7 = arith.constant 0 : index
    %4 = vector.load %arg3[%c0_5, %c0_6, %c0_7] : memref<1x16x32xf32, #tpu.memory_space<vmem>>, vector<1x16x32xf32>
    %5 = vector.shape_cast %4 : vector<1x16x32xf32> to vector<16x32xf32>
    %c0_8 = arith.constant 0 : index
    %c0_9 = arith.constant 0 : index
    %c0_10 = arith.constant 0 : index
    %6 = vector.load %arg4[%c0_8, %c0_9, %c0_10] : memref<1x16x1xf32, #tpu.memory_space<vmem>>, vector<1x16x1xf32>
    %7 = vector.shape_cast %6 : vector<1x16x1xf32> to vector<16x1xf32>
    %c0_11 = arith.constant 0 : index
    %c0_12 = arith.constant 0 : index
    %8 = vector.load %arg5[%c0_11, %c0_12] : memref<1x128xf32, #tpu.memory_space<vmem>>, vector<1x128xf32>
    %9 = vector.broadcast %8 : vector<1x128xf32> to vector<16x128xf32>
    %10 = arith.mulf %1, %9 : vector<16x128xf32>
    %cst = arith.constant dense<0.000000e+00> : vector<16xf32>
    %11 = vector.multi_reduction <add>, %10, %cst [1] : vector<16x128xf32> to vector<16xf32>
    %12 = vector.shape_cast %11 : vector<16xf32> to vector<16x1xf32>
    %c0_13 = arith.constant 0 : index
    %c0_14 = arith.constant 0 : index
    %13 = vector.load %arg6[%c0_13, %c0_14] : memref<1x32xf32, #tpu.memory_space<vmem>>, vector<1x32xf32>
    %14 = vector.broadcast %13 : vector<1x32xf32> to vector<16x32xf32>
    %15 = arith.mulf %3, %14 : vector<16x32xf32>
    %cst_15 = arith.constant dense<0.000000e+00> : vector<16xf32>
    %16 = vector.multi_reduction <add>, %15, %cst_15 [1] : vector<16x32xf32> to vector<16xf32>
    %17 = vector.shape_cast %16 : vector<16xf32> to vector<16x1xf32>
    %18 = arith.addf %12, %17 : vector<16x1xf32>
    %c0_16 = arith.constant 0 : index
    %c0_17 = arith.constant 0 : index
    %19 = vector.load %arg9[%c0_16, %c0_17] : memref<1x2xf32, #tpu.memory_space<vmem>>, vector<1x1xf32>
    %20 = vector.extract %19[0, 0] : f32 from vector<1x1xf32>
    %21 = vector.broadcast %20 : f32 to vector<16x1xf32>
    %22 = arith.addf %18, %21 : vector<16x1xf32>
    %c0_18 = arith.constant 0 : index
    %c0_19 = arith.constant 0 : index
    %23 = vector.load %arg7[%c0_18, %c0_19] : memref<1x128xf32, #tpu.memory_space<vmem>>, vector<1x128xf32>
    %24 = vector.broadcast %23 : vector<1x128xf32> to vector<16x128xf32>
    %25 = arith.mulf %1, %24 : vector<16x128xf32>
    %cst_20 = arith.constant dense<0.000000e+00> : vector<16xf32>
    %26 = vector.multi_reduction <add>, %25, %cst_20 [1] : vector<16x128xf32> to vector<16xf32>
    %27 = vector.shape_cast %26 : vector<16xf32> to vector<16x1xf32>
    %c0_21 = arith.constant 0 : index
    %c0_22 = arith.constant 0 : index
    %28 = vector.load %arg8[%c0_21, %c0_22] : memref<1x32xf32, #tpu.memory_space<vmem>>, vector<1x32xf32>
    %29 = vector.broadcast %28 : vector<1x32xf32> to vector<16x32xf32>
    %30 = arith.mulf %5, %29 : vector<16x32xf32>
    %cst_23 = arith.constant dense<0.000000e+00> : vector<16xf32>
    %31 = vector.multi_reduction <add>, %30, %cst_23 [1] : vector<16x32xf32> to vector<16xf32>
    %32 = vector.shape_cast %31 : vector<16xf32> to vector<16x1xf32>
    %33 = arith.addf %27, %32 : vector<16x1xf32>
    %c0_24 = arith.constant 0 : index
    %c1 = arith.constant 1 : index
    %34 = vector.load %arg9[%c0_24, %c1] : memref<1x2xf32, #tpu.memory_space<vmem>>, vector<1x1xf32>
    %35 = vector.extract %34[0, 0] : f32 from vector<1x1xf32>
    %36 = vector.broadcast %35 : f32 to vector<16x1xf32>
    %37 = arith.addf %33, %36 : vector<16x1xf32>
    %38 = tpu.concatenate %22, %37 in 1 : vector<16x1xf32>, vector<16x1xf32> -> vector<16x2xf32>
    %cst_25 = arith.constant 0.000000e+00 : f32
    %39 = vector.broadcast %cst_25 : f32 to vector<16x1xf32>
    %40 = arith.cmpf ogt, %7, %39 : vector<16x1xf32>
    %cst_26 = arith.constant -1.000000e+30 : f32
    %41 = vector.shape_cast %40 : vector<16x1xi1> to vector<16x1xi1>
    %42 = vector.broadcast %41 : vector<16x1xi1> to vector<16x2xi1>
    %43 = vector.broadcast %cst_26 : f32 to vector<16x2xf32>
    %44 = arith.select %42, %38, %43 : vector<16x2xi1>, vector<16x2xf32>
    %cst_27 = arith.constant dense<0xFF800000> : vector<2xf32>
    %45 = vector.multi_reduction <maximumf>, %44, %cst_27 [0] : vector<16x2xf32> to vector<2xf32>
    %46 = vector.shape_cast %45 : vector<2xf32> to vector<1x2xf32>
    %47 = vector.broadcast %46 : vector<1x2xf32> to vector<16x2xf32>
    %48 = arith.subf %44, %47 : vector<16x2xf32>
    %49 = math.exp %48 : vector<16x2xf32>
    %cst_28 = arith.constant dense<0.000000e+00> : vector<2xf32>
    %50 = vector.multi_reduction <add>, %49, %cst_28 [0] : vector<16x2xf32> to vector<2xf32>
    %51 = vector.shape_cast %50 : vector<2xf32> to vector<1x2xf32>
    %52 = math.log %51 : vector<1x2xf32>
    %53 = vector.broadcast %52 : vector<1x2xf32> to vector<16x2xf32>
    %54 = arith.subf %48, %53 : vector<16x2xf32>
    %c0_29 = arith.constant 0 : index
    %c0_30 = arith.constant 0 : index
    %c0_31 = arith.constant 0 : index
    %55 = vector.load %arg10[%c0_29, %c0_30, %c0_31] : memref<1x16x2xf32, #tpu.memory_space<vmem>>, vector<1x16x2xf32>
    %56 = vector.shape_cast %55 : vector<1x16x2xf32> to vector<16x2xf32>
    %57 = vector.shape_cast %54 : vector<16x2xf32> to vector<1x16x2xf32>
    tpu.vector_store %arg10[%c0_29, %c0_30, %c0_31], %57 {strides = array<i32>} : memref<1x16x2xf32, #tpu.memory_space<vmem>>, vector<1x16x2xf32>,
    return
  }
  func.func @transform_0(%arg0: i32) -> (i32, i32, i32) {
    %c0_i32 = arith.constant 0 : i32
    %c0_i32_0 = arith.constant 0 : i32
    %c0_i32_1 = arith.constant 0 : i32
    return %arg0, %c0_i32, %c0_i32_0 : i32, i32, i32
  }
  func.func @transform_1(%arg0: i32) -> (i32, i32, i32) {
    %c0_i32 = arith.constant 0 : i32
    %c0_i32_0 = arith.constant 0 : i32
    %c0_i32_1 = arith.constant 0 : i32
    return %arg0, %c0_i32, %c0_i32_0 : i32, i32, i32
  }
  func.func @transform_2(%arg0: i32) -> (i32, i32, i32) {
    %c0_i32 = arith.constant 0 : i32
    %c0_i32_0 = arith.constant 0 : i32
    %c0_i32_1 = arith.constant 0 : i32
    return %arg0, %c0_i32, %c0_i32_0 : i32, i32, i32
  }
  func.func @transform_3(%arg0: i32) -> (i32, i32, i32) {
    %c0_i32 = arith.constant 0 : i32
    %c0_i32_0 = arith.constant 0 : i32
    %c0_i32_1 = arith.constant 0 : i32
    return %arg0, %c0_i32, %c0_i32_0 : i32, i32, i32
  }
  func.func @transform_4(%arg0: i32) -> (i32, i32) {
    %c0_i32 = arith.constant 0 : i32
    %c0_i32_0 = arith.constant 0 : i32
    %c0_i32_1 = arith.constant 0 : i32
    return %c0_i32, %c0_i32_0 : i32, i32
  }
  func.func @transform_5(%arg0: i32) -> (i32, i32) {
    %c0_i32 = arith.constant 0 : i32
    %c0_i32_0 = arith.constant 0 : i32
    %c0_i32_1 = arith.constant 0 : i32
    return %c0_i32, %c0_i32_0 : i32, i32
  }
  func.func @transform_6(%arg0: i32) -> (i32, i32) {
    %c0_i32 = arith.constant 0 : i32
    %c0_i32_0 = arith.constant 0 : i32
    %c0_i32_1 = arith.constant 0 : i32
    return %c0_i32, %c0_i32_0 : i32, i32
  }
  func.func @transform_7(%arg0: i32) -> (i32, i32) {
    %c0_i32 = arith.constant 0 : i32
    %c0_i32_0 = arith.constant 0 : i32
    %c0_i32_1 = arith.constant 0 : i32
    return %c0_i32, %c0_i32_0 : i32, i32
  }
  func.func @transform_8(%arg0: i32) -> (i32, i32) {
    %c0_i32 = arith.constant 0 : i32
    %c0_i32_0 = arith.constant 0 : i32
    %c0_i32_1 = arith.constant 0 : i32
    return %c0_i32, %c0_i32_0 : i32, i32
  }
  func.func @transform_9(%arg0: i32) -> (i32, i32, i32) {
    %c0_i32 = arith.constant 0 : i32
    %c0_i32_0 = arith.constant 0 : i32
    %c0_i32_1 = arith.constant 0 : i32
    return %arg0, %c0_i32, %c0_i32_0 : i32, i32, i32
  }
}

</mosaic_0001>

<bundles_post_ra>
// kernel: _lambda_.15
= control target key start
LH: loop header
LB: loop body
LE: loop exit
PB: predicated region body
PF: predicated region fallthrough
CT: control target
= control target key end

     0   :  { %vm15_vm0 = vcmask 254976   ;;  %v211_v0 = vmov 0.0   ;;  %s252_s17 = smov 0   ;;  %s277_s0 = inlined_call_operand.vmem [shape: f32[8,2,128], index: 0, kind: input, shape index: {}]   ;;  %s278_s1 = inlined_call_operand.vmem [shape: f32[32,128], index: 1, kind: input, shape index: {}]   ;;  %s279_s2 = inlined_call_operand.vmem [shape: f32[8,2,32], index: 2, kind: output, shape index: {}]  }
   0x1   :  { %16 = vst.msk [vmem:[#allocation2] sm:$0x3] %vm15_vm0, %v211_v0  ;;  %17 = vst.msk [vmem:[#allocation3] sm:$0x3] %vm15_vm0, %v211_v0  ;;  %v237_v1 = vld [vmem:[%s278_s1] sm:$0xff]  ;;  %v242_v2 = vld [vmem:[%s278_s1 + $0x8] sm:$0xff] }
   0x2   :  { %v247_v3 = vld [vmem:[%s278_s1 + $0x10] sm:$0xff]  ;;  %v21_v4 = vld [vmem:[%s278_s1 + $0x18] sm:$0xff] }
   0x3 LB: > { %v212_v5 = vmov 0.0   ;;  %vm213_vm1 = vmmov 0   ;;  %vm32_vm2 = vcmask 261120   ;;  %s162_s1 = sshll.u32 %s209_s17, 1  ;;  %s214_s21 = smov 64   ;;  %s209_s17 = sphi %s252_s17, %s27_s17  }
   0x4   : > { %170 = vmatprep.subr.mxu0 %v212_v5  ;;  %178 = vmatprep.mubr.msk.f32.mxu0 %vm213_vm1, %v212_v5  ;;  %s29_s20 = scalar_lea.vmem %s277_s0, %s162_s1  ;;  %s215_s22 = smov 32  }
   0x5   : > { %171 = vmatpush3.msra.mxu0 %v21_v4  ;;  %v30_v7 = vld [vmem:[%s29_s20] sm:$0x3]  ;;  %s216_s23 = smov 96   ;;  %s140_s26 = scalar_lea.vmem %s279_s2, %s162_s1 }
   0x6   : > { %172 = vmatprep.subr.mxu0 %v212_v5  ;;  %s27_s17 = sadd.s32 1, %s209_s17  }
   0x7   : > { %173 = vmatpush3.msra.mxu0 %v247_v3  ;;  %p24_p0 = scmp.ge.s32.totalorder %s27_s17, 8  }
   0x8   : > { %174 = vmatprep.subr.mxu0 %v212_v5  ;;  %v31_v6 = vld [vmem:[#allocation2] sm:$0x3]  ;;  %v114_v12 = vld [vmem:[#allocation3] sm:$0x3] }
   0x9   : > { %175 = vmatpush3.msra.mxu0 %v242_v2 }
   0xa   : > { %176 = vmatprep.subr.mxu0 %v212_v5 }
   0xb   : > { %177 = vmatpush3.msra.mxu0 %v237_v1 }
   0xc   : > { %179 = vmatmul.mubr.msk.f32.vlgmr.msra.gmra.mxu0 %vm32_vm2, %v31_v6 }
  0xcc   : > { %v102_v8 = vpop.f32.mrf.mxu0 }
  0xcd   : > { %v106_v9 = vadd.f32 %v102_v8, %v30_v7 }
  0xce   : > { %v180_v10 = vpop.f32.mrf.mxu0 }
  0xcf   : > { %195 = vtanh.f32 %v106_v9  ;;  %v164_v13 = vmul.f32 -1.442695, %v106_v9 }
  0xd1   : > { %197 = vpow2.f32 %v164_v13 }
  0xdc   : > { %v196_v11 = vpop.eup %195 }
  0xdd   : > { %121 = vrot.lane.b32.xlu0 %v196_v11, %s214_s21 }
  0xde   : > { %v198_v14 = vpop.eup %197 }
  0xdf   : > { %v110_v15 = vadd.f32 1.0, %v198_v14 }
  0xe1   : > { %116 = vrot.lane.b32.xlu0 %v114_v12, %s215_s22  ;;  %199 = vrcp.f32 %v110_v15 }
  0xee   : > { %v200_v16 = vpop.eup %199 }
 0x14f   : > { %v122_v17 = vpop.permute.xlu0 %121 }
 0x150   : > { %v124_v18 = vmul.f32 %v200_v16, %v122_v17 }
 0x152   : > { %126 = vrot.lane.b32.xlu1 %v124_v18, %s215_s22 }
 0x153   : > { %v117_v19 = vpop.permute.xlu0 %116 }
 0x154   : > { %v119_v20 = vmul.f32 %v200_v16, %v117_v19 }
 0x1c4   : > { %v127_v21 = vpop.permute.xlu1 %126 }
 0x1c5   : > { %v129_v22 = vadd.f32 %v127_v21, %v119_v20 }
 0x1c7   : > { %201 = vtanh.f32 %v129_v22 }
 0x1d4   : > { %v202_v23 = vpop.eup %201 }
 0x1d5   : > { %132 = vrot.lane.b32.xlu1 %v202_v23, %s214_s21 }
 0x1d9   : > { %145 = vrot.lane.b32.xlu1 %v129_v22, %s216_s23 }
 0x247   : > { %v133_v24 = vpop.permute.xlu1 %132 }
 0x248   : > { %v135_v25 = vmul.f32 %v200_v16, %v133_v24 }
 0x24a   : > { %137 = vrot.lane.b32.xlu0 %v135_v25, %s215_s22 }
 0x24b   : > { %v146_v26 = vpop.permute.xlu1 %145 }
 0x24c   : > { %148 = vst.msk [vmem:[#allocation3] sm:$0x3] %vm15_vm0, %v146_v26 }
 0x2b9   :  { %26 = sbr.rel (!%p24_p0) target bundleno = 3 (0x3), region = 41 }
 0x2bc   : > { %v138_v27 = vpop.permute.xlu0 %137 }
 0x2bd   : > { %142 = vst.msk [vmem:[%s140_s26] sm:$0x3] %vm15_vm0, %v138_v27  ;;  %143 = vst.msk [vmem:[#allocation2] sm:$0x3] %vm15_vm0, %v138_v27 }

// kernel: _lambda_.13
= control target key start
LH: loop header
LB: loop body
LE: loop exit
PB: predicated region body
PF: predicated region fallthrough
CT: control target
= control target key end

     0   :  { %vm65_vm0 = vcmask 1040384   ;;  %v177_v0 = vmov 0.0   ;;  %vm178_vm1 = vmmov 0   ;;  %vm55_vm2 = vcmask 146432   ;;  %s238_s1 = inlined_call_operand.vmem [shape: bf16[18,128], index: 1, kind: input, shape index: {}]   ;;  %s239_s0 = inlined_call_operand.vmem [shape: bf16[48,18], index: 0, kind: input, shape index: {}]   ;;  %s240_s2 = inlined_call_operand.vmem [shape: f32[1,128], index: 2, kind: input, shape index: {}]   ;;  %s241_s3 = inlined_call_operand.vmem [shape: f32[48,128], index: 3, kind: output, shape index: {}]  }
   0x1   :  { %166 = vmatprep.subr.bf16.mxu1 %v177_v0  ;;  %v172_v1 = vld [vmem:[%s238_s1 + $0x8] ss:$0 sps:$4 sm:$0x11]   ;;  %150 = vmatprep.subr.bf16.mxu0 %v177_v0  ;;  %v173_v3 = vld [vmem:[%s238_s1] sm:$0xff]   ;;  %v176_v6 = vld [vmem:[%s239_s0 + $0x10] sm:$0xff]  }
   0x2   :  { %158 = vmatprep.mubr.msk.bf16.mxu1 %vm178_vm1, %v177_v0  ;;  %154 = vmatprep.mubr.msk.bf16.mxu0 %vm178_vm1, %v177_v0  ;;  %v67_v2 = vsel %vm65_vm0, %v172_v1, 0  ;;  %v174_v4 = vld [vmem:[%s239_s0 + $0x8] sm:$0xff]   ;;  %v175_v5 = vld [vmem:[%s239_s0] sm:$0xff]  }
   0x3   :  { %168 = vmatpush3.bf16.msra.mxu1 %v67_v2  ;;  %151 = vmatpush3.bf16.msra.mxu0 %v67_v2  ;;  %v136_v7 = vld [vmem:[%s240_s2] ss:$0 sm:$0xff] }
   0x4   :  { %167 = vmatprep.subr.bf16.mxu1 %v177_v0  ;;  %152 = vmatprep.subr.bf16.mxu0 %v177_v0 }
   0x7   :  { %169 = vmatpush3.bf16.msra.mxu1 %v173_v3  ;;  %153 = vmatpush3.bf16.msra.mxu0 %v173_v3 }
   0xa   :  { %159 = vmatmul.mubr.msk.bf16.vlgmr.msra.gmra.mxu1 %vm55_vm2, %v174_v4  ;;  %155 = vmatmul.mubr.msk.bf16.vlgmr.msra.gmra.mxu0 %vm55_vm2, %v175_v5 }
   0xb   :  { %162 = vmatprep.mubr.msk.bf16.mxu1 %vm178_vm1, %v177_v0 }
  0x12   :  { %163 = vmatmul.mubr.msk.bf16.gmra.mxu1 %vm55_vm2, %v176_v6 }
  0xca   :  { %v111_v8 = vpop.f32.mrf.mxu1  ;;  %v103_v9 = vpop.f32.mrf.mxu0 }
  0xcb   :  { %v112_v10 = vadd.f32 %v136_v7, %v111_v8  ;;  %v104_v11 = vadd.f32 %v136_v7, %v103_v9 }
  0xcc   :  { %v160_v12 = vpop.f32.mrf.mxu1  ;;  %v156_v13 = vpop.f32.mrf.mxu0 }
  0xcd   :  { %128 = vst [vmem:[%s241_s3 + $0x10] sm:$0xff] %v112_v10  ;;  %126 = vst [vmem:[%s241_s3] sm:$0xff] %v104_v11 }
  0xce   :  { %v114_v14 = vpop.f32.mrf.mxu1  ;;  %v106_v15 = vpop.f32.mrf.mxu0 }
  0xcf   :  { %v115_v16 = vadd.f32 %v136_v7, %v114_v14  ;;  %v107_v17 = vadd.f32 %v136_v7, %v106_v15 }
  0xd0   :  { %v161_v18 = vpop.f32.mrf.mxu1  ;;  %v157_v19 = vpop.f32.mrf.mxu0 }
  0xd1   :  { %129 = vst [vmem:[%s241_s3 + $0x18] sm:$0xff] %v115_v16  ;;  %127 = vst [vmem:[%s241_s3 + $0x8] sm:$0xff] %v107_v17 }
  0xd2   :  { %v119_v20 = vpop.f32.mrf.mxu1 }
  0xd3   :  { %v120_v21 = vadd.f32 %v136_v7, %v119_v20 }
  0xd4   :  { %v164_v22 = vpop.f32.mrf.mxu1 }
  0xd5   :  { %130 = vst [vmem:[%s241_s3 + $0x20] sm:$0xff] %v120_v21 }
  0xd6   :  { %v122_v23 = vpop.f32.mrf.mxu1 }
  0xd7   :  { %v123_v24 = vadd.f32 %v136_v7, %v122_v23 }
  0xd8   :  { %v165_v25 = vpop.f32.mrf.mxu1 }
  0xd9   :  { %131 = vst [vmem:[%s241_s3 + $0x28] sm:$0xff] %v123_v24 }

// kernel: _lambda_.14
= control target key start
LH: loop header
LB: loop body
LE: loop exit
PB: predicated region body
PF: predicated region fallthrough
CT: control target
= control target key end

     0   :  { %s448_s9 = smov 0   ;;  %s508_s0 = inlined_call_operand.vmem [shape: f32[16,2,128], index: 0, kind: input, shape index: {}]   ;;  %s509_s1 = inlined_call_operand.vmem [shape: f32[32,128], index: 1, kind: input, shape index: {}]   ;;  %s510_s2 = inlined_call_operand.vmem [shape: f32[16,2,32], index: 2, kind: output, shape index: {}]  }
   0x1 LB: > { %s350_s10 = sadd.s32 4294967295, %s421_s9   ;;  %p354_p0 = scmp.ge.s32.totalorder %s421_s9, 1  ;;  %s421_s9 = sphi %s448_s9, %s12_s9  }
   0x2   : > { %p113_p1 = scmp.lt.s32.totalorder %s421_s9, 3 }
   0x4   : > { %p114_p2 = pnand %p354_p0, %p113_p1 }
   0x5   : > { %s355_s11 = sshll.u32 (!%p114_p2), %s350_s10, 3  ;;  %p359_p4 = scmp.ne.s32.totalorder (!%p114_p2), %s350_s10, 0 }
   0x6   : > { %117 = sbr.rel (%p114_p2) target bundleno = 719 (0x2cf), region = 28  ;;  %p136_p3 = scmp.lt.s32.totalorder (!%p114_p2), %s355_s11, 15 }
   0xb   : > { %s512_s11 = smov (!%p136_p3, %s355_s11), 15  ;;  %150 = sbr.rel (%p359_p4) target bundleno = 18 (0x12), region = 32 }
   0xc   : > { %s356_s12 = sshll.u32 %s512_s11, 1 }
   0xd   : > { %s459_s15 = scalar_lea.vmem %s508_s0, %s356_s12  ;;  %s464_s18 = scalar_lea.vmem %s510_s2, %s356_s12 }
  0x10   : > { %vm151_vm0 = vcmask 254976   ;;  %v427_v0 = vmov 0.0  }
  0x11   : > { %152 = vst.msk [vmem:[#allocation2] sm:$0x3] %vm151_vm0, %v427_v0  ;;  %153 = vst.msk [vmem:[#allocation3] sm:$0x3] %vm151_vm0, %v427_v0 }
  0x12 PF: > { %v469_v1 = vld [vmem:[%s509_s1] sm:$0xff]  ;;  %v474_v2 = vld [vmem:[%s509_s1 + $0x8] sm:$0xff]  ;;  %v479_v3 = vld [vmem:[%s509_s1 + $0x10] sm:$0xff]  ;;  %s486_s27 = smov 0  }
  0x13   : > { %v484_v4 = vld [vmem:[%s509_s1 + $0x18] sm:$0xff] }
  0x14 LB: >> { %v428_v5 = vmov 0.0   ;;  %vm429_vm1 = vmmov 0   ;;  %vm168_vm2 = vcmask 261120   ;;  %s360_s28 = sshll.u32 %s425_s27, 1  ;;  %s430_s30 = smov 64   ;;  %vm277_vm3 = vcmask 254976   ;;  %s425_s27 = sphi %s486_s27, %s163_s27  }
  0x15   : >> { %370 = vmatprep.subr.mxu0 %v428_v5  ;;  %378 = vmatprep.mubr.msk.f32.mxu0 %vm429_vm1, %v428_v5  ;;  %s165_s29 = scalar_lea.vmem %s459_s15, %s360_s28  ;;  %s431_s3 = smov 32  }
  0x16   : >> { %371 = vmatpush3.msra.mxu0 %v484_v4  ;;  %v166_v7 = vld [vmem:[%s165_s29] sm:$0x3]  ;;  %s432_s4 = smov 96   ;;  %s276_s5 = scalar_lea.vmem %s464_s18, %s360_s28 }
  0x17   : >> { %372 = vmatprep.subr.mxu0 %v428_v5  ;;  %s163_s27 = sadd.s32 1, %s425_s27  }
  0x18   : >> { %373 = vmatpush3.msra.mxu0 %v479_v3  ;;  %v167_v6 = vld [vmem:[#allocation2] sm:$0x3]  ;;  %v250_v12 = vld [vmem:[#allocation3] sm:$0x3]  ;;  %p160_p5 = scmp.ge.s32.totalorder %s163_s27, 8  }
  0x19   : >> { %374 = vmatprep.subr.mxu0 %v428_v5 }
  0x1a   : >> { %375 = vmatpush3.msra.mxu0 %v474_v2 }
  0x1b   : >> { %376 = vmatprep.subr.mxu0 %v428_v5 }
  0x1c   : >> { %377 = vmatpush3.msra.mxu0 %v469_v1 }
  0x1d   : >> { %379 = vmatmul.mubr.msk.f32.vlgmr.msra.gmra.mxu0 %vm168_vm2, %v167_v6 }
  0xdd   : >> { %v238_v8 = vpop.f32.mrf.mxu0 }
  0xde   : >> { %v242_v9 = vadd.f32 %v238_v8, %v166_v7 }
  0xdf   : >> { %v380_v10 = vpop.f32.mrf.mxu0 }
  0xe0   : >> { %403 = vtanh.f32 %v242_v9  ;;  %v362_v13 = vmul.f32 -1.442695, %v242_v9 }
  0xe2   : >> { %405 = vpow2.f32 %v362_v13 }
  0xed   : >> { %v404_v11 = vpop.eup %403 }
  0xee   : >> { %257 = vrot.lane.b32.xlu0 %v404_v11, %s430_s30 }
  0xef   : >> { %v406_v14 = vpop.eup %405 }
  0xf0   : >> { %v246_v15 = vadd.f32 1.0, %v406_v14 }
  0xf2   : >> { %252 = vrot.lane.b32.xlu0 %v250_v12, %s431_s3  ;;  %407 = vrcp.f32 %v246_v15 }
  0xff   : >> { %v408_v16 = vpop.eup %407 }
 0x160   : >> { %v258_v17 = vpop.permute.xlu0 %257 }
 0x161   : >> { %v260_v18 = vmul.f32 %v408_v16, %v258_v17 }
 0x163   : >> { %262 = vrot.lane.b32.xlu1 %v260_v18, %s431_s3 }
 0x164   : >> { %v253_v19 = vpop.permute.xlu0 %252 }
 0x165   : >> { %v255_v20 = vmul.f32 %v408_v16, %v253_v19 }
 0x1d5   : >> { %v263_v21 = vpop.permute.xlu1 %262 }
 0x1d6   : >> { %v265_v22 = vadd.f32 %v263_v21, %v255_v20 }
 0x1d8   : >> { %409 = vtanh.f32 %v265_v22 }
 0x1e5   : >> { %v410_v23 = vpop.eup %409 }
 0x1e6   : >> { %268 = vrot.lane.b32.xlu1 %v410_v23, %s430_s30 }
 0x1ea   : >> { %281 = vrot.lane.b32.xlu1 %v265_v22, %s432_s4 }
 0x258   : >> { %v269_v24 = vpop.permute.xlu1 %268 }
 0x259   : >> { %v271_v25 = vmul.f32 %v408_v16, %v269_v24 }
 0x25b   : >> { %273 = vrot.lane.b32.xlu0 %v271_v25, %s431_s3 }
 0x25c   : >> { %v282_v26 = vpop.permute.xlu1 %281 }
 0x25d   : >> { %284 = vst.msk [vmem:[#allocation3] sm:$0x3] %vm277_vm3, %v282_v26 }
 0x2ca   : > { %162 = sbr.rel (!%p160_p5) target bundleno = 20 (0x14), region = 71 }
 0x2cd   : >> { %v274_v27 = vpop.permute.xlu0 %273 }
 0x2ce   : >> { %278 = vst.msk [vmem:[%s276_s5] sm:$0x3] %vm277_vm3, %v274_v27  ;;  %279 = vst.msk [vmem:[#allocation2] sm:$0x3] %vm277_vm3, %v274_v27 }
 0x2cf PF: > { %s12_s9 = sadd.s32 1, %s421_s9  }
 0x2d0   : > { %p9_p6 = scmp.ge.s32.totalorder %s12_s9, 4  }
 0x2d2   :  { %11 = sbr.rel (!%p9_p6) target bundleno = 1 (0x1), region = 82 }

// kernel: _lambda_.17
= control target key start
LH: loop header
LB: loop body
LE: loop exit
PB: predicated region body
PF: predicated region fallthrough
CT: control target
= control target key end

     0   :  { %s275_s1 = inlined_call_operand.vmem [shape: bf16[128,128], index: 1, kind: input, shape index: {}]   ;;  %s276_s0 = inlined_call_operand.vmem [shape: bf16[32,128], index: 0, kind: input, shape index: {}]   ;;  %s277_s2 = inlined_call_operand.vmem [shape: f32[1,128], index: 2, kind: input, shape index: {}]   ;;  %s278_s3 = inlined_call_operand.vmem [shape: f32[32,128], index: 3, kind: output, shape index: {}]  }
   0x1   :  { %v200_v0 = vld [vmem:[%s275_s1 + $0x38] sm:$0xff]   ;;  %v201_v1 = vld [vmem:[%s275_s1 + $0x30] sm:$0xff]   ;;  %v202_v2 = vld [vmem:[%s275_s1 + $0x28] sm:$0xff]  }
   0x2   :  { %180 = vmatprep.subr.bf16.mxu0 %v200_v0  ;;  %v203_v3 = vld [vmem:[%s275_s1 + $0x20] sm:$0xff]   ;;  %v204_v5 = vld [vmem:[%s275_s1 + $0x18] sm:$0xff]   ;;  %v205_v6 = vld [vmem:[%s275_s1 + $0x10] sm:$0xff]  }
   0x3   :  { %181 = vmatpush3.bf16.msra.mxu0 %v200_v0  ;;  %v208_v4 = vld [vmem:[%s276_s0] sm:$0xff]   ;;  %v206_v7 = vld [vmem:[%s275_s1 + $0x8] sm:$0xff]  }
   0x4   :  { %182 = vmatprep.subr.bf16.mxu0 %v201_v1  ;;  %196 = vmatprep.mubr.bf16.mxu0 %v208_v4  ;;  %v207_v8 = vld [vmem:[%s275_s1] sm:$0xff]   ;;  %v209_v9 = vld [vmem:[%s276_s0 + $0x8] sm:$0xff]  }
   0x5   :  { %v159_v10 = vld [vmem:[%s277_s2] ss:$0 sm:$0xff] }
   0x7   :  { %183 = vmatpush3.bf16.msra.mxu0 %v201_v1 }
   0x8   :  { %184 = vmatprep.subr.bf16.mxu0 %v202_v2 }
   0xb   :  { %185 = vmatpush3.bf16.msra.mxu0 %v202_v2 }
   0xc   :  { %186 = vmatprep.subr.bf16.mxu0 %v203_v3 }
   0xf   :  { %187 = vmatpush3.bf16.msra.mxu0 %v203_v3 }
  0x10   :  { %188 = vmatprep.subr.bf16.mxu0 %v204_v5 }
  0x13   :  { %189 = vmatpush3.bf16.msra.mxu0 %v204_v5 }
  0x14   :  { %190 = vmatprep.subr.bf16.mxu0 %v205_v6 }
  0x17   :  { %191 = vmatpush3.bf16.msra.mxu0 %v205_v6 }
  0x18   :  { %192 = vmatprep.subr.bf16.mxu0 %v206_v7 }
  0x1b   :  { %193 = vmatpush3.bf16.msra.mxu0 %v206_v7 }
  0x1c   :  { %194 = vmatprep.subr.bf16.mxu0 %v207_v8 }
  0x1f   :  { %195 = vmatpush3.bf16.msra.mxu0 %v207_v8 }
  0x22   :  { %197 = vmatmul.mubr.bf16.vlgmr.msra.gmra.mxu0 %v209_v9 }
  0xe2   :  { %v198_v11 = vpop.f32.mrf.mxu0 }
  0xe3   :  { %v145_v12 = vadd.f32 %v198_v11, %v159_v10 }
  0xe4   :  { %v136_v13 = vpop.f32.mrf.mxu0 }
  0xe5   :  { %153 = vst [vmem:[%s278_s3 + $0x10] sm:$0xff] %v145_v12  ;;  %v137_v14 = vadd.f32 %v159_v10, %v136_v13 }
  0xe6   :  { %v199_v15 = vpop.f32.mrf.mxu0 }
  0xe7   :  { %151 = vst [vmem:[%s278_s3] sm:$0xff] %v137_v14  ;;  %v148_v16 = vadd.f32 %v199_v15, %v159_v10 }
  0xe8   :  { %v139_v17 = vpop.f32.mrf.mxu0 }
  0xe9   :  { %154 = vst [vmem:[%s278_s3 + $0x18] sm:$0xff] %v148_v16  ;;  %v140_v18 = vadd.f32 %v159_v10, %v139_v17 }
  0xeb   :  { %152 = vst [vmem:[%s278_s3 + $0x8] sm:$0xff] %v140_v18 }

// kernel: _lambda_.16
= control target key start
LH: loop header
LB: loop body
LE: loop exit
PB: predicated region body
PF: predicated region fallthrough
CT: control target
= control target key end

     0   :  { %s1338_s29 = smov 0   ;;  %s1487_s0 = inlined_call_operand.vmem [shape: f32[2,16,32], index: 0, kind: input, shape index: {}]   ;;  %s1488_s1 = inlined_call_operand.vmem [shape: f32[2,8,32], index: 1, kind: input, shape index: {}]   ;;  %s1489_s2 = inlined_call_operand.vmem [shape: f32[2,16,1], index: 2, kind: input, shape index: {}]   ;;  %s1490_s3 = inlined_call_operand.vmem [shape: f32[2,1,16], index: 3, kind: input, shape index: {}]   ;;  %s1491_s4 = inlined_call_operand.vmem [shape: f32[2,1,8], index: 4, kind: input, shape index: {}]   ;;  %s1492_s5 = inlined_call_operand.vmem [shape: f32[1,32], index: 5, kind: input, shape index: {}]   ;;  %s1493_s6 = inlined_call_operand.vmem [shape: f32[1,32], index: 6, kind: input, shape index: {}]   ;;  %s1494_s7 = inlined_call_operand.vmem [shape: f32[1,32], index: 7, kind: input, shape index: {}]   ;;  %s1495_s8 = inlined_call_operand.<no memory space> [shape: f32[1,1], index: 8, kind: input, shape index: {}, may-alias: {8,12}]   ;;  %s1496_s9 = inlined_call_operand.vmem [shape: f32[1,128], index: 9, kind: input, shape index: {}]   ;;  %s1497_s10 = inlined_call_operand.vmem [shape: f32[1,128], index: 10, kind: input, shape index: {}]   ;;  %s1498_s11 = inlined_call_operand.vmem [shape: f32[1,128], index: 11, kind: input, shape index: {}]   ;;  %s1499_s13 = inlined_call_operand.vmem [shape: f32[2,16,128], index: 13, kind: output, shape index: {}]   ;;  %s1500_s12 = inlined_call_operand.<no memory space> [shape: f32[1,1], index: 12, kind: input, shape index: {}, may-alias: {8,12}]  }
   0x1   :  { %v18_v0 = vstv %s1495_s8  ;;  %v20_v1 = vstv %s1500_s12 }
   0x2   :  { %19 = vst [vmem:[#allocation2] sm:$0x1] %v18_v0  ;;  %21 = vst [vmem:[#allocation3] sm:$0x1] %v20_v1 }
   0x3 LB: > { %s1130_s30 = sadd.s32 4294967295, %s1254_s29   ;;  %p1134_p0 = scmp.ge.s32.totalorder %s1254_s29, 1  ;;  %s1254_s29 = sphi %s1338_s29, %s27_s29  }
   0x4   : > { %p426_p1 = scmp.lt.s32.totalorder %s1254_s29, 3 }
   0x6   : > { %p427_p2 = pnand %p1134_p0, %p426_p1 }
   0x7   : > { %p485_p3 = scmp.lt.s32.totalorder (!%p427_p2), %s1130_s30, 1  ;;  %s1259_s17 = smov (!%p427_p2), 32  }
   0x8   : > { %430 = sbr.rel (%p427_p2) target bundleno = 1787 (0x6fb), region = 72  ;;  %s1260_s18 = smov (!%p427_p2), 64  }
   0x9   : > { %s1261_s19 = smov (!%p427_p2), 96  }
   0xd   : > { %v1256_v2 = vmov 0.0   ;;  %vm1257_vm0 = vmmov 0   ;;  %s1502_s30 = smov (!%p485_p3, %s1130_s30), 1  ;;  %v1258_v3 = vmov 0   ;;  %v555_v4 = vld [vmem:[#allocation2] sm:$0x1]  ;;  %v611_v24 = vlaneseq }
   0xe   : > { %1170 = vmatprep.subr.bf16.mxu0 %v1256_v2  ;;  %1172 = vmatprep.mubr.msk.bf16.mxu0 %vm1257_vm0, %v1256_v2  ;;  %1206 = vpush %v555_v4  ;;  %s1357_s8 = sshll.u32 %s1502_s30, 4  ;;  %s1137_s12 = sshll.u32 %s1502_s30, 3  ;;  %v1143_v5 = vld [vmem:[%s1494_s7] ss:$0 sm:$0xff]  ;;  %vm529_vm1 = vcmask 261120   ;;  %vm618_vm5 = vcmask 64512  }
   0xf   : > { %1224 = vset.pattern.permute.xlu0 %v1258_v3  ;;  %1225 = vset.pattern.permute.xlu1 %v1258_v3  ;;  %v1142_v6 = vld [vmem:[%s1492_s5] ss:$0 sm:$0xff]  ;;  %s493_s20 = scalar_lea.vmem %s1488_s1, %s1137_s12  ;;  %s489_s23 = scalar_lea.vmem %s1487_s0, %s1357_s8  ;;  %v1406_v26 = vshrl.u32 %v611_v24, 7  ;;  %vm686_vm9 = vcmask 1043456   ;;  %vm747_vm10 = vcmask 130048   ;;  %vm866_vm11 = vcmask 523264  }
  0x10   : > { %1176 = vmatprep.subr.bf16.mxu1 %v1256_v2  ;;  %1178 = vmatprep.mubr.msk.bf16.mxu1 %vm1257_vm0, %v1256_v2  ;;  %v1144_v7 = vld [vmem:[%s1493_s6] ss:$0 sm:$0xff]  ;;  %v1378_v10 = vld [vmem:[%s489_s23 + $0x8] sm:$0xff]  ;;  %s1398_s28 = scalar_lea.vmem %s1489_s2, %s1357_s8  ;;  %s504_s15 = scalar_lea.vmem %s1491_s4, %s1502_s30  ;;  %vm869_vm12 = vcmask 785408  }
  0x11   : > { %v513_v8 = vld [vmem:[%s493_s20] sm:$0xff]  ;;  %v544_v13 = vmul.f32 %v1143_v5, %v1378_v10  ;;  %v528_v15 = vmul.f32 %v1142_v6, %v1378_v10  ;;  %v613_v27 = vsub.s32 0, %v1406_v26  ;;  %v515_v45 = vld [vmem:[%s1398_s28 + $0x8] sm:$0xff] }
  0x12   : > { %v1376_v9 = vld [vmem:[%s489_s23] sm:$0xff]  ;;  %v1380_v11 = vpack.c.bf16 %v513_v8, %v513_v8  ;;  %vm642_vm6 = vcmp.gt.f32.partialorder %v515_v45, 0.0 }
  0x13   : > { %v543_v12 = vmul.f32 %v1143_v5, %v1376_v9  ;;  %v527_v14 = vmul.f32 %v1142_v6, %v1376_v9  ;;  %v553_v18 = vadd.f32 %v1144_v7, %v544_v13  ;;  %v533_v20 = vsel %vm529_vm1, %v528_v15, 0.0  ;;  %v514_v22 = vld [vmem:[%s1398_s28] sm:$0xff]  ;;  %s501_s28 = scalar_lea.vmem %s1490_s3, %s1502_s30 }
  0x14   : > { %v564_v16 = vsel %vm529_vm1, %v1380_v11, 0  ;;  %vm641_vm2 = vcmp.gt.f32.partialorder %v514_v22, 0.0  ;;  %v517_v25 = vld [vmem:[%s504_s15] sm:$0x1]  ;;  %v644_v46 = vsel %vm642_vm6, 1, %v1258_v3  ;;  %v687_v15 = vsel %vm686_vm9, %v1380_v11, 0  ;;  %s509_s15 = scalar_lea.vmem %s1499_s13, %s1357_s8 }
  0x15   : > { %v552_v17 = vadd.f32 %v1144_v7, %v543_v12  ;;  %v530_v19 = vsel %vm529_vm1, %v527_v14, 0.0  ;;  %1171 = vmatpush3.bf16.xpose.msra.mxu0 %v564_v16  ;;  %v643_v23 = vsel %vm641_vm2, 1, %v1258_v3  ;;  %vm609_vm3 = vcmp.gt.f32.partialorder %v517_v25, 0.0  ;;  %1177 = vmatpush3.bf16.msra.mxu1 %v687_v15 }
  0x16   : > { %531 = vadd.xlane.f32.xlu0 %v530_v19  ;;  %1188 = vmatprep.subr.bf16.mxu0 %v1256_v2  ;;  %v610_v28 = vsel %vm609_vm3, 1, %v1258_v3 }
  0x17   : > { %v554_v21 = vpack.c.bf16 %v553_v18, %v552_v17  ;;  %v614_v31 = vrot.slane %v610_v28, %v613_v27  ;;  %1182 = vmatprep.subr.bf16.mxu1 %v1256_v2 }
  0x19   : > { %vm615_vm4 = vcmp.eq.s32.totalorder %v614_v31, 1 }
  0x1a   : > { %534 = vadd.xlane.f32.xlu0 %v533_v20 }
  0x1c   : > { %1173 = vmatmul.mubr.msk.bf16.vlgmr.msra.gmra.mxu0 %vm529_vm1, %v554_v21 }
  0x1d   : > { %1190 = vmatprep.mubr.msk.bf16.mxu0 %vm1257_vm0, %v1256_v2 }
  0x30   : > { %646 = vperm.xlu0 %1224, %v643_v23  }
  0x3f   : > { %s1207_s16 = spop %1206 }
  0x40   : > { %v557_v30 = vstv %s1207_s16 }
  0x9f   : > { %v532_v29 = vpop.xlane.xlu0 %531 }
  0xa0   : > { %v558_v32 = vadd.f32 %v557_v30, %v532_v29 }
  0xa3   : > { %v535_v33 = vpop.xlane.xlu0 %534 }
  0xa4   : > { %v559_v37 = vadd.f32 %v557_v30, %v535_v33 }
  0xab   : > { %v647_v49 = vpop.permute.xlu0 %646 }
  0xac   : > { %vm651_vm7 = vcmp.eq.s32.totalorder %v647_v49, 1 }
  0xdc   : > { %v600_v34 = vpop.f32.mrf.mxu0 }
  0xdd   : > { %v607_v35 = vadd.f32 %v600_v34, %v558_v32 }
  0xde   : > { %v1174_v36 = vpop.f32.mrf.mxu0 }
  0xdf   : > { %v616_v38 = vsel %vm615_vm4, %v607_v35, -1e+30  ;;  %v653_v54 = vsel %vm651_vm7, %v607_v35, -1e+30 }
  0xe0   : > { %v603_v39 = vpop.f32.mrf.mxu0  ;;  %v619_v40 = vsel %vm618_vm5, %v616_v38, -inf  ;;  %v655_v57 = vsel %vm618_vm5, %v653_v54, -inf }
  0xe1   : > { %v608_v41 = vadd.f32 %v603_v39, %v559_v37  ;;  %620 = vmax.xlane.f32.xlu1 %v619_v40 }
  0xe2   : > { %v1175_v42 = vpop.f32.mrf.mxu0 }
  0xe3   : > { %v617_v43 = vsel %vm615_vm4, %v608_v41, -1e+30 }
  0xe4   : > { %v622_v44 = vsel %vm618_vm5, %v617_v43, -inf }
  0xe5   : > { %623 = vmax.xlane.f32.xlu1 %v622_v44 }
  0xf6   : > { %649 = vperm.xlu1 %1225, %v644_v46  }
 0x16a   : > { %v621_v47 = vpop.xlane.xlu1 %620 }
 0x16b   : > { %v625_v48 = vsub.f32 %v616_v38, %v621_v47  ;;  %v518_v38 = vpack.c.bf16 %v1378_v10, %v1376_v9 }
 0x16d   : > { %v627_v50 = vmul.f32 1.442695, %v625_v48 }
 0x16e   : > { %v624_v51 = vpop.xlane.xlu1 %623 }
 0x16f   : > { %1226 = vpow2.f32 %v627_v50  ;;  %v626_v52 = vsub.f32 %v617_v43, %v624_v51 }
 0x171   : > { %v629_v53 = vmul.f32 1.442695, %v626_v52 }
 0x172   : > { %v650_v55 = vpop.permute.xlu1 %649 }
 0x173   : > { %1228 = vpow2.f32 %v629_v53  ;;  %vm652_vm8 = vcmp.eq.s32.totalorder %v650_v55, 1 }
 0x174   : > { %v654_v56 = vsel %vm652_vm8, %v608_v41, -1e+30 }
 0x175   : > { %v656_v58 = vsel %vm618_vm5, %v654_v56, -inf }
 0x176   : > { %v657_v59 = vmax.f32 %v655_v57, %v656_v58  ;;  %v905_v57 = vld [vmem:[#allocation3] sm:$0x1] }
 0x177   : > { %1208 = vpush %v905_v57 }
 0x178   : > { %v658_v60 = vrot.slane %v657_v59, 4 }
 0x17a   : > { %v659_v61 = vmax.f32 %v657_v59, %v658_v60 }
 0x17c   : > { %v1227_v62 = vpop.eup %1226  ;;  %v660_v63 = vrot.slane %v659_v61, 2 }
 0x17d   : > { %v631_v0 = vsel %vm618_vm5, %v1227_v62, 0.0 }
 0x17e   : > { %v661_v1 = vmax.f32 %v659_v61, %v660_v63  ;;  %632 = vadd.xlane.f32.xlu1 %v631_v0 }
 0x180   : > { %v1229_v4 = vpop.eup %1228  ;;  %v662_v5 = vrot.slane %v661_v1, 1 }
 0x181   : > { %v634_v6 = vsel %vm618_vm5, %v1229_v4, 0.0 }
 0x182   : > { %v663_v7 = vmax.f32 %v661_v1, %v662_v5  ;;  %635 = vadd.xlane.f32.xlu0 %v634_v6 }
 0x184   : > { %v664_v8 = vsub.f32 %v653_v54, %v663_v7  ;;  %v665_v12 = vsub.f32 %v654_v56, %v663_v7 }
 0x186   : > { %v666_v13 = vmul.f32 1.442695, %v664_v8  ;;  %v668_v14 = vmul.f32 1.442695, %v665_v12 }
 0x188   : > { %1230 = vpow2.f32 %v666_v13 }
 0x189   : > { %1232 = vpow2.f32 %v668_v14 }
 0x195   : > { %v1231_v16 = vpop.eup %1230 }
 0x196   : > { %v1233_v17 = vpop.eup %1232  ;;  %v670_v18 = vsel %vm618_vm5, %v1231_v16, 0.0 }
 0x197   : > { %v671_v19 = vsel %vm618_vm5, %v1233_v17, 0.0 }
 0x198   : > { %v672_v20 = vadd.f32 %v671_v19, %v670_v18 }
 0x19a   : > { %v673_v21 = vrot.slane %v672_v20, 4 }
 0x19c   : > { %v674_v22 = vadd.f32 %v673_v21, %v672_v20  ;;  %v516_v21 = vld [vmem:[%s501_s28] sm:$0x1] }
 0x19d   : > { %vm953_vm13 = vcmp.gt.f32.partialorder %v516_v21, 0.0 }
 0x19e   : > { %v675_v23 = vrot.slane %v674_v22, 2 }
 0x1a0   : > { %v676_v24 = vadd.f32 %v675_v23, %v674_v22  ;;  %v954_v22 = vsel %vm953_vm13, 1, %v1258_v3 }
 0x1a2   : > { %v677_v25 = vrot.slane %v676_v24, 1 }
 0x1a4   : > { %v678_v28 = vadd.f32 %v677_v25, %v676_v24  ;;  %v958_v25 = vrot.slane %v954_v22, %v613_v27 }
 0x1a6   : > { %1234 = vrcp.f32 %v678_v28  ;;  %vm959_vm14 = vcmp.eq.s32.totalorder %v958_v25, 1 }
 0x1a8   : > { %s1209_s12 = spop %1208 }
 0x1a9   : > { %v907_v23 = vstv %s1209_s12 }
 0x1b3   : > { %v1235_v29 = vpop.eup %1234 }
 0x1b4   : > { %v680_v30 = vmul.f32 %v1235_v29, %v1231_v16  ;;  %v681_v11 = vmul.f32 %v1235_v29, %v1233_v17 }
 0x1b6   : > { %v730_v31 = vpack.c.bf16 %v681_v11, %v680_v30 }
 0x1b8   : > { %731 = vxpose.xlu1.c.b16.start.end [1/1] (short) (narrow) %v730_v31, 16 }
 0x207   : > { %v633_v32 = vpop.xlane.xlu1 %632 }
 0x208   : > { %1236 = vrcp.f32 %v633_v32 }
 0x20b   : > { %v636_v33 = vpop.xlane.xlu0 %635 }
 0x20c   : > { %1238 = vrcp.f32 %v636_v33 }
 0x215   : > { %v1237_v34 = vpop.eup %1236 }
 0x216   : > { %v639_v36 = vmul.f32 %v1237_v34, %v1227_v62 }
 0x219   : > { %v1239_v35 = vpop.eup %1238 }
 0x21a   : > { %v640_v37 = vmul.f32 %v1239_v35, %v1229_v4  ;;  %v739_v40 = vpop.trf.xlu1 }
 0x21c   : > { %v682_v39 = vpack.c.bf16 %v640_v37, %v639_v36 }
 0x21e   : > { %1179 = vmatmul.mubr.msk.bf16.vlgmr.msra.gmra.mxu1 %vm618_vm5, %v682_v39 }
 0x21f   : > { %1183 = vmatpush3.bf16.msra.mxu1 %v518_v38  ;;  %1184 = vmatprep.mubr.msk.bf16.mxu1 %vm1257_vm0, %v1256_v2 }
 0x220   : > { %1194 = vmatprep.subr.bf16.mxu1 %v1256_v2 }
 0x226   : > { %1185 = vmatmul.mubr.msk.bf16.vlgmr.msra.gmra.mxu1 %vm747_vm10, %v739_v40 }
 0x227   : > { %1196 = vmatprep.mubr.msk.bf16.mxu1 %vm1257_vm0, %v1256_v2 }
 0x2de   : > { %v723_v41 = vpop.f32.mrf.mxu1 }
 0x2df   : > { %v836_v42 = vmul.f32 %v723_v41, %v1376_v9  ;;  %842 = vrot.lane.b32.xlu0 %v723_v41, %s1259_s17 }
 0x2e0   : > { %v1180_v43 = vpop.f32.mrf.mxu1 }
 0x2e1   : > { %850 = vrot.lane.b32.xlu1 %v836_v42, %s1260_s18 }
 0x2e2   : > { %v726_v44 = vpop.f32.mrf.mxu1 }
 0x2e3   : > { %844 = vrot.lane.b32.xlu0 %v726_v44, %s1259_s17  ;;  %v837_v46 = vmul.f32 %v726_v44, %v1378_v10 }
 0x2e4   : > { %v1181_v45 = vpop.f32.mrf.mxu1 }
 0x2e6   : > { %v785_v47 = vpop.f32.mrf.mxu1 }
 0x2e7   : > { %v791_v48 = vpack.c.bf16 %v785_v47, %v785_v47  ;;  %852 = vrot.lane.b32.xlu0 %v837_v46, %s1260_s18 }
 0x2e8   : > { %v1186_v49 = vpop.f32.mrf.mxu1 }
 0x2e9   : > { %v793_v50 = vsel %vm686_vm9, %v791_v48, 0 }
 0x2ea   : > { %v788_v51 = vpop.f32.mrf.mxu1  ;;  %1189 = vmatpush3.bf16.msra.mxu0 %v793_v50 }
 0x2eb   : > { %1200 = vmatprep.subr.bf16.mxu0 %v1256_v2 }
 0x2ec   : > { %v1187_v52 = vpop.f32.mrf.mxu1 }
 0x2ed   : > { %1191 = vmatmul.mubr.msk.bf16.vlgmr.msra.gmra.mxu0 %vm618_vm5, %v682_v39 }
 0x2ee   : > { %1202 = vmatprep.mubr.msk.bf16.mxu0 %vm1257_vm0, %v1256_v2  ;;  %v1149_v2 = vld [vmem:[%s1496_s9] ss:$0 sm:$0xff] }
 0x351   : > { %v843_v60 = vpop.permute.xlu0 %842 }
 0x352   : > { %v864_v63 = vsel %vm529_vm1, %v1376_v9, %v843_v60 }
 0x353   : > { %v851_v62 = vpop.permute.xlu1 %850 }
 0x354   : > { %v867_v0 = vsel %vm866_vm11, %v864_v63, %v851_v62 }
 0x355   : > { %v845_v61 = vpop.permute.xlu0 %844 }
 0x356   : > { %v865_v7 = vsel %vm529_vm1, %v1378_v10, %v845_v61 }
 0x359   : > { %v853_v1 = vpop.permute.xlu0 %852 }
 0x35a   : > { %v868_v8 = vsel %vm866_vm11, %v865_v7, %v853_v1 }
 0x3ad   : > { %v829_v53 = vpop.f32.mrf.mxu0 }
 0x3ae   : > { %v838_v54 = vmul.f32 %v829_v53, %v1376_v9  ;;  %v1150_v9 = vld [vmem:[%s1498_s11] ss:$0 sm:$0xff] }
 0x3af   : > { %v1192_v55 = vpop.f32.mrf.mxu0 }
 0x3b0   : > { %858 = vrot.lane.b32.xlu1 %v838_v54, %s1261_s19 }
 0x3b1   : > { %v832_v56 = vpop.f32.mrf.mxu0 }
 0x3b2   : > { %v839_v58 = vmul.f32 %v832_v56, %v1378_v10  ;;  %v1151_v10 = vld [vmem:[%s1497_s10] ss:$0 sm:$0xff] }
 0x3b3   : > { %v1193_v59 = vpop.f32.mrf.mxu0 }
 0x3b4   : > { %860 = vrot.lane.b32.xlu0 %v839_v58, %s1261_s19 }
 0x422   : > { %v859_v4 = vpop.permute.xlu1 %858 }
 0x423   : > { %v1448_v5 = vsel %vm869_vm12, %v867_v0, %v859_v4 }
 0x424   : > { %v880_v6 = vmul.f32 %v1149_v2, %v1448_v5  ;;  %v893_v17 = vmul.f32 %v1150_v9, %v1448_v5 }
 0x426   : > { %882 = vadd.xlane.f32.xlu1 %v880_v6  ;;  %v861_v12 = vpop.permute.xlu0 %860  ;;  %v902_v19 = vadd.f32 %v1151_v10, %v893_v17 }
 0x427   : > { %v1456_v13 = vsel %vm869_vm12, %v868_v8, %v861_v12 }
 0x428   : > { %v872_v14 = vpack.c.bf16 %v1456_v13, %v1448_v5  ;;  %v894_v15 = vmul.f32 %v1150_v9, %v1456_v13  ;;  %v881_v16 = vmul.f32 %v1149_v2, %v1456_v13 }
 0x42a   : > { %884 = vadd.xlane.f32.xlu0 %v881_v16  ;;  %1195 = vmatpush3.bf16.xpose.msra.mxu1 %v872_v14  ;;  %v903_v18 = vadd.f32 %v1151_v10, %v894_v15 }
 0x42b   : > { %1201 = vmatpush3.bf16.msra.mxu0 %v872_v14 }
 0x42c   : > { %v904_v20 = vpack.c.bf16 %v903_v18, %v902_v19 }
 0x431   : > { %1197 = vmatmul.mubr.bf16.vlgmr.msra.gmra.mxu1 %v904_v20 }
 0x4af   : > { %v883_v24 = vpop.xlane.xlu1 %882 }
 0x4b0   : > { %v908_v28 = vadd.f32 %v907_v23, %v883_v24 }
 0x4b3   : > { %v885_v29 = vpop.xlane.xlu0 %884 }
 0x4b4   : > { %v909_v32 = vadd.f32 %v907_v23, %v885_v29 }
 0x4f1   : > { %v944_v30 = vpop.f32.mrf.mxu1 }
 0x4f2   : > { %v951_v11 = vadd.f32 %v944_v30, %v908_v28 }
 0x4f3   : > { %v1198_v31 = vpop.f32.mrf.mxu1 }
 0x4f4   : > { %v960_v33 = vsel %vm959_vm14, %v951_v11, -1e+30 }
 0x4f5   : > { %v947_v34 = vpop.f32.mrf.mxu1  ;;  %v962_v35 = vsel %vm747_vm10, %v960_v33, -inf }
 0x4f6   : > { %v952_v36 = vadd.f32 %v947_v34, %v909_v32  ;;  %963 = vmax.xlane.f32.xlu0 %v962_v35 }
 0x4f7   : > { %v1199_v37 = vpop.f32.mrf.mxu1 }
 0x4f8   : > { %v961_v3 = vsel %vm959_vm14, %v952_v36, -1e+30 }
 0x4f9   : > { %v965_v38 = vsel %vm747_vm10, %v961_v3, -inf }
 0x4fa   : > { %966 = vmax.xlane.f32.xlu1 %v965_v38 }
 0x57f   : > { %v964_v26 = vpop.xlane.xlu0 %963 }
 0x580   : > { %v968_v27 = vsub.f32 %v960_v33, %v964_v26 }
 0x582   : > { %v970_v39 = vmul.f32 1.442695, %v968_v27 }
 0x583   : > { %v967_v40 = vpop.xlane.xlu1 %966 }
 0x584   : > { %1240 = vpow2.f32 %v970_v39  ;;  %v969_v41 = vsub.f32 %v961_v3, %v967_v40 }
 0x586   : > { %v972_v42 = vmul.f32 1.442695, %v969_v41 }
 0x588   : > { %1242 = vpow2.f32 %v972_v42 }
 0x591   : > { %v1241_v43 = vpop.eup %1240 }
 0x592   : > { %v974_v44 = vsel %vm747_vm10, %v1241_v43, 0.0 }
 0x593   : > { %975 = vadd.xlane.f32.xlu0 %v974_v44 }
 0x595   : > { %v1243_v45 = vpop.eup %1242 }
 0x596   : > { %v977_v46 = vsel %vm747_vm10, %v1243_v45, 0.0 }
 0x597   : > { %978 = vadd.xlane.f32.xlu1 %v977_v46 }
 0x61c   : > { %v976_v47 = vpop.xlane.xlu0 %975 }
 0x61d   : > { %1244 = vrcp.f32 %v976_v47 }
 0x620   : > { %v979_v48 = vpop.xlane.xlu1 %978 }
 0x621   : > { %1246 = vrcp.f32 %v979_v48 }
 0x62a   : > { %v1245_v49 = vpop.eup %1244 }
 0x62b   : > { %v982_v51 = vmul.f32 %v1245_v49, %v1241_v43 }
 0x62e   : > { %v1247_v50 = vpop.eup %1246 }
 0x62f   : > { %v983_v52 = vmul.f32 %v1247_v50, %v1243_v45 }
 0x631   : > { %v984_v53 = vpack.c.bf16 %v983_v52, %v982_v51 }
 0x633   : > { %1203 = vmatmul.mubr.msk.bf16.vlgmr.msra.gmra.mxu0 %vm747_vm10, %v984_v53 }
 0x6f3   : > { %v1022_v54 = vpop.f32.mrf.mxu0 }
 0x6f4   : > { %v1029_v55 = vadd.f32 %v1022_v54, %v1448_v5 }
 0x6f5   : > { %v1204_v56 = vpop.f32.mrf.mxu0 }
 0x6f6   : > { %1031 = vst [vmem:[%s509_s15] sm:$0xff] %v1029_v55 }
 0x6f7   : > { %v1025_v57 = vpop.f32.mrf.mxu0 }
 0x6f8   : > { %v1030_v58 = vadd.f32 %v1025_v57, %v1456_v13 }
 0x6f9   : > { %v1205_v59 = vpop.f32.mrf.mxu0 }
 0x6fa   : > { %1032 = vst [vmem:[%s509_s15 + $0x8] sm:$0xff] %v1030_v58 }
 0x6fb PF: > { %s27_s29 = sadd.s32 1, %s1254_s29  }
 0x6fc   : > { %p24_p4 = scmp.ge.s32.totalorder %s27_s29, 4  }
 0x6fe   :  { %26 = sbr.rel (!%p24_p4) target bundleno = 3 (0x3), region = 114 }

// kernel: _lambda_.12
= control target key start
LH: loop header
LB: loop body
LE: loop exit
PB: predicated region body
PF: predicated region fallthrough
CT: control target
= control target key end

     0   :  { %vm2342_vm0 = vcmask 1043456   ;;  %v257_v0 = vlaneseq  ;;  %v5654_v2 = vmov 1966171168   ;;  %v5655_v10 = vmov 0.0   ;;  %s6867_s3 = inlined_call_operand.vmem [shape: bf16[24,8], index: 3, kind: input, shape index: {}]   ;;  %s6868_s1 = inlined_call_operand.vmem [shape: bf16[48,6,24], index: 1, kind: input, shape index: {}]   ;;  %s6869_s2 = inlined_call_operand.vmem [shape: bf16[16,8], index: 2, kind: input, shape index: {}]   ;;  %s6870_s0 = inlined_call_operand.vmem [shape: bf16[48,16], index: 0, kind: input, shape index: {}]   ;;  %s6871_s4 = inlined_call_operand.vmem [shape: f32[1,8], index: 4, kind: input, shape index: {}]   ;;  %s6872_s5 = inlined_call_operand.vmem [shape: bf16[16,16], index: 5, kind: input, shape index: {}]   ;;  %s6873_s7 = inlined_call_operand.vmem [shape: bf16[16,16], index: 7, kind: input, shape index: {}]   ;;  %s6874_s11 = inlined_call_operand.vmem [shape: bf16[16,16], index: 11, kind: input, shape index: {}]   ;;  %s6875_s9 = inlined_call_operand.vmem [shape: bf16[16,16], index: 9, kind: input, shape index: {}]   ;;  %s6876_s8 = inlined_call_operand.vmem [shape: f32[1,16], index: 8, kind: input, shape index: {}, may-alias: {6,8,10,12}]   ;;  %s6877_s6 = inlined_call_operand.vmem [shape: f32[1,16], index: 6, kind: input, shape index: {}, may-alias: {6,8,10,12}]   ;;  %s6878_s12 = inlined_call_operand.vmem [shape: f32[1,16], index: 12, kind: input, shape index: {}, may-alias: {6,8,10,12}]   ;;  %s6879_s10 = inlined_call_operand.vmem [shape: f32[1,16], index: 10, kind: input, shape index: {}, may-alias: {6,8,10,12}]   ;;  %s6880_s13 = inlined_call_operand.vmem [shape: f32[48,16], index: 13, kind: output, shape index: {}]  }
   0x1   :  { %v5596_v1 = vld [vmem:[%s6867_s3 + $0x8] ss:$0 sps:$4 sm:$0xff]   ;;  %v255_v3 = vunpack.c.l.s4 %v5654_v2  ;;  %v5597_v4 = vld [vmem:[%s6867_s3] sm:$0xff]   ;;  %5480 = vmatprep.subr.bf16.mxu0 %v5655_v10  ;;  %vm5656_vm1 = vmmov 0   ;;  %vm2287_vm2 = vcmask 195584   ;;  %vm74_vm3 = vcmask 130048  }
   0x2   :  { %v5735_v5 = vshrl.u32 %v257_v0, 7  ;;  %v5598_v6 = vld [vmem:[%s6869_s2] sm:$0xff]   ;;  %5590 = vmatprep.subr.msk.bf16.mxu1 %vm2342_vm0, %v5596_v1  ;;  %v2344_v7 = vsel %vm2342_vm0, %v5596_v1, 0  ;;  %5482 = vmatprep.mubr.msk.bf16.mxu0 %vm5656_vm1, %v5655_v10  ;;  %vm4419_vm4 = vcmask 62464   ;;  %vm4804_vm5 = vcmask 1041409  }
   0x3   :  { %v5340_v8 = vld.sshfl [vmem:[%s6868_s1] sm:$0x13 pattern:$0x75316420]  ;;  %v256_v9 = vunpack.c.0.s8 %v255_v3  ;;  %5495 = vmatpush3.bf16.msra.mxu1 %v2344_v7  ;;  %5481 = vmatpush3.bf16.msra.mxu0 %v5598_v6  ;;  %vm4806_vm6 = vcmask 1042434   ;;  %vm4808_vm7 = vcmask 1043459  }
   0x4   :  { %v5341_v11 = vld.sshfl [vmem:[%s6868_s1 + $0x4] sm:$0x13 pattern:$0x75316420]  ;;  %v253_v12 = vcombine.high %v5340_v8, %v5340_v8  ;;  %5496 = vmatprep.subr.bf16.mxu1 %v5597_v4  ;;  %5534 = vmatprep.subr.bf16.mxu0 %v5655_v10  ;;  %vm4810_vm8 = vcmask 1044484   ;;  %vm4812_vm9 = vcmask 1045509  }
   0x5   :  { %v5342_v13 = vld.sshfl [vmem:[%s6868_s1 + $0x8] sm:$0x13 pattern:$0x75316420]  ;;  %v5751_v14 = vsub.s32 %v256_v9, %v5735_v5  ;;  %v276_v15 = vcombine.high %v5341_v11, %v5341_v11  ;;  %vm4814_vm10 = vcmask 1046534   ;;  %vm4816_vm11 = vcmask 1047559  }
   0x6   :  { %v299_v16 = vcombine.high %v5342_v13, %v5342_v13  ;;  %v5343_v17 = vld.sshfl [vmem:[%s6868_s1 + $0xc] sm:$0x13 pattern:$0x75316420]  ;;  %vm4871_vm12 = vcmask 64512  }
   0x7   :  { %v260_v18 = vrot.slane %v5340_v8, %v5751_v14  ;;  %v267_v19 = vrot.slane %v253_v12, %v5751_v14  ;;  %v283_v20 = vrot.slane %v5341_v11, %v5751_v14  ;;  %v290_v21 = vrot.slane %v276_v15, %v5751_v14  ;;  %v5344_v22 = vld.sshfl [vmem:[%s6868_s1 + $0x10] sm:$0x13 pattern:$0x75316420]  ;;  %5497 = vmatpush3.bf16.msra.mxu1 %v5597_v4 }
   0x8   :  { %v306_v23 = vrot.slane %v5342_v13, %v5751_v14  ;;  %v313_v24 = vrot.slane %v299_v16, %v5751_v14  ;;  %v322_v25 = vcombine.high %v5343_v17, %v5343_v17  ;;  %v329_v26 = vrot.slane %v5343_v17, %v5751_v14  ;;  %v5345_v30 = vld.sshfl [vmem:[%s6868_s1 + $0x14] sm:$0x13 pattern:$0x75316420]  ;;  %5576 = vmatprep.subr.bf16.mxu1 %v5655_v10 }
   0x9   :  { %v268_v27 = vcombine.high %v260_v18, %v260_v18  ;;  %v291_v28 = vcombine.high %v283_v20, %v283_v20  ;;  %v1366_v29 = vcombine.low %v260_v18, %v267_v19  ;;  %v345_v31 = vcombine.high %v5344_v22, %v5344_v22  ;;  %v5346_v48 = vld.sshfl [vmem:[%s6868_s1 + $0x18] sm:$0x13 pattern:$0x75316420] }
   0xa   :  { %v314_v32 = vcombine.high %v306_v23, %v306_v23  ;;  %v1369_v33 = vcombine.low %v306_v23, %v313_v24  ;;  %v336_v34 = vrot.slane %v322_v25, %v5751_v14  ;;  %v337_v35 = vcombine.high %v329_v26, %v329_v26  ;;  %v5347_v57 = vld.sshfl [vmem:[%s6868_s1 + $0x1c] sm:$0x13 pattern:$0x75316420] }
   0xb   :  { %v1367_v36 = vcombine.low %v268_v27, %v283_v20  ;;  %v1368_v37 = vcombine.low %v290_v21, %v291_v28  ;;  %v1376_v38 = vrot.slane %v1366_v29, %v5751_v14  ;;  %v352_v39 = vrot.slane %v5344_v22, %v5751_v14  ;;  %v5348_v7 = vld.sshfl [vmem:[%s6868_s1 + $0x20] sm:$0x13 pattern:$0x75316420] }
   0xc   :  { %v1397_v40 = vrot.slane %v1369_v33, %v5751_v14  ;;  %v359_v41 = vrot.slane %v345_v31, %v5751_v14  ;;  %v375_v42 = vrot.slane %v5345_v30, %v5751_v14  ;;  %v1415_v43 = vcombine.low %v314_v32, %v329_v26  ;;  %v5349_v13 = vld.sshfl [vmem:[%s6868_s1 + $0x24] sm:$0x13 pattern:$0x75316420] }
   0xd   :  { %v1383_v44 = vrot.slane %v1367_v36, %v5751_v14  ;;  %v1390_v45 = vrot.slane %v1368_v37, %v5751_v14  ;;  %v360_v46 = vcombine.high %v352_v39, %v352_v39  ;;  %v1416_v47 = vcombine.low %v336_v34, %v337_v35  ;;  %v5350_v21 = vld.sshfl [vmem:[%s6868_s1 + $0x28] sm:$0x13 pattern:$0x75316420] }
   0xe   :  { %v1417_v49 = vcombine.low %v352_v39, %v359_v41  ;;  %v1425_v50 = vrot.slane %v1415_v43, %v5751_v14  ;;  %v368_v51 = vcombine.high %v5345_v30, %v5345_v30  ;;  %v383_v52 = vcombine.high %v375_v42, %v375_v42  ;;  %v5351_v32 = vld.sshfl [vmem:[%s6868_s1 + $0x2c] sm:$0x13 pattern:$0x75316420] }
   0xf   :  { %v1398_v53 = vcombine.low %v1376_v38, %v1383_v44  ;;  %v1399_v54 = vcombine.low %v1390_v45, %v1397_v40  ;;  %v1418_v55 = vcombine.low %v360_v46, %v375_v42  ;;  %v1432_v56 = vrot.slane %v1416_v47, %v5751_v14  ;;  %v5352_v44 = vld.sshfl [vmem:[%s6868_s1 + $0x30] sm:$0x13 pattern:$0x75316420] }
  0x10   :  { %v1439_v58 = vrot.slane %v1417_v49, %v5751_v14  ;;  %v382_v59 = vrot.slane %v368_v51, %v5751_v14  ;;  %v391_v60 = vcombine.high %v5346_v48, %v5346_v48  ;;  %v398_v61 = vrot.slane %v5346_v48, %v5751_v14  ;;  %v5353_v49 = vld.sshfl [vmem:[%s6868_s1 + $0x34] sm:$0x13 pattern:$0x75316420] }
  0x11   :  { %v1406_v62 = vrot.slane %v1398_v53, %v5751_v14  ;;  %v1413_v63 = vrot.slane %v1399_v54, %v5751_v14  ;;  %v1446_v0 = vrot.slane %v1418_v55, %v5751_v14  ;;  %v1447_v1 = vcombine.low %v1425_v50, %v1432_v56 }
  0x12   :  { %v405_v2 = vrot.slane %v391_v60, %v5751_v14  ;;  %v406_v3 = vcombine.high %v398_v61, %v398_v61  ;;  %v414_v4 = vcombine.high %v5347_v57, %v5347_v57  ;;  %v421_v6 = vrot.slane %v5347_v57, %v5751_v14 }
  0x13   :  { %v1414_v8 = vcombine.low %v1406_v62, %v1413_v63  ;;  %v1448_v9 = vcombine.low %v1439_v58, %v1446_v0  ;;  %v1455_v11 = vrot.slane %v1447_v1, %v5751_v14  ;;  %v1464_v12 = vcombine.low %v382_v59, %v383_v52  ;;  %v5354_v63 = vld.sshfl [vmem:[%s6868_s1 + $0x38] sm:$0x13 pattern:$0x75316420] }
  0x14   :  { %v428_v15 = vrot.slane %v414_v4, %v5751_v14  ;;  %v429_v16 = vcombine.high %v421_v6, %v421_v6  ;;  %v1465_v17 = vcombine.low %v398_v61, %v405_v2  ;;  %v1466_v18 = vcombine.low %v406_v3, %v421_v6 }
  0x15   :  { %5498 = vmatprep.mubr.msk.bf16.mxu1 %vm2287_vm2, %v1414_v8  ;;  %v1462_v19 = vrot.slane %v1448_v9, %v5751_v14  ;;  %v1474_v20 = vrot.slane %v1464_v12, %v5751_v14  ;;  %v437_v22 = vcombine.high %v5348_v7, %v5348_v7  ;;  %v444_v23 = vrot.slane %v5348_v7, %v5751_v14  ;;  %v5355_v7 = vld.sshfl [vmem:[%s6868_s1 + $0x3c] sm:$0x13 pattern:$0x75316420] }
  0x16   :  { %v1467_v24 = vcombine.low %v428_v15, %v429_v16  ;;  %v1481_v25 = vrot.slane %v1465_v17, %v5751_v14  ;;  %v1488_v26 = vrot.slane %v1466_v18, %v5751_v14  ;;  %v460_v27 = vcombine.high %v5349_v13, %v5349_v13 }
  0x17   :  { %v1463_v28 = vcombine.low %v1455_v11, %v1462_v19  ;;  %v451_v29 = vrot.slane %v437_v22, %v5751_v14  ;;  %v452_v30 = vcombine.high %v444_v23, %v444_v23  ;;  %v467_v31 = vrot.slane %v5349_v13, %v5751_v14 }
  0x18   :  { %v1495_v33 = vrot.slane %v1467_v24, %v5751_v14  ;;  %v1496_v34 = vcombine.low %v1474_v20, %v1481_v25  ;;  %v474_v35 = vrot.slane %v460_v27, %v5751_v14  ;;  %v483_v36 = vcombine.high %v5350_v21, %v5350_v21  ;;  %v5356_v24 = vld.sshfl [vmem:[%s6868_s1 + $0x40] sm:$0x13 pattern:$0x75316420] }
  0x19   :  { %5499 = vmatmul.mubr.msk.bf16.vlgmr.msra.gmra.mxu1 %vm2287_vm2, %v1463_v28  ;;  %v475_v37 = vcombine.high %v467_v31, %v467_v31  ;;  %v490_v38 = vrot.slane %v5350_v21, %v5751_v14  ;;  %v1513_v39 = vcombine.low %v444_v23, %v451_v29  ;;  %v1514_v40 = vcombine.low %v452_v30, %v467_v31 }
  0x1a   :  { %v1497_v41 = vcombine.low %v1488_v26, %v1495_v33  ;;  %v1504_v42 = vrot.slane %v1496_v34, %v5751_v14  ;;  %v497_v43 = vrot.slane %v483_v36, %v5751_v14  ;;  %v506_v45 = vcombine.high %v5351_v32, %v5351_v32  ;;  %v5357_v33 = vld.sshfl [vmem:[%s6868_s1 + $0x44] sm:$0x13 pattern:$0x75316420] }
  0x1b   :  { %v1515_v46 = vcombine.low %v474_v35, %v475_v37  ;;  %v1523_v47 = vrot.slane %v1513_v39, %v5751_v14  ;;  %v1530_v48 = vrot.slane %v1514_v40, %v5751_v14  ;;  %v498_v50 = vcombine.high %v490_v38, %v490_v38 }
  0x1c   :  { %v1511_v51 = vrot.slane %v1497_v41, %v5751_v14  ;;  %v1516_v52 = vcombine.low %v490_v38, %v497_v43  ;;  %v513_v53 = vrot.slane %v5351_v32, %v5751_v14  ;;  %v520_v54 = vrot.slane %v506_v45, %v5751_v14  ;;  %v5358_v41 = vld.sshfl [vmem:[%s6868_s1 + $0x48] sm:$0x13 pattern:$0x75316420] }
  0x1d   :  { %v1537_v55 = vrot.slane %v1515_v46, %v5751_v14  ;;  %v1545_v56 = vcombine.low %v1523_v47, %v1530_v48  ;;  %v529_v57 = vcombine.high %v5352_v44, %v5352_v44  ;;  %v536_v58 = vrot.slane %v5352_v44, %v5751_v14 }
  0x1e   :  { %v1512_v59 = vcombine.low %v1504_v42, %v1511_v51  ;;  %v1544_v60 = vrot.slane %v1516_v52, %v5751_v14  ;;  %v521_v61 = vcombine.high %v513_v53, %v513_v53  ;;  %v559_v62 = vrot.slane %v5353_v49, %v5751_v14  ;;  %v5359_v51 = vld.sshfl [vmem:[%s6868_s1 + $0x4c] sm:$0x13 pattern:$0x75316420] }
  0x1f   :  { %v1553_v0 = vrot.slane %v1545_v56, %v5751_v14  ;;  %v543_v1 = vrot.slane %v529_v57, %v5751_v14  ;;  %v544_v2 = vcombine.high %v536_v58, %v536_v58  ;;  %v1562_v3 = vcombine.low %v498_v50, %v513_v53 }
  0x20   :  { %5502 = vmatprep.mubr.msk.bf16.mxu1 %vm2287_vm2, %v1512_v59  ;;  %v1546_v4 = vcombine.low %v1537_v55, %v1544_v60  ;;  %v1563_v6 = vcombine.low %v520_v54, %v521_v61  ;;  %v552_v8 = vcombine.high %v5353_v49, %v5353_v49  ;;  %v567_v9 = vcombine.high %v559_v62, %v559_v62  ;;  %v5360_v60 = vld.sshfl [vmem:[%s6868_s1 + $0x50] sm:$0x13 pattern:$0x75316420] }
  0x21   :  { %v1564_v11 = vcombine.low %v536_v58, %v543_v1  ;;  %v1565_v12 = vcombine.low %v544_v2, %v559_v62  ;;  %v1572_v13 = vrot.slane %v1562_v3, %v5751_v14  ;;  %v575_v15 = vcombine.high %v5354_v63, %v5354_v63 }
  0x22   :  { %v1560_v16 = vrot.slane %v1546_v4, %v5751_v14  ;;  %v1579_v17 = vrot.slane %v1563_v6, %v5751_v14  ;;  %v566_v18 = vrot.slane %v552_v8, %v5751_v14  ;;  %v582_v19 = vrot.slane %v5354_v63, %v5751_v14  ;;  %v5361_v4 = vld.sshfl [vmem:[%s6868_s1 + $0x54] sm:$0x13 pattern:$0x75316420] }
  0x23   :  { %v1586_v20 = vrot.slane %v1564_v11, %v5751_v14  ;;  %v1593_v21 = vrot.slane %v1565_v12, %v5751_v14  ;;  %v589_v22 = vrot.slane %v575_v15, %v5751_v14  ;;  %v598_v23 = vcombine.high %v5355_v7, %v5355_v7 }
  0x24   :  { %v1561_v25 = vcombine.low %v1553_v0, %v1560_v16  ;;  %v1594_v26 = vcombine.low %v1572_v13, %v1579_v17  ;;  %v590_v27 = vcombine.high %v582_v19, %v582_v19  ;;  %v605_v28 = vrot.slane %v5355_v7, %v5751_v14 }
  0x25   :  { %v1595_v29 = vcombine.low %v1586_v20, %v1593_v21  ;;  %v612_v30 = vrot.slane %v598_v23, %v5751_v14  ;;  %v1611_v31 = vcombine.low %v566_v18, %v567_v9  ;;  %v1612_v32 = vcombine.low %v582_v19, %v589_v22  ;;  %v5362_v21 = vld.sshfl [vmem:[%s6868_s1 + $0x58] sm:$0x13 pattern:$0x75316420] }
  0x26   :  { %5503 = vmatmul.mubr.msk.bf16.gmra.mxu1 %vm2287_vm2, %v1561_v25  ;;  %v1602_v34 = vrot.slane %v1594_v26, %v5751_v14  ;;  %v613_v35 = vcombine.high %v605_v28, %v605_v28  ;;  %v1613_v36 = vcombine.low %v590_v27, %v605_v28  ;;  %v621_v37 = vcombine.high %v5356_v24, %v5356_v24  ;;  %v5363_v28 = vld.sshfl [vmem:[%s6868_s1 + $0x5c] sm:$0x13 pattern:$0x75316420] }
  0x27   :  { %v1609_v38 = vrot.slane %v1595_v29, %v5751_v14  ;;  %v1621_v39 = vrot.slane %v1611_v31, %v5751_v14  ;;  %v1628_v40 = vrot.slane %v1612_v32, %v5751_v14  ;;  %v628_v42 = vrot.slane %v5356_v24, %v5751_v14 }
  0x28   :  { %v1614_v43 = vcombine.low %v612_v30, %v613_v35  ;;  %v1635_v44 = vrot.slane %v1613_v36, %v5751_v14  ;;  %v635_v45 = vrot.slane %v621_v37, %v5751_v14  ;;  %v644_v46 = vcombine.high %v5357_v33, %v5357_v33 }
  0x29   :  { %v1610_v47 = vcombine.low %v1602_v34, %v1609_v38  ;;  %v1643_v48 = vcombine.low %v1621_v39, %v1628_v40  ;;  %v636_v49 = vcombine.high %v628_v42, %v628_v42  ;;  %v651_v50 = vrot.slane %v5357_v33, %v5751_v14 }
  0x2a   :  { %v1642_v52 = vrot.slane %v1614_v43, %v5751_v14  ;;  %v658_v53 = vrot.slane %v644_v46, %v5751_v14  ;;  %v667_v54 = vcombine.high %v5358_v41, %v5358_v41  ;;  %v674_v55 = vrot.slane %v5358_v41, %v5751_v14  ;;  %v5364_v43 = vld.sshfl [vmem:[%s6868_s1 + $0x60] sm:$0x13 pattern:$0x75316420] }
  0x2b   :  { %5506 = vmatprep.mubr.msk.bf16.mxu1 %vm2287_vm2, %v1610_v47  ;;  %v1651_v56 = vrot.slane %v1643_v48, %v5751_v14  ;;  %v659_v57 = vcombine.high %v651_v50, %v651_v50  ;;  %v1660_v58 = vcombine.low %v628_v42, %v635_v45  ;;  %v1661_v59 = vcombine.low %v636_v49, %v651_v50  ;;  %v5365_v48 = vld.sshfl [vmem:[%s6868_s1 + $0x64] sm:$0x13 pattern:$0x75316420] }
  0x2c   :  { %v1644_v61 = vcombine.low %v1635_v44, %v1642_v52  ;;  %v681_v62 = vrot.slane %v667_v54, %v5751_v14  ;;  %v682_v63 = vcombine.high %v674_v55, %v674_v55  ;;  %v690_v0 = vcombine.high %v5359_v51, %v5359_v51 }
  0x2d   :  { %v1662_v1 = vcombine.low %v658_v53, %v659_v57  ;;  %v1670_v2 = vrot.slane %v1660_v58, %v5751_v14  ;;  %v1677_v3 = vrot.slane %v1661_v59, %v5751_v14  ;;  %v697_v6 = vrot.slane %v5359_v51, %v5751_v14  ;;  %v5366_v59 = vld.sshfl [vmem:[%s6868_s1 + $0x68] sm:$0x13 pattern:$0x75316420] }
  0x2e   :  { %v1658_v7 = vrot.slane %v1644_v61, %v5751_v14  ;;  %v1663_v8 = vcombine.low %v674_v55, %v681_v62  ;;  %v704_v9 = vrot.slane %v690_v0, %v5751_v14  ;;  %v713_v11 = vcombine.high %v5360_v60, %v5360_v60 }
  0x2f   :  { %v1684_v12 = vrot.slane %v1662_v1, %v5751_v14  ;;  %v1692_v13 = vcombine.low %v1670_v2, %v1677_v3  ;;  %v705_v15 = vcombine.high %v697_v6, %v697_v6  ;;  %v720_v16 = vrot.slane %v5360_v60, %v5751_v14  ;;  %v5367_v2 = vld.sshfl [vmem:[%s6868_s1 + $0x6c] sm:$0x13 pattern:$0x75316420] }
  0x30   :  { %v1659_v17 = vcombine.low %v1651_v56, %v1658_v7  ;;  %v1691_v18 = vrot.slane %v1663_v8, %v5751_v14  ;;  %v727_v19 = vrot.slane %v713_v11, %v5751_v14  ;;  %v743_v20 = vrot.slane %v5361_v4, %v5751_v14 }
  0x31   :  { %v1700_v22 = vrot.slane %v1692_v13, %v5751_v14  ;;  %v728_v23 = vcombine.high %v720_v16, %v720_v16  ;;  %v1709_v24 = vcombine.low %v682_v63, %v697_v6  ;;  %v1710_v25 = vcombine.low %v704_v9, %v705_v15 }
  0x32   :  { %5507 = vmatmul.mubr.msk.bf16.gmra.mxu1 %vm2287_vm2, %v1659_v17  ;;  %v1693_v26 = vcombine.low %v1684_v12, %v1691_v18  ;;  %v1711_v27 = vcombine.low %v720_v16, %v727_v19  ;;  %v736_v29 = vcombine.high %v5361_v4, %v5361_v4  ;;  %v751_v30 = vcombine.high %v743_v20, %v743_v20  ;;  %v5368_v17 = vld.sshfl [vmem:[%s6868_s1 + $0x70] sm:$0x13 pattern:$0x75316420] }
  0x33   :  { %v1712_v31 = vcombine.low %v728_v23, %v743_v20  ;;  %v1719_v32 = vrot.slane %v1709_v24, %v5751_v14  ;;  %v1726_v33 = vrot.slane %v1710_v25, %v5751_v14  ;;  %v759_v34 = vcombine.high %v5362_v21, %v5362_v21 }
  0x34   :  { %v1707_v35 = vrot.slane %v1693_v26, %v5751_v14  ;;  %v1733_v36 = vrot.slane %v1711_v27, %v5751_v14  ;;  %v750_v37 = vrot.slane %v736_v29, %v5751_v14  ;;  %v766_v38 = vrot.slane %v5362_v21, %v5751_v14 }
  0x35   :  { %v1740_v39 = vrot.slane %v1712_v31, %v5751_v14  ;;  %v1741_v40 = vcombine.low %v1719_v32, %v1726_v33  ;;  %v773_v41 = vrot.slane %v759_v34, %v5751_v14  ;;  %v782_v42 = vcombine.high %v5363_v28, %v5363_v28 }
  0x36   :  { %v1708_v44 = vcombine.low %v1700_v22, %v1707_v35  ;;  %v774_v45 = vcombine.high %v766_v38, %v766_v38  ;;  %v789_v46 = vrot.slane %v5363_v28, %v5751_v14  ;;  %v1758_v47 = vcombine.low %v750_v37, %v751_v30  ;;  %v5369_v22 = vld.sshfl [vmem:[%s6868_s1 + $0x74] sm:$0x13 pattern:$0x75316420] }
  0x37   :  { %v1742_v49 = vcombine.low %v1733_v36, %v1740_v39  ;;  %v1749_v50 = vrot.slane %v1741_v40, %v5751_v14  ;;  %v796_v51 = vrot.slane %v782_v42, %v5751_v14  ;;  %v1759_v52 = vcombine.low %v766_v38, %v773_v41  ;;  %v5370_v40 = vld.sshfl [vmem:[%s6868_s1 + $0x78] sm:$0x13 pattern:$0x75316420] }
  0x38   :  { %5510 = vmatprep.mubr.msk.bf16.mxu1 %vm2287_vm2, %v1708_v44  ;;  %v797_v53 = vcombine.high %v789_v46, %v789_v46  ;;  %v1760_v54 = vcombine.low %v774_v45, %v789_v46  ;;  %v1768_v55 = vrot.slane %v1758_v47, %v5751_v14  ;;  %v805_v56 = vcombine.high %v5364_v43, %v5364_v43  ;;  %v5371_v44 = vld.sshfl [vmem:[%s6868_s1 + $0x7c] sm:$0x13 pattern:$0x75316420] }
  0x39   :  { %v1756_v57 = vrot.slane %v1742_v49, %v5751_v14  ;;  %v1775_v58 = vrot.slane %v1759_v52, %v5751_v14  ;;  %v812_v60 = vrot.slane %v5364_v43, %v5751_v14  ;;  %v828_v61 = vcombine.high %v5365_v48, %v5365_v48 }
  0x3a   :  { %v1761_v62 = vcombine.low %v796_v51, %v797_v53  ;;  %v1782_v63 = vrot.slane %v1760_v54, %v5751_v14  ;;  %v819_v0 = vrot.slane %v805_v56, %v5751_v14  ;;  %v835_v1 = vrot.slane %v5365_v48, %v5751_v14 }
  0x3b   :  { %v1757_v3 = vcombine.low %v1749_v50, %v1756_v57  ;;  %v1790_v4 = vcombine.low %v1768_v55, %v1775_v58  ;;  %v820_v6 = vcombine.high %v812_v60, %v812_v60  ;;  %v842_v7 = vrot.slane %v828_v61, %v5751_v14 }
  0x3c   :  { %v1789_v8 = vrot.slane %v1761_v62, %v5751_v14  ;;  %v843_v9 = vcombine.high %v835_v1, %v835_v1  ;;  %v851_v11 = vcombine.high %v5366_v59, %v5366_v59  ;;  %v858_v12 = vrot.slane %v5366_v59, %v5751_v14  ;;  %v5372_v62 = vld.sshfl [vmem:[%s6868_s1 + $0x80] sm:$0x13 pattern:$0x75316420] }
  0x3d   :  { %5511 = vmatmul.mubr.msk.bf16.gmra.mxu1 %vm2287_vm2, %v1757_v3  ;;  %v1798_v13 = vrot.slane %v1790_v4, %v5751_v14  ;;  %v1807_v15 = vcombine.low %v812_v60, %v819_v0  ;;  %v1808_v16 = vcombine.low %v820_v6, %v835_v1  ;;  %v874_v18 = vcombine.high %v5367_v2, %v5367_v2  ;;  %v5373_v3 = vld.sshfl [vmem:[%s6868_s1 + $0x84] sm:$0x13 pattern:$0x75316420] }
  0x3e   :  { %v1791_v19 = vcombine.low %v1782_v63, %v1789_v8  ;;  %v865_v20 = vrot.slane %v851_v11, %v5751_v14  ;;  %v1809_v21 = vcombine.low %v842_v7, %v843_v9  ;;  %v866_v23 = vcombine.high %v858_v12, %v858_v12 }
  0x3f   :  { %v1817_v24 = vrot.slane %v1807_v15, %v5751_v14  ;;  %v1824_v25 = vrot.slane %v1808_v16, %v5751_v14  ;;  %v881_v26 = vrot.slane %v5367_v2, %v5751_v14  ;;  %v888_v27 = vrot.slane %v874_v18, %v5751_v14  ;;  %v5374_v18 = vld.sshfl [vmem:[%s6868_s1 + $0x88] sm:$0x13 pattern:$0x75316420] }
  0x40   :  { %v1805_v28 = vrot.slane %v1791_v19, %v5751_v14  ;;  %v1810_v29 = vcombine.low %v858_v12, %v865_v20  ;;  %v1831_v30 = vrot.slane %v1809_v21, %v5751_v14  ;;  %v897_v31 = vcombine.high %v5368_v17, %v5368_v17 }
  0x41   :  { %v1839_v32 = vcombine.low %v1817_v24, %v1824_v25  ;;  %v889_v33 = vcombine.high %v881_v26, %v881_v26  ;;  %v904_v34 = vrot.slane %v5368_v17, %v5751_v14  ;;  %v927_v35 = vrot.slane %v5369_v22, %v5751_v14  ;;  %v5375_v24 = vld.sshfl [vmem:[%s6868_s1 + $0x8c] sm:$0x13 pattern:$0x75316420] }
  0x42   :  { %v1806_v36 = vcombine.low %v1798_v13, %v1805_v28  ;;  %v1838_v37 = vrot.slane %v1810_v29, %v5751_v14  ;;  %v911_v38 = vrot.slane %v897_v31, %v5751_v14  ;;  %v1856_v39 = vcombine.low %v866_v23, %v881_v26 }
  0x43   :  { %v1847_v41 = vrot.slane %v1839_v32, %v5751_v14  ;;  %v912_v42 = vcombine.high %v904_v34, %v904_v34  ;;  %v1857_v43 = vcombine.low %v888_v27, %v889_v33  ;;  %v920_v45 = vcombine.high %v5369_v22, %v5369_v22 }
  0x44   :  { %5514 = vmatprep.mubr.msk.bf16.mxu1 %vm2287_vm2, %v1806_v36  ;;  %v1840_v46 = vcombine.low %v1831_v30, %v1838_v37  ;;  %v1858_v47 = vcombine.low %v904_v34, %v911_v38  ;;  %v1866_v48 = vrot.slane %v1856_v39, %v5751_v14  ;;  %v935_v49 = vcombine.high %v927_v35, %v927_v35  ;;  %v5376_v36 = vld.sshfl [vmem:[%s6868_s1 + $0x90] sm:$0x13 pattern:$0x75316420] }
  0x45   :  { %v1859_v50 = vcombine.low %v912_v42, %v927_v35  ;;  %v1873_v51 = vrot.slane %v1857_v43, %v5751_v14  ;;  %v934_v52 = vrot.slane %v920_v45, %v5751_v14  ;;  %v943_v53 = vcombine.high %v5370_v40, %v5370_v40 }
  0x46   :  { %v1854_v54 = vrot.slane %v1840_v46, %v5751_v14  ;;  %v1880_v55 = vrot.slane %v1858_v47, %v5751_v14  ;;  %v950_v56 = vrot.slane %v5370_v40, %v5751_v14  ;;  %v966_v57 = vcombine.high %v5371_v44, %v5371_v44 }
  0x47   :  { %v1887_v58 = vrot.slane %v1859_v50, %v5751_v14  ;;  %v1888_v59 = vcombine.low %v1866_v48, %v1873_v51  ;;  %v957_v60 = vrot.slane %v943_v53, %v5751_v14  ;;  %v973_v61 = vrot.slane %v5371_v44, %v5751_v14 }
  0x48   :  { %v1855_v63 = vcombine.low %v1847_v41, %v1854_v54  ;;  %v958_v0 = vcombine.high %v950_v56, %v950_v56  ;;  %v980_v1 = vrot.slane %v966_v57, %v5751_v14  ;;  %v1905_v2 = vcombine.low %v934_v52, %v935_v49  ;;  %v5377_v41 = vld.sshfl [vmem:[%s6868_s1 + $0x94] sm:$0x13 pattern:$0x75316420] }
  0x49   :  { %v1889_v4 = vcombine.low %v1880_v55, %v1887_v58  ;;  %v1896_v6 = vrot.slane %v1888_v59, %v5751_v14  ;;  %v981_v7 = vcombine.high %v973_v61, %v973_v61  ;;  %v1906_v8 = vcombine.low %v950_v56, %v957_v60  ;;  %v5378_v59 = vld.sshfl [vmem:[%s6868_s1 + $0x98] sm:$0x13 pattern:$0x75316420] }
  0x4a   :  { %5515 = vmatmul.mubr.msk.bf16.gmra.mxu1 %vm2287_vm2, %v1855_v63  ;;  %v1907_v9 = vcombine.low %v958_v0, %v973_v61  ;;  %v1915_v11 = vrot.slane %v1905_v2, %v5751_v14  ;;  %v989_v12 = vcombine.high %v5372_v62, %v5372_v62  ;;  %v996_v13 = vrot.slane %v5372_v62, %v5751_v14  ;;  %v5379_v62 = vld.sshfl [vmem:[%s6868_s1 + $0x9c] sm:$0x13 pattern:$0x75316420] }
  0x4b   :  { %v1903_v15 = vrot.slane %v1889_v4, %v5751_v14  ;;  %v1908_v16 = vcombine.low %v980_v1, %v981_v7  ;;  %v1922_v17 = vrot.slane %v1906_v8, %v5751_v14  ;;  %v1012_v19 = vcombine.high %v5373_v3, %v5373_v3 }
  0x4c   :  { %v1929_v20 = vrot.slane %v1907_v9, %v5751_v14  ;;  %v1003_v21 = vrot.slane %v989_v12, %v5751_v14  ;;  %v1004_v22 = vcombine.high %v996_v13, %v996_v13  ;;  %v1019_v23 = vrot.slane %v5373_v3, %v5751_v14 }
  0x4d   :  { %v1904_v25 = vcombine.low %v1896_v6, %v1903_v15  ;;  %v1936_v26 = vrot.slane %v1908_v16, %v5751_v14  ;;  %v1937_v27 = vcombine.low %v1915_v11, %v1922_v17  ;;  %v1026_v28 = vrot.slane %v1012_v19, %v5751_v14 }
  0x4e   :  { %v1027_v29 = vcombine.high %v1019_v23, %v1019_v23  ;;  %v1035_v30 = vcombine.high %v5374_v18, %v5374_v18  ;;  %v1042_v31 = vrot.slane %v5374_v18, %v5751_v14  ;;  %v1954_v32 = vcombine.low %v996_v13, %v1003_v21 }
  0x4f   :  { %5518 = vmatprep.mubr.msk.bf16.mxu1 %vm2287_vm2, %v1904_v25  ;;  %v1938_v33 = vcombine.low %v1929_v20, %v1936_v26  ;;  %v1945_v34 = vrot.slane %v1937_v27, %v5751_v14  ;;  %v1955_v35 = vcombine.low %v1004_v22, %v1019_v23  ;;  %v1058_v37 = vcombine.high %v5375_v24, %v5375_v24  ;;  %v5380_v20 = vld.sshfl [vmem:[%s6868_s1 + $0xa0] sm:$0x13 pattern:$0x75316420] }
  0x50   :  { %v1049_v38 = vrot.slane %v1035_v30, %v5751_v14  ;;  %v1956_v39 = vcombine.low %v1026_v28, %v1027_v29  ;;  %v1964_v40 = vrot.slane %v1954_v32, %v5751_v14  ;;  %v1050_v42 = vcombine.high %v1042_v31, %v1042_v31  ;;  %v5381_v25 = vld.sshfl [vmem:[%s6868_s1 + $0xa4] sm:$0x13 pattern:$0x75316420] }
  0x51   :  { %v1952_v43 = vrot.slane %v1938_v33, %v5751_v14  ;;  %v1971_v44 = vrot.slane %v1955_v35, %v5751_v14  ;;  %v1065_v45 = vrot.slane %v5375_v24, %v5751_v14  ;;  %v1072_v46 = vrot.slane %v1058_v37, %v5751_v14  ;;  %v5382_v32 = vld.sshfl [vmem:[%s6868_s1 + $0xa8] sm:$0x13 pattern:$0x75316420] }
  0x52   :  { %v1957_v47 = vcombine.low %v1042_v31, %v1049_v38  ;;  %v1978_v48 = vrot.slane %v1956_v39, %v5751_v14  ;;  %v1081_v49 = vcombine.high %v5376_v36, %v5376_v36  ;;  %v1088_v50 = vrot.slane %v5376_v36, %v5751_v14 }
  0x53   :  { %v1953_v51 = vcombine.low %v1945_v34, %v1952_v43  ;;  %v1986_v52 = vcombine.low %v1964_v40, %v1971_v44  ;;  %v1073_v53 = vcombine.high %v1065_v45, %v1065_v45  ;;  %v1111_v54 = vrot.slane %v5377_v41, %v5751_v14  ;;  %v5383_v43 = vld.sshfl [vmem:[%s6868_s1 + $0xac] sm:$0x13 pattern:$0x75316420] }
  0x54   :  { %v1985_v55 = vrot.slane %v1957_v47, %v5751_v14  ;;  %v1095_v56 = vrot.slane %v1081_v49, %v5751_v14  ;;  %v1096_v57 = vcombine.high %v1088_v50, %v1088_v50  ;;  %v2003_v58 = vcombine.low %v1050_v42, %v1065_v45 }
  0x55   :  { %5519 = vmatmul.mubr.msk.bf16.gmra.mxu1 %vm2287_vm2, %v1953_v51  ;;  %v1994_v60 = vrot.slane %v1986_v52, %v5751_v14  ;;  %v2004_v61 = vcombine.low %v1072_v46, %v1073_v53  ;;  %v1104_v63 = vcombine.high %v5377_v41, %v5377_v41  ;;  %v1119_v0 = vcombine.high %v1111_v54, %v1111_v54 }
  0x56   :  { %v1987_v1 = vcombine.low %v1978_v48, %v1985_v55  ;;  %v2005_v2 = vcombine.low %v1088_v50, %v1095_v56  ;;  %v2006_v3 = vcombine.low %v1096_v57, %v1111_v54  ;;  %v2013_v4 = vrot.slane %v2003_v58, %v5751_v14  ;;  %v5384_v55 = vld.sshfl [vmem:[%s6868_s1 + $0xb0] sm:$0x13 pattern:$0x75316420] }
  0x57   :  { %v2020_v6 = vrot.slane %v2004_v61, %v5751_v14  ;;  %v1118_v7 = vrot.slane %v1104_v63, %v5751_v14  ;;  %v1127_v8 = vcombine.high %v5378_v59, %v5378_v59  ;;  %v1134_v9 = vrot.slane %v5378_v59, %v5751_v14 }
  0x58   :  { %v2001_v11 = vrot.slane %v1987_v1, %v5751_v14  ;;  %v2027_v12 = vrot.slane %v2005_v2, %v5751_v14  ;;  %v2034_v13 = vrot.slane %v2006_v3, %v5751_v14  ;;  %v1150_v15 = vcombine.high %v5379_v62, %v5379_v62 }
  0x59   :  { %v2035_v16 = vcombine.low %v2013_v4, %v2020_v6  ;;  %v1141_v17 = vrot.slane %v1127_v8, %v5751_v14  ;;  %v1142_v18 = vcombine.high %v1134_v9, %v1134_v9  ;;  %v1157_v19 = vrot.slane %v5379_v62, %v5751_v14 }
  0x5a   :  { %v2002_v21 = vcombine.low %v1994_v60, %v2001_v11  ;;  %v2036_v22 = vcombine.low %v2027_v12, %v2034_v13  ;;  %v1164_v23 = vrot.slane %v1150_v15, %v5751_v14  ;;  %v2052_v24 = vcombine.low %v1118_v7, %v1119_v0  ;;  %v5385_v60 = vld.sshfl [vmem:[%s6868_s1 + $0xb4] sm:$0x13 pattern:$0x75316420] }
  0x5b   :  { %v2043_v26 = vrot.slane %v2035_v16, %v5751_v14  ;;  %v1165_v27 = vcombine.high %v1157_v19, %v1157_v19  ;;  %v2053_v28 = vcombine.low %v1134_v9, %v1141_v17  ;;  %v2054_v29 = vcombine.low %v1142_v18, %v1157_v19  ;;  %v5386_v12 = vld.sshfl [vmem:[%s6868_s1 + $0xb8] sm:$0x13 pattern:$0x75316420] }
  0x5c   :  { %5522 = vmatprep.mubr.msk.bf16.mxu1 %vm2287_vm2, %v2002_v21  ;;  %v2050_v30 = vrot.slane %v2036_v22, %v5751_v14  ;;  %v2062_v31 = vrot.slane %v2052_v24, %v5751_v14  ;;  %v1173_v33 = vcombine.high %v5380_v20, %v5380_v20  ;;  %v1180_v34 = vrot.slane %v5380_v20, %v5751_v14  ;;  %v5387_v20 = vld.sshfl [vmem:[%s6868_s1 + $0xbc] sm:$0x13 pattern:$0x75316420] }
  0x5d   :  { %v2055_v35 = vcombine.low %v1164_v23, %v1165_v27  ;;  %v2069_v36 = vrot.slane %v2053_v28, %v5751_v14  ;;  %v2076_v37 = vrot.slane %v2054_v29, %v5751_v14  ;;  %v1196_v38 = vcombine.high %v5381_v25, %v5381_v25 }
  0x5e   :  { %v2051_v39 = vcombine.low %v2043_v26, %v2050_v30  ;;  %v1187_v40 = vrot.slane %v1173_v33, %v5751_v14  ;;  %v1188_v41 = vcombine.high %v1180_v34, %v1180_v34  ;;  %v1203_v42 = vrot.slane %v5381_v25, %v5751_v14 }
  0x5f   :  { %v2083_v44 = vrot.slane %v2055_v35, %v5751_v14  ;;  %v2084_v45 = vcombine.low %v2062_v31, %v2069_v36  ;;  %v1210_v46 = vrot.slane %v1196_v38, %v5751_v14  ;;  %v1219_v47 = vcombine.high %v5382_v32, %v5382_v32  ;;  %v5599_v35 = vld [vmem:[%s6870_s0] sm:$0xff]  }
  0x60   :  { %5523 = vmatmul.mubr.msk.bf16.gmra.mxu1 %vm2287_vm2, %v2051_v39  ;;  %v1211_v48 = vcombine.high %v1203_v42, %v1203_v42  ;;  %v1226_v49 = vrot.slane %v5382_v32, %v5751_v14  ;;  %v2101_v50 = vcombine.low %v1180_v34, %v1187_v40  ;;  %v2102_v51 = vcombine.low %v1188_v41, %v1203_v42 }
  0x61   :  { %v2085_v52 = vcombine.low %v2076_v37, %v2083_v44  ;;  %v2092_v53 = vrot.slane %v2084_v45, %v5751_v14  ;;  %v1233_v54 = vrot.slane %v1219_v47, %v5751_v14  ;;  %v1242_v56 = vcombine.high %v5383_v43, %v5383_v43  ;;  %5483 = vmatmul.mubr.msk.bf16.vlgmr.msra.gmra.mxu0 %vm74_vm3, %v5599_v35 }
  0x62   :  { %v2103_v57 = vcombine.low %v1210_v46, %v1211_v48  ;;  %v2111_v58 = vrot.slane %v2101_v50, %v5751_v14  ;;  %v2118_v59 = vrot.slane %v2102_v51, %v5751_v14  ;;  %v1234_v61 = vcombine.high %v1226_v49, %v1226_v49  ;;  %5486 = vmatprep.mubr.msk.bf16.mxu0 %vm5656_vm1, %v5655_v10 }
  0x63   :  { %v2099_v62 = vrot.slane %v2085_v52, %v5751_v14  ;;  %v2104_v63 = vcombine.low %v1226_v49, %v1233_v54  ;;  %v1249_v0 = vrot.slane %v5383_v43, %v5751_v14  ;;  %v1256_v1 = vrot.slane %v1242_v56, %v5751_v14 }
  0x64   :  { %v2125_v2 = vrot.slane %v2103_v57, %v5751_v14  ;;  %v2133_v3 = vcombine.low %v2111_v58, %v2118_v59  ;;  %v1265_v4 = vcombine.high %v5384_v55, %v5384_v55  ;;  %v1272_v6 = vrot.slane %v5384_v55, %v5751_v14  ;;  %v5600_v55 = vld [vmem:[%s6870_s0 + $0x8] sm:$0xff]  }
  0x65   :  { %v2100_v7 = vcombine.low %v2092_v53, %v2099_v62  ;;  %v2132_v8 = vrot.slane %v2104_v63, %v5751_v14  ;;  %v1257_v9 = vcombine.high %v1249_v0, %v1249_v0  ;;  %v1295_v11 = vrot.slane %v5385_v60, %v5751_v14 }
  0x66   :  { %v2141_v13 = vrot.slane %v2133_v3, %v5751_v14  ;;  %v1279_v15 = vrot.slane %v1265_v4, %v5751_v14  ;;  %v1280_v16 = vcombine.high %v1272_v6, %v1272_v6  ;;  %v2150_v17 = vcombine.low %v1234_v61, %v1249_v0  ;;  %v5339_v0 = vld [vmem:[%s6871_s4] ss:$0 sm:$0xff] }
  0x67   :  { %5526 = vmatprep.mubr.msk.bf16.mxu1 %vm2287_vm2, %v2100_v7  ;;  %v2134_v18 = vcombine.low %v2125_v2, %v2132_v8  ;;  %v2151_v19 = vcombine.low %v1256_v1, %v1257_v9  ;;  %v1288_v21 = vcombine.high %v5385_v60, %v5385_v60  ;;  %v1303_v22 = vcombine.high %v1295_v11, %v1295_v11  ;;  %v5601_v60 = vld [vmem:[%s6870_s0 + $0x10] sm:$0xff]   ;;  %s5658_s0 = smov 8  }
  0x68   :  { %v2152_v23 = vcombine.low %v1272_v6, %v1279_v15  ;;  %v2153_v24 = vcombine.low %v1280_v16, %v1295_v11  ;;  %v2160_v25 = vrot.slane %v2150_v17, %v5751_v14  ;;  %v1311_v26 = vcombine.high %v5386_v12, %v5386_v12 }
  0x69   :  { %v2148_v27 = vrot.slane %v2134_v18, %v5751_v14  ;;  %v2167_v28 = vrot.slane %v2151_v19, %v5751_v14  ;;  %v1302_v29 = vrot.slane %v1288_v21, %v5751_v14  ;;  %v1318_v30 = vrot.slane %v5386_v12, %v5751_v14  ;;  %5487 = vmatmul.mubr.msk.bf16.gmra.mxu0 %vm74_vm3, %v5600_v55 }
  0x6a   :  { %v2174_v31 = vrot.slane %v2152_v23, %v5751_v14  ;;  %v2181_v32 = vrot.slane %v2153_v24, %v5751_v14  ;;  %v1325_v33 = vrot.slane %v1311_v26, %v5751_v14  ;;  %v1334_v34 = vcombine.high %v5387_v20, %v5387_v20  ;;  %5490 = vmatprep.mubr.msk.bf16.mxu0 %vm5656_vm1, %v5655_v10 }
  0x6b   :  { %v2149_v36 = vcombine.low %v2141_v13, %v2148_v27  ;;  %v2182_v37 = vcombine.low %v2160_v25, %v2167_v28  ;;  %v1326_v38 = vcombine.high %v1318_v30, %v1318_v30  ;;  %v1341_v39 = vrot.slane %v5387_v20, %v5751_v14 }
  0x6c   :  { %v2183_v40 = vcombine.low %v2174_v31, %v2181_v32  ;;  %v1348_v41 = vrot.slane %v1334_v34, %v5751_v14  ;;  %v2199_v42 = vcombine.low %v1302_v29, %v1303_v22  ;;  %v2200_v43 = vcombine.low %v1318_v30, %v1325_v33 }
  0x6d   :  { %5527 = vmatmul.mubr.msk.bf16.gmra.mxu1 %vm2287_vm2, %v2149_v36  ;;  %v2190_v44 = vrot.slane %v2182_v37, %v5751_v14  ;;  %v1349_v45 = vcombine.high %v1341_v39, %v1341_v39  ;;  %v2201_v46 = vcombine.low %v1326_v38, %v1341_v39  ;;  %v1350_v1 = vcombine.high %v5339_v0, %v5339_v0 }
  0x6e   :  { %v2197_v47 = vrot.slane %v2183_v40, %v5751_v14  ;;  %v2209_v48 = vrot.slane %v2199_v42, %v5751_v14  ;;  %v2216_v49 = vrot.slane %v2200_v43, %v5751_v14 }
  0x6f   :  { %v2202_v50 = vcombine.low %v1348_v41, %v1349_v45  ;;  %v2223_v51 = vrot.slane %v2201_v46, %v5751_v14 }
  0x70   :  { %v2198_v52 = vcombine.low %v2190_v44, %v2197_v47  ;;  %v2231_v53 = vcombine.low %v2209_v48, %v2216_v49 }
  0x71   :  { %v2230_v54 = vrot.slane %v2202_v50, %v5751_v14  ;;  %5491 = vmatmul.mubr.msk.bf16.gmra.mxu0 %vm74_vm3, %v5601_v60 }
  0x72   :  { %5530 = vmatprep.mubr.msk.bf16.mxu1 %vm2287_vm2, %v2198_v52  ;;  %v2239_v57 = vrot.slane %v2231_v53, %v5751_v14  ;;  %5536 = vmatprep.mubr.msk.bf16.mxu0 %vm5656_vm1, %v5655_v10 }
  0x73   :  { %v2232_v56 = vcombine.low %v2223_v51, %v2230_v54 }
  0x75   :  { %v2246_v58 = vrot.slane %v2232_v56, %v5751_v14  ;;  %v5657_v14 = vmov 1983009808  }
  0x76   :  { %v1352_v61 = vunpack.c.l.s4 %v5657_v14 }
  0x77   :  { %v2247_v59 = vcombine.low %v2239_v57, %v2246_v58 }
  0x78   :  { %v1353_v62 = vunpack.c.0.s8 %v1352_v61 }
  0x79   :  { %5531 = vmatmul.mubr.msk.bf16.gmra.mxu1 %vm2287_vm2, %v2247_v59 }
  0x7a   :  { %5578 = vmatprep.mubr.msk.bf16.mxu1 %vm5656_vm1, %v5655_v10  ;;  %v6135_v63 = vsub.s32 %v1353_v62, %v5735_v5 }
  0x7c   :  { %v1357_v2 = vrot.slane %v5339_v0, %v6135_v63  ;;  %v1364_v3 = vrot.slane %v1350_v1, %v6135_v63 }
  0x7e   :  { %v1365_v4 = vcombine.high %v1357_v2, %v1357_v2  ;;  %v2258_v6 = vcombine.low %v1364_v3, %v1357_v2 }
  0x80   :  { %v2274_v7 = vcombine.low %v1365_v4, %v1364_v3  ;;  %v2257_v8 = vcombine.low %v1357_v2, %v1365_v4  ;;  %v2272_v9 = vrot.slane %v2258_v6, %v6135_v63 }
  0x82   :  { %v2281_v11 = vrot.slane %v2274_v7, %v6135_v63  ;;  %v2265_v5 = vrot.slane %v2257_v8, %v6135_v63 }
  0x84   :  { %v6145_v12 = vcombine.low %v2272_v9, %v2281_v11  ;;  %v6147_v13 = vcombine.low %v2265_v5, %v2272_v9  ;;  %v6153_v25 = vcombine.low %v2281_v11, %v2265_v5 }
  0xd9   :  { %v5500_v15 = vpop.f32.mrf.mxu1 }
  0xda   :  { %v2389_v16 = vadd.f32 %v5500_v15, %v6145_v12 }
  0xdb   :  { %v2380_v17 = vpop.f32.mrf.mxu1 }
  0xdc   :  { %v2593_v18 = vcombine.high %v2389_v16, %v2389_v16  ;;  %v2600_v19 = vrot.slane %v2389_v16, %v6135_v63  ;;  %v2381_v20 = vadd.f32 %v2380_v17, %v6147_v13 }
  0xdd   :  { %v5501_v21 = vpop.f32.mrf.mxu1 }
  0xde   :  { %v2607_v22 = vrot.slane %v2593_v18, %v6135_v63  ;;  %v2608_v23 = vcombine.high %v2600_v19, %v2600_v19  ;;  %v2559_v24 = vcombine.high %v2381_v20, %v2381_v20  ;;  %v2566_v26 = vrot.slane %v2381_v20, %v6135_v63 }
  0xdf   :  { %v2392_v27 = vadd.f32 %v5501_v21, %v6147_v13  ;;  %v2383_v28 = vpop.f32.mrf.mxu1  ;;  %v3323_v30 = vmax.f32 %v2600_v19, 0.0 }
  0xe0   :  { %v2609_v29 = vcombine.high %v2607_v22, %v2607_v22  ;;  %v3324_v31 = vmax.f32 %v2608_v23, 0.0  ;;  %v3325_v32 = vmax.f32 %v2607_v22, 0.0  ;;  %v2573_v33 = vrot.slane %v2559_v24, %v6135_v63 }
  0xe1   :  { %v2574_v34 = vcombine.high %v2566_v26, %v2566_v26  ;;  %v3315_v35 = vmax.f32 %v2566_v26, 0.0  ;;  %v2610_v36 = vcombine.high %v2392_v27, %v2392_v27  ;;  %v2617_v39 = vrot.slane %v2392_v27, %v6135_v63 }
  0xe2   :  { %v3326_v37 = vmax.f32 %v2609_v29, 0.0  ;;  %v3651_v38 = vcombine.low %v3324_v31, %v3325_v32  ;;  %v2384_v40 = vadd.f32 %v2383_v28, %v6153_v25  ;;  %v2575_v41 = vcombine.high %v2573_v33, %v2573_v33 }
  0xe3   :  { %v3316_v42 = vmax.f32 %v2574_v34, 0.0  ;;  %v3317_v43 = vmax.f32 %v2573_v33, 0.0  ;;  %v2624_v44 = vrot.slane %v2610_v36, %v6135_v63  ;;  %v2625_v47 = vcombine.high %v2617_v39, %v2617_v39 }
  0xe4   :  { %v3658_v45 = vrot.slane %v3651_v38, %v6135_v63  ;;  %v3665_v46 = vrot.slane %v3326_v37, %v6135_v63  ;;  %v3649_v48 = vrot.slane %v3323_v30, %v6135_v63  ;;  %v3318_v49 = vmax.f32 %v2575_v41, 0.0 }
  0xe5   :  { %v3603_v50 = vcombine.low %v3315_v35, %v3316_v42  ;;  %v3327_v51 = vmax.f32 %v2617_v39, 0.0  ;;  %v3328_v53 = vmax.f32 %v2625_v47, 0.0  ;;  %v3329_v54 = vmax.f32 %v2624_v44, 0.0 }
  0xe6   :  { %v3666_v52 = vcombine.low %v3658_v45, %v3665_v46  ;;  %v2576_v55 = vcombine.high %v2384_v40, %v2384_v40  ;;  %v5504_v56 = vpop.f32.mrf.mxu1  ;;  %v3617_v58 = vrot.slane %v3317_v43, %v6135_v63  ;;  %v2583_v59 = vrot.slane %v2384_v40, %v6135_v63 }
  0xe7   :  { %v3610_v57 = vrot.slane %v3603_v50, %v6135_v63  ;;  %v2405_v60 = vadd.f32 %v5504_v56, %v6147_v13  ;;  %v2626_v61 = vcombine.high %v2624_v44, %v2624_v44  ;;  %v3667_v62 = vcombine.low %v3327_v51, %v3328_v53 }
  0xe8   :  { %v4441_v14 = vsel %vm4419_vm4, %v3666_v52, -inf  ;;  %v2590_v0 = vrot.slane %v2576_v55, %v6135_v63  ;;  %v2591_v3 = vcombine.high %v2583_v59, %v2583_v59  ;;  %v3319_v4 = vmax.f32 %v2583_v59, 0.0  ;;  %v2396_v30 = vpop.f32.mrf.mxu1 }
  0xe9   :  { %v4442_v1 = vrot.slane %v4441_v14, 4  ;;  %v3618_v2 = vcombine.low %v3610_v57, %v3617_v58  ;;  %v3674_v6 = vrot.slane %v3667_v62, %v6135_v63  ;;  %v3681_v7 = vrot.slane %v3329_v54, %v6135_v63 }
  0xea   :  { %v2592_v8 = vcombine.high %v2590_v0, %v2590_v0  ;;  %v2661_v9 = vcombine.high %v2405_v60, %v2405_v60  ;;  %v3320_v5 = vmax.f32 %v2591_v3, 0.0  ;;  %v3321_v15 = vmax.f32 %v2590_v0, 0.0  ;;  %v5505_v52 = vpop.f32.mrf.mxu1 }
  0xeb   :  { %v4420_v11 = vsel %vm4419_vm4, %v3618_v2, -inf  ;;  %v3619_v16 = vcombine.low %v3318_v49, %v3319_v4  ;;  %v3682_v18 = vcombine.low %v3674_v6, %v3681_v7  ;;  %v2668_v20 = vrot.slane %v2405_v60, %v6135_v63 }
  0xec   :  { %v4421_v17 = vrot.slane %v4420_v11, 4  ;;  %v3322_v19 = vmax.f32 %v2592_v8, 0.0  ;;  %v6174_v21 = vmax.f32 %v4441_v14, %v4442_v1  ;;  %v3633_v23 = vrot.slane %v3320_v5, %v6135_v63 }
  0xed   :  { %v3626_v22 = vrot.slane %v3619_v16, %v6135_v63  ;;  %v2675_v24 = vrot.slane %v2661_v9, %v6135_v63  ;;  %v4448_v27 = vsel %vm4419_vm4, %v3682_v18, -inf  ;;  %v2676_v29 = vcombine.high %v2668_v20, %v2668_v20  ;;  %v2399_v9 = vpop.f32.mrf.mxu1 }
  0xee   :  { %v4422_v26 = vmax.f32 %v4420_v11, %v4421_v17  ;;  %v3635_v28 = vcombine.low %v3321_v15, %v3322_v19  ;;  %v4449_v31 = vrot.slane %v4448_v27, 4  ;;  %v3339_v34 = vmax.f32 %v2668_v20, 0.0 }
  0xef   :  { %v3634_v32 = vcombine.low %v3626_v22, %v3633_v23  ;;  %v2677_v33 = vcombine.high %v2675_v24, %v2675_v24  ;;  %v3340_v37 = vmax.f32 %v2676_v29, 0.0  ;;  %v3341_v38 = vmax.f32 %v2675_v24, 0.0 }
  0xf0   :  { %v4423_v35 = vrot.slane %v4422_v26, 2  ;;  %v3642_v36 = vrot.slane %v3635_v28, %v6135_v63  ;;  %v4444_v39 = vrot.slane %v6174_v21, 2  ;;  %v3330_v40 = vmax.f32 %v2626_v61, 0.0 }
  0xf1   :  { %v4427_v41 = vsel %vm4419_vm4, %v3634_v32, -inf  ;;  %v2397_v42 = vadd.f32 %v2396_v30, %v6153_v25  ;;  %v3731_v46 = vcombine.low %v3339_v34, %v3340_v37  ;;  %v6184_v47 = vmax.f32 %v4448_v27, %v4449_v31 }
  0xf2   :  { %v4424_v43 = vmax.f32 %v4422_v26, %v4423_v35  ;;  %v3650_v44 = vcombine.low %v3642_v36, %v3649_v48  ;;  %v4428_v45 = vrot.slane %v4427_v41, 4  ;;  %v3342_v49 = vmax.f32 %v2677_v33, 0.0  ;;  %v5508_v35 = vpop.f32.mrf.mxu1 }
  0xf3   :  { %v2627_v50 = vcombine.high %v2397_v42, %v2397_v42  ;;  %v2634_v51 = vrot.slane %v2397_v42, %v6135_v63  ;;  %v3738_v55 = vrot.slane %v3731_v46, %v6135_v63  ;;  %v3745_v56 = vrot.slane %v3341_v38, %v6135_v63 }
  0xf4   :  { %v4429_v53 = vmax.f32 %v4427_v41, %v4428_v45  ;;  %v4434_v54 = vsel %vm4419_vm4, %v3650_v44, -inf  ;;  %v4425_v60 = vrot.slane %v4424_v43, 1  ;;  %v2408_v62 = vadd.f32 %v5505_v52, %v6153_v25 }
  0xf5   :  { %v4435_v57 = vrot.slane %v4434_v54, 4  ;;  %v2641_v58 = vrot.slane %v2627_v50, %v6135_v63  ;;  %v2642_v48 = vcombine.high %v2634_v51, %v2634_v51  ;;  %v3331_v59 = vmax.f32 %v2634_v51, 0.0 }
  0xf6   :  { %v4430_v14 = vrot.slane %v4429_v53, 2  ;;  %v3746_v61 = vcombine.low %v3738_v55, %v3745_v56  ;;  %v4451_v0 = vrot.slane %v6184_v47, 2  ;;  %v2678_v8 = vcombine.high %v2408_v62, %v2408_v62  ;;  %v2412_v56 = vpop.f32.mrf.mxu1 }
  0xf7   :  { %v4436_v1 = vmax.f32 %v4434_v54, %v4435_v57  ;;  %v2643_v2 = vcombine.high %v2641_v58, %v2641_v58  ;;  %v3332_v3 = vmax.f32 %v2642_v48, 0.0  ;;  %v3683_v7 = vcombine.low %v3330_v40, %v3331_v59 }
  0xf8   :  { %v4431_v4 = vmax.f32 %v4429_v53, %v4430_v14  ;;  %v4476_v6 = vsel %vm4419_vm4, %v3746_v61, -inf  ;;  %v6195_v17 = vmax.f32 %v4424_v43, %v4425_v60  ;;  %v2685_v19 = vrot.slane %v2408_v62, %v6135_v63 }
  0xf9   :  { %v4437_v11 = vrot.slane %v4436_v1, 2  ;;  %v4477_v5 = vrot.slane %v4476_v6, 4  ;;  %v3334_v15 = vmax.f32 %v2643_v2, 0.0  ;;  %v3697_v16 = vrot.slane %v3332_v3, %v6135_v63 }
  0xfa   :  { %v3690_v18 = vrot.slane %v3683_v7, %v6135_v63  ;;  %v2692_v20 = vrot.slane %v2678_v8, %v6135_v63  ;;  %v4432_v22 = vrot.slane %v4431_v4, 1  ;;  %v3333_v24 = vmax.f32 %v2641_v58, 0.0 }
  0xfb   :  { %v4478_v23 = vmax.f32 %v4476_v6, %v4477_v5  ;;  %v2400_v26 = vadd.f32 %v2399_v9, %v6145_v12  ;;  %v6201_v27 = vmax.f32 %v4436_v1, %v4437_v11  ;;  %v2693_v29 = vcombine.high %v2685_v19, %v2685_v19 }
  0xfc   :  { %v3698_v28 = vcombine.low %v3690_v18, %v3697_v16  ;;  %v2694_v30 = vcombine.high %v2692_v20, %v2692_v20  ;;  %v3699_v32 = vcombine.low %v3333_v24, %v3334_v15  ;;  %v3343_v33 = vmax.f32 %v2685_v19, 0.0  ;;  %v5509_v16 = vpop.f32.mrf.mxu1 }
  0xfd   :  { %v4479_v31 = vrot.slane %v4478_v23, 2  ;;  %v2644_v34 = vcombine.high %v2400_v26, %v2400_v26  ;;  %v3344_v37 = vmax.f32 %v2693_v29, 0.0  ;;  %v2651_v40 = vrot.slane %v2400_v26, %v6135_v63 }
  0xfe   :  { %v4455_v36 = vsel %vm4419_vm4, %v3698_v28, -inf  ;;  %v3346_v38 = vmax.f32 %v2694_v30, 0.0  ;;  %v3345_v42 = vmax.f32 %v2692_v20, 0.0  ;;  %v3747_v43 = vcombine.low %v3342_v49, %v3343_v33 }
  0xff   :  { %v4480_v41 = vmax.f32 %v4478_v23, %v4479_v31  ;;  %v2658_v44 = vrot.slane %v2644_v34, %v6135_v63  ;;  %v4456_v45 = vrot.slane %v4455_v36, 4  ;;  %v3761_v46 = vrot.slane %v3344_v37, %v6135_v63 }
 0x100   :  { %v2659_v50 = vcombine.high %v2651_v40, %v2651_v40  ;;  %v3335_v51 = vmax.f32 %v2651_v40, 0.0  ;;  %v6207_v52 = vmax.f32 %v4431_v4, %v4432_v22  ;;  %v3754_v53 = vrot.slane %v3747_v43, %v6135_v63 }
 0x101   :  { %v3763_v54 = vcombine.low %v3345_v42, %v3346_v38  ;;  %v2660_v55 = vcombine.high %v2658_v44, %v2658_v44  ;;  %v3337_v58 = vmax.f32 %v2658_v44, 0.0  ;;  %v3706_v48 = vrot.slane %v3699_v32, %v6135_v63  ;;  %v2415_v42 = vpop.f32.mrf.mxu1 }
 0x102   :  { %v3336_v57 = vmax.f32 %v2659_v50, 0.0  ;;  %v3713_v49 = vrot.slane %v3335_v51, %v6135_v63  ;;  %v4481_v59 = vrot.slane %v4480_v41, 1  ;;  %v3762_v60 = vcombine.low %v3754_v53, %v3761_v46 }
 0x103   :  { %v3338_v14 = vmax.f32 %v2660_v55, 0.0  ;;  %v2421_v61 = vadd.f32 %v5508_v35, %v6153_v25  ;;  %v6213_v62 = vmax.f32 %v4455_v36, %v4456_v45  ;;  %v2413_v3 = vadd.f32 %v2412_v56, %v6145_v12 }
 0x104   :  { %v3714_v1 = vcombine.low %v3706_v48, %v3713_v49  ;;  %v3715_v2 = vcombine.low %v3336_v57, %v3337_v58  ;;  %v4483_v4 = vsel %vm4419_vm4, %v3762_v60, -inf  ;;  %v6225_v18 = vmax.f32 %v4480_v41, %v4481_v59 }
 0x105   :  { %v3729_v6 = vrot.slane %v3338_v14, %v6135_v63  ;;  %v2729_v7 = vcombine.high %v2421_v61, %v2421_v61  ;;  %v6219_v8 = vrot.slane %v2421_v61, %v6135_v63  ;;  %v4484_v9 = vrot.slane %v4483_v4, 4  ;;  %v5512_v14 = vpop.f32.mrf.mxu1 }
 0x106   :  { %v3722_v11 = vrot.slane %v3715_v2, %v6135_v63  ;;  %v6223_v5 = vsel %vm4419_vm4, %v3714_v1, -inf  ;;  %v2695_v15 = vcombine.high %v2413_v3, %v2413_v3  ;;  %v3770_v22 = vrot.slane %v3763_v54, %v6135_v63 }
 0x107   :  { %v4463_v19 = vrot.slane %v6223_v5, 4  ;;  %v2743_v20 = vrot.slane %v2729_v7, %v6135_v63  ;;  %v4485_v23 = vmax.f32 %v4483_v4, %v4484_v9  ;;  %v2744_v24 = vcombine.high %v6219_v8, %v6219_v8 }
 0x108   :  { %v2702_v26 = vrot.slane %v2413_v3, %v6135_v63  ;;  %v2709_v28 = vrot.slane %v2695_v15, %v6135_v63  ;;  %v6234_v29 = vcombine.low %v3722_v11, %v3729_v6  ;;  %v3355_v31 = vmax.f32 %v6219_v8, 0.0 }
 0x109   :  { %v2745_v30 = vcombine.high %v2743_v20, %v2743_v20  ;;  %v2424_v32 = vadd.f32 %v5509_v16, %v6145_v12  ;;  %v4486_v33 = vrot.slane %v4485_v23, 2  ;;  %v3357_v37 = vmax.f32 %v2743_v20, 0.0 }
 0x10a   :  { %v2710_v34 = vcombine.high %v2702_v26, %v2702_v26  ;;  %v2711_v35 = vcombine.high %v2709_v28, %v2709_v28  ;;  %v3347_v36 = vmax.f32 %v2702_v26, 0.0  ;;  %v3349_v40 = vmax.f32 %v2709_v28, 0.0  ;;  %v2428_v28 = vpop.f32.mrf.mxu1 }
 0x10b   :  { %v3358_v38 = vmax.f32 %v2745_v30, 0.0  ;;  %v2746_v41 = vcombine.high %v2424_v32, %v2424_v32  ;;  %v6238_v43 = vmax.f32 %v2744_v24, 0.0  ;;  %v4487_v50 = vmax.f32 %v4485_v23, %v4486_v33 }
 0x10c   :  { %v3348_v44 = vmax.f32 %v2710_v34, 0.0  ;;  %v3350_v45 = vmax.f32 %v2711_v35, 0.0  ;;  %v3777_v46 = vrot.slane %v3347_v36, %v6135_v63  ;;  %v2753_v53 = vrot.slane %v2424_v32, %v6135_v63 }
 0x10d   :  { %v3827_v51 = vcombine.low %v3357_v37, %v3358_v38  ;;  %v2760_v54 = vrot.slane %v2746_v41, %v6135_v63  ;;  %v2416_v58 = vadd.f32 %v2415_v42, %v6147_v13  ;;  %v3825_v61 = vrot.slane %v6238_v43, %v6135_v63 }
 0x10e   :  { %v3778_v55 = vcombine.low %v3770_v22, %v3777_v46  ;;  %v3779_v56 = vcombine.low %v3348_v44, %v3349_v40  ;;  %v3793_v57 = vrot.slane %v3350_v45, %v6135_v63  ;;  %v2761_v48 = vcombine.high %v2753_v53, %v2753_v53 }
 0x10f   :  { %v2762_v49 = vcombine.high %v2760_v54, %v2760_v54  ;;  %v3359_v59 = vmax.f32 %v2753_v53, 0.0  ;;  %v3361_v60 = vmax.f32 %v2760_v54, 0.0  ;;  %v3834_v3 = vrot.slane %v3827_v51, %v6135_v63  ;;  %v5513_v53 = vpop.f32.mrf.mxu1 }
 0x110   :  { %v3786_v1 = vrot.slane %v3779_v56, %v6135_v63  ;;  %v4490_v2 = vsel %vm4419_vm4, %v3778_v55, -inf  ;;  %v3360_v6 = vmax.f32 %v2761_v48, 0.0  ;;  %v4488_v11 = vrot.slane %v4487_v50, 1 }
 0x111   :  { %v4491_v4 = vrot.slane %v4490_v2, 4  ;;  %v3362_v7 = vmax.f32 %v2762_v49, 0.0  ;;  %v3841_v9 = vrot.slane %v3359_v59, %v6135_v63  ;;  %v2712_v16 = vcombine.high %v2416_v58, %v2416_v58 }
 0x112   :  { %v3794_v15 = vcombine.low %v3786_v1, %v3793_v57  ;;  %v2719_v20 = vrot.slane %v2416_v58, %v6135_v63  ;;  %v3843_v24 = vcombine.low %v3360_v6, %v3361_v60  ;;  %v2437_v26 = vadd.f32 %v5512_v14, %v6145_v12 }
 0x113   :  { %v4492_v22 = vmax.f32 %v4490_v2, %v4491_v4  ;;  %v3842_v23 = vcombine.low %v3834_v3, %v3841_v9  ;;  %v3857_v32 = vrot.slane %v3362_v7, %v6135_v63  ;;  %v2726_v33 = vrot.slane %v2712_v16, %v6135_v63 }
 0x114   :  { %v4497_v30 = vsel %vm4419_vm4, %v3794_v15, -inf  ;;  %v2727_v34 = vcombine.high %v2719_v20, %v2719_v20  ;;  %v3850_v37 = vrot.slane %v3843_v24, %v6135_v63  ;;  %v3351_v41 = vmax.f32 %v2719_v20, 0.0 }
 0x115   :  { %v4493_v35 = vrot.slane %v4492_v22, 2  ;;  %v4498_v36 = vrot.slane %v4497_v30, 4  ;;  %v4518_v38 = vsel %vm4419_vm4, %v3842_v23, -inf  ;;  %v2728_v40 = vcombine.high %v2726_v33, %v2726_v33 }
 0x116   :  { %v3352_v42 = vmax.f32 %v2727_v34, 0.0  ;;  %v3353_v43 = vmax.f32 %v2726_v33, 0.0  ;;  %v4519_v46 = vrot.slane %v4518_v38, 4  ;;  %v2797_v51 = vcombine.high %v2437_v26, %v2437_v26 }
 0x117   :  { %v4494_v44 = vmax.f32 %v4492_v22, %v4493_v35  ;;  %v4499_v45 = vmax.f32 %v4497_v30, %v4498_v36  ;;  %v6258_v54 = vmax.f32 %v4487_v50, %v4488_v11  ;;  %v6260_v55 = vcombine.low %v3850_v37, %v3857_v32 }
 0x118   :  { %v3354_v56 = vmax.f32 %v2728_v40, 0.0  ;;  %v3795_v57 = vcombine.low %v3351_v41, %v3352_v42  ;;  %v3809_v48 = vrot.slane %v3353_v43, %v6135_v63  ;;  %v2804_v49 = vrot.slane %v2437_v26, %v6135_v63 }
 0x119   :  { %v4495_v58 = vrot.slane %v4494_v44, 1  ;;  %v2811_v59 = vrot.slane %v2797_v51, %v6135_v63  ;;  %v2429_v1 = vadd.f32 %v2428_v28, %v6147_v13  ;;  %v2440_v50 = vadd.f32 %v5513_v53, %v6147_v13  ;;  %v2431_v28 = vpop.f32.mrf.mxu1 }
 0x11a   :  { %v3802_v60 = vrot.slane %v3795_v57, %v6135_v63  ;;  %v3811_v14 = vcombine.low %v3354_v56, %v3355_v31  ;;  %v4500_v2 = vrot.slane %v4499_v45, 2  ;;  %v6270_v3 = vmax.f32 %v4518_v38, %v4519_v46 }
 0x11b   :  { %v2812_v4 = vcombine.high %v2804_v49, %v2804_v49  ;;  %v2813_v6 = vcombine.high %v2811_v59, %v2811_v59  ;;  %v6272_v7 = vmax.f32 %v4494_v44, %v4495_v58  ;;  %v3373_v15 = vmax.f32 %v2811_v59, 0.0  ;;  %v5516_v53 = vpop.f32.mrf.mxu1 }
 0x11c   :  { %v3810_v9 = vcombine.low %v3802_v60, %v3809_v48  ;;  %v3818_v11 = vrot.slane %v3811_v14, %v6135_v63  ;;  %v2763_v22 = vcombine.high %v2429_v1, %v2429_v1  ;;  %v2770_v8 = vrot.slane %v2429_v1, %v6135_v63 }
 0x11d   :  { %v3372_v16 = vmax.f32 %v2812_v4, 0.0  ;;  %v3374_v20 = vmax.f32 %v2813_v6, 0.0  ;;  %v3371_v24 = vmax.f32 %v2804_v49, 0.0  ;;  %v2814_v26 = vcombine.high %v2440_v50, %v2440_v50 }
 0x11e   :  { %v3826_v31 = vcombine.low %v3818_v11, %v3825_v61  ;;  %v4504_v23 = vsel %vm4419_vm4, %v3810_v9, -inf  ;;  %v2777_v34 = vrot.slane %v2763_v22, %v6135_v63  ;;  %v6279_v35 = vmax.f32 %v4499_v45, %v4500_v2 }
 0x11f   :  { %v4505_v30 = vrot.slane %v4504_v23, 4  ;;  %v3907_v32 = vcombine.low %v3372_v16, %v3373_v15  ;;  %v3921_v33 = vrot.slane %v3374_v20, %v6135_v63  ;;  %v2778_v37 = vcombine.high %v2770_v8, %v2770_v8 }
 0x120   :  { %v6282_v36 = vsel %vm4419_vm4, %v3826_v31, -inf  ;;  %v2821_v38 = vrot.slane %v2440_v50, %v6135_v63  ;;  %v2779_v41 = vcombine.high %v2777_v34, %v2777_v34  ;;  %v3363_v42 = vmax.f32 %v2770_v8, 0.0 }
 0x121   :  { %v6285_v61 = vmax.f32 %v4504_v23, %v4505_v30  ;;  %v3914_v40 = vrot.slane %v3907_v32, %v6135_v63  ;;  %v3364_v43 = vmax.f32 %v2778_v37, 0.0  ;;  %v3365_v44 = vmax.f32 %v2777_v34, 0.0 }
 0x122   :  { %v2828_v46 = vrot.slane %v2814_v26, %v6135_v63  ;;  %v2829_v51 = vcombine.high %v2821_v38, %v2821_v38  ;;  %v4512_v56 = vrot.slane %v6282_v36, 4  ;;  %v6292_v57 = vrot.slane %v3371_v24, %v6135_v63 }
 0x123   :  { %v4507_v45 = vrot.slane %v6285_v61, 2  ;;  %v3922_v58 = vcombine.low %v3914_v40, %v3921_v33  ;;  %v3366_v48 = vmax.f32 %v2779_v41, 0.0  ;;  %v3859_v49 = vcombine.low %v3363_v42, %v3364_v43  ;;  %v2444_v33 = vpop.f32.mrf.mxu1 }
 0x124   :  { %v3375_v59 = vmax.f32 %v2821_v38, 0.0  ;;  %v3376_v60 = vmax.f32 %v2829_v51, 0.0  ;;  %v3377_v1 = vmax.f32 %v2828_v46, 0.0  ;;  %v2432_v50 = vadd.f32 %v2431_v28, %v6153_v25 }
 0x125   :  { %v4553_v14 = vsel %vm4419_vm4, %v3922_v58, -inf  ;;  %v2453_v2 = vadd.f32 %v5516_v53, %v6147_v13  ;;  %v3866_v4 = vrot.slane %v3859_v49, %v6135_v63  ;;  %v3873_v6 = vrot.slane %v3365_v44, %v6135_v63 }
 0x126   :  { %v2830_v9 = vcombine.high %v2828_v46, %v2828_v46  ;;  %v3923_v11 = vcombine.low %v3375_v59, %v3376_v60  ;;  %v4554_v15 = vrot.slane %v4553_v14, 4  ;;  %v2780_v16 = vcombine.high %v2432_v50, %v2432_v50 }
 0x127   :  { %v2787_v20 = vrot.slane %v2432_v50, %v6135_v63  ;;  %v2865_v22 = vcombine.high %v2453_v2, %v2453_v2  ;;  %v3874_v8 = vcombine.low %v3866_v4, %v3873_v6  ;;  %v3937_v23 = vrot.slane %v3377_v1, %v6135_v63  ;;  %v5517_v50 = vpop.f32.mrf.mxu1 }
 0x128   :  { %v3930_v31 = vrot.slane %v3923_v11, %v6135_v63  ;;  %v2872_v24 = vrot.slane %v2453_v2, %v6135_v63  ;;  %v2794_v26 = vrot.slane %v2780_v16, %v6135_v63  ;;  %v3378_v37 = vmax.f32 %v2830_v9, 0.0 }
 0x129   :  { %v2795_v28 = vcombine.high %v2787_v20, %v2787_v20  ;;  %v3367_v30 = vmax.f32 %v2787_v20, 0.0  ;;  %v2879_v32 = vrot.slane %v2865_v22, %v6135_v63  ;;  %v4532_v34 = vsel %vm4419_vm4, %v3874_v8, -inf }
 0x12a   :  { %v3938_v38 = vcombine.low %v3930_v31, %v3937_v23  ;;  %v2880_v40 = vcombine.high %v2872_v24, %v2872_v24  ;;  %v6306_v41 = vmax.f32 %v4553_v14, %v4554_v15  ;;  %v4533_v42 = vrot.slane %v4532_v34, 4 }
 0x12b   :  { %v2796_v43 = vcombine.high %v2794_v26, %v2794_v26  ;;  %v3368_v44 = vmax.f32 %v2795_v28, 0.0  ;;  %v3369_v51 = vmax.f32 %v2794_v26, 0.0  ;;  %v3875_v53 = vcombine.low %v3366_v48, %v3367_v30 }
 0x12c   :  { %v4560_v46 = vsel %vm4419_vm4, %v3938_v38, -inf  ;;  %v2881_v58 = vcombine.high %v2879_v32, %v2879_v32  ;;  %v4534_v49 = vmax.f32 %v4532_v34, %v4533_v42  ;;  %v3387_v4 = vmax.f32 %v2872_v24, 0.0 }
 0x12d   :  { %v4561_v59 = vrot.slane %v4560_v46, 4  ;;  %v3370_v60 = vmax.f32 %v2796_v43, 0.0  ;;  %v3889_v1 = vrot.slane %v3368_v44, %v6135_v63  ;;  %v3882_v2 = vrot.slane %v3875_v53, %v6135_v63 }
 0x12e   :  { %v3388_v6 = vmax.f32 %v2880_v40, 0.0  ;;  %v3389_v14 = vmax.f32 %v2879_v32, 0.0  ;;  %v4556_v9 = vrot.slane %v6306_v41, 2  ;;  %v4535_v11 = vrot.slane %v4534_v49, 2 }
 0x12f   :  { %v3891_v15 = vcombine.low %v3369_v51, %v3370_v60  ;;  %v2445_v16 = vadd.f32 %v2444_v33, %v6153_v25  ;;  %v3890_v20 = vcombine.low %v3882_v2, %v3889_v1  ;;  %v3390_v48 = vmax.f32 %v2881_v58, 0.0  ;;  %v2447_v60 = vpop.f32.mrf.mxu1 }
 0x130   :  { %v3987_v22 = vcombine.low %v3387_v4, %v3388_v6  ;;  %v2456_v8 = vadd.f32 %v5517_v50, %v6153_v25  ;;  %v6314_v31 = vmax.f32 %v4560_v46, %v4561_v59  ;;  %v4001_v26 = vrot.slane %v3389_v14, %v6135_v63 }
 0x131   :  { %v3898_v23 = vrot.slane %v3891_v15, %v6135_v63  ;;  %v2831_v24 = vcombine.high %v2445_v16, %v2445_v16  ;;  %v4536_v28 = vmax.f32 %v4534_v49, %v4535_v11  ;;  %v4539_v30 = vsel %vm4419_vm4, %v3890_v20, -inf }
 0x132   :  { %v3994_v32 = vrot.slane %v3987_v22, %v6135_v63  ;;  %v2838_v34 = vrot.slane %v2445_v16, %v6135_v63  ;;  %v4540_v38 = vrot.slane %v4539_v30, 4  ;;  %v2882_v42 = vcombine.high %v2456_v8, %v2456_v8 }
 0x133   :  { %v3906_v33 = vcombine.low %v3898_v23, %v6292_v57  ;;  %v2845_v40 = vrot.slane %v2831_v24, %v6135_v63  ;;  %v2889_v51 = vrot.slane %v2456_v8, %v6135_v63  ;;  %v4563_v53 = vrot.slane %v6314_v31, 2 }
 0x134   :  { %v4002_v43 = vcombine.low %v3994_v32, %v4001_v26  ;;  %v2846_v44 = vcombine.high %v2838_v34, %v2838_v34  ;;  %v3379_v46 = vmax.f32 %v2838_v34, 0.0  ;;  %v4541_v58 = vmax.f32 %v4539_v30, %v4540_v38  ;;  %v5520_v30 = vpop.f32.mrf.mxu1 }
 0x135   :  { %v4546_v49 = vsel %vm4419_vm4, %v3906_v33, -inf  ;;  %v2847_v59 = vcombine.high %v2845_v40, %v2845_v40  ;;  %v4537_v1 = vrot.slane %v4536_v28, 1  ;;  %v2896_v20 = vrot.slane %v2882_v42, %v6135_v63 }
 0x136   :  { %v4547_v50 = vrot.slane %v4546_v49, 4  ;;  %v4588_v57 = vsel %vm4419_vm4, %v4002_v43, -inf  ;;  %v3380_v2 = vmax.f32 %v2846_v44, 0.0  ;;  %v4542_v4 = vrot.slane %v4541_v58, 2 }
 0x137   :  { %v4589_v6 = vrot.slane %v4588_v57, 4  ;;  %v3382_v14 = vmax.f32 %v2847_v59, 0.0  ;;  %v3939_v11 = vcombine.low %v3378_v37, %v3379_v46  ;;  %v2897_v22 = vcombine.high %v2889_v51, %v2889_v51 }
 0x138   :  { %v4548_v15 = vmax.f32 %v4546_v49, %v4547_v50  ;;  %v3953_v16 = vrot.slane %v3380_v2, %v6135_v63  ;;  %v4543_v8 = vmax.f32 %v4541_v58, %v4542_v4  ;;  %v3381_v26 = vmax.f32 %v2845_v40, 0.0  ;;  %v2460_v4 = vpop.f32.mrf.mxu1 }
 0x139   :  { %v4590_v23 = vmax.f32 %v4588_v57, %v4589_v6  ;;  %v3946_v24 = vrot.slane %v3939_v11, %v6135_v63  ;;  %v2898_v34 = vcombine.high %v2896_v20, %v2896_v20  ;;  %v3391_v33 = vmax.f32 %v2889_v51, 0.0 }
 0x13a   :  { %v4549_v32 = vrot.slane %v4548_v15, 2  ;;  %v3392_v38 = vmax.f32 %v2897_v22, 0.0  ;;  %v6330_v43 = vmax.f32 %v4536_v28, %v4537_v1  ;;  %v4544_v44 = vrot.slane %v4543_v8, 1 }
 0x13b   :  { %v4591_v37 = vrot.slane %v4590_v23, 2  ;;  %v3954_v46 = vcombine.low %v3946_v24, %v3953_v16  ;;  %v3955_v49 = vcombine.low %v3381_v26, %v3382_v14  ;;  %v3394_v59 = vmax.f32 %v2898_v34, 0.0 }
 0x13c   :  { %v4003_v50 = vcombine.low %v3390_v48, %v3391_v33  ;;  %v4017_v42 = vrot.slane %v3392_v38, %v6135_v63  ;;  %v3393_v57 = vmax.f32 %v2896_v20, 0.0  ;;  %v2448_v2 = vadd.f32 %v2447_v60, %v6145_v12 }
 0x13d   :  { %v4592_v58 = vmax.f32 %v4590_v23, %v4591_v37  ;;  %v4567_v40 = vsel %vm4419_vm4, %v3954_v46, -inf  ;;  %v6335_v6 = vmax.f32 %v4543_v8, %v4544_v44  ;;  %v6337_v51 = vmax.f32 %v4548_v15, %v4549_v32 }
 0x13e   :  { %v4568_v28 = vrot.slane %v4567_v40, 4  ;;  %v4010_v1 = vrot.slane %v4003_v50, %v6135_v63  ;;  %v6340_v11 = vcombine.low %v3393_v57, %v3394_v59  ;;  %v2848_v14 = vcombine.high %v2448_v2, %v2448_v2 }
 0x13f   :  { %v2855_v48 = vrot.slane %v2448_v2, %v6135_v63  ;;  %v2469_v16 = vadd.f32 %v5520_v30, %v6153_v25  ;;  %v4593_v22 = vrot.slane %v4592_v58, 1  ;;  %v3962_v20 = vrot.slane %v3955_v49, %v6135_v63 }
 0x140   :  { %v4018_v23 = vcombine.low %v4010_v1, %v4017_v42  ;;  %v2461_v60 = vadd.f32 %v2460_v4, %v6145_v12  ;;  %v6346_v8 = vmax.f32 %v4567_v40, %v4568_v28  ;;  %v2862_v15 = vrot.slane %v2848_v14, %v6135_v63 }
 0x141   :  { %v2863_v26 = vcombine.high %v2855_v48, %v2855_v48  ;;  %v3383_v24 = vmax.f32 %v2855_v48, 0.0  ;;  %v2933_v34 = vcombine.high %v2469_v16, %v2469_v16  ;;  %v6351_v33 = vrot.slane %v2469_v16, %v6135_v63 }
 0x142   :  { %v4595_v32 = vsel %vm4419_vm4, %v4018_v23, -inf  ;;  %v2899_v38 = vcombine.high %v2461_v60, %v2461_v60  ;;  %v2864_v44 = vcombine.high %v2862_v15, %v2862_v15  ;;  %v3385_v46 = vmax.f32 %v2862_v15, 0.0 }
 0x143   :  { %v4596_v30 = vrot.slane %v4595_v32, 4  ;;  %v3384_v37 = vmax.f32 %v2863_v26, 0.0  ;;  %v3969_v49 = vrot.slane %v3383_v24, %v6135_v63  ;;  %v2947_v59 = vrot.slane %v2933_v34, %v6135_v63 }
 0x144   :  { %v2948_v50 = vcombine.high %v6351_v33, %v6351_v33  ;;  %v4026_v42 = vrot.slane %v6340_v11, %v6135_v63  ;;  %v3386_v57 = vmax.f32 %v2864_v44, 0.0  ;;  %v2906_v4 = vrot.slane %v2461_v60, %v6135_v63 }
 0x145   :  { %v4597_v40 = vmax.f32 %v4595_v32, %v4596_v30  ;;  %v3971_v2 = vcombine.low %v3384_v37, %v3385_v46  ;;  %v6360_v28 = vmax.f32 %v4592_v58, %v4593_v22  ;;  %v3970_v1 = vcombine.low %v3962_v20, %v3969_v49 }
 0x146   :  { %v2949_v14 = vcombine.high %v2947_v59, %v2947_v59  ;;  %v6362_v48 = vmax.f32 %v2948_v50, 0.0  ;;  %v3985_v15 = vrot.slane %v3386_v57, %v6135_v63  ;;  %v2913_v11 = vrot.slane %v2899_v38, %v6135_v63 }
 0x147   :  { %v4598_v16 = vrot.slane %v4597_v40, 2  ;;  %v3978_v23 = vrot.slane %v3971_v2, %v6135_v63  ;;  %v6368_v26 = vsel %vm4419_vm4, %v3970_v1, -inf  ;;  %v3403_v60 = vmax.f32 %v6351_v33, 0.0  ;;  %v5521_v1 = vpop.f32.mrf.mxu1 }
 0x148   :  { %v3405_v58 = vmax.f32 %v2947_v59, 0.0  ;;  %v2914_v22 = vcombine.high %v2906_v4, %v2906_v4  ;;  %v3406_v24 = vmax.f32 %v2949_v14, 0.0  ;;  %v4081_v32 = vrot.slane %v6362_v48, %v6135_v63 }
 0x149   :  { %v6371_v20 = vmax.f32 %v4597_v40, %v4598_v16  ;;  %v2915_v34 = vcombine.high %v2913_v11, %v2913_v11  ;;  %v6375_v30 = vcombine.low %v3978_v23, %v3985_v15  ;;  %v3395_v44 = vmax.f32 %v2906_v4, 0.0 }
 0x14a   :  { %v3396_v38 = vmax.f32 %v2914_v22, 0.0  ;;  %v3397_v37 = vmax.f32 %v2913_v11, 0.0  ;;  %v4575_v46 = vrot.slane %v6368_v26, 4  ;;  %v4439_v50 = vrot.slane %v6201_v27, 1 }
 0x14b   :  { %v3398_v49 = vmax.f32 %v2915_v34, 0.0  ;;  %v4445_v59 = vmax.f32 %v6174_v21, %v4444_v39  ;;  %v4033_v40 = vrot.slane %v3395_v44, %v6135_v63  ;;  %v4452_v2 = vmax.f32 %v6184_v47, %v4451_v0 }
 0x14c   :  { %v4035_v57 = vcombine.low %v3396_v38, %v3397_v37  ;;  %v4458_v4 = vrot.slane %v6213_v62, 2  ;;  %v4083_v14 = vcombine.low %v3405_v58, %v3406_v24  ;;  %v4440_v23 = vmax.f32 %v6201_v27, %v4439_v50  ;;  %v2463_v38 = vpop.f32.mrf.mxu1 }
 0x14d   :  { %v4049_v16 = vrot.slane %v3398_v49, %v6135_v63  ;;  %v4446_v15 = vrot.slane %v4445_v59, 1  ;;  %v4034_v11 = vcombine.low %v4026_v42, %v4033_v40  ;;  %v4453_v39 = vrot.slane %v4452_v2, 1 }
 0x14e   :  { %v4042_v21 = vrot.slane %v4035_v57, %v6135_v63  ;;  %v4459_v22 = vmax.f32 %v6213_v62, %v4458_v4  ;;  %v4464_v47 = vmax.f32 %v6223_v5, %v4463_v19  ;;  %v4469_v0 = vsel %vm4419_vm4, %v6234_v29, -inf  ;;  %v6400_v62 = vpop.f32.mrf.mxu0 }
 0x14f   :  { %v4447_v34 = vmax.f32 %v4445_v59, %v4446_v15  ;;  %v4805_v27 = vsel %vm4804_vm5, %v6207_v52, %v6195_v17  ;;  %v4602_v42 = vsel %vm4419_vm4, %v4034_v11, -inf  ;;  %v4454_v24 = vmax.f32 %v4452_v2, %v4453_v39 }
 0x150   :  { %v4050_v58 = vcombine.low %v4042_v21, %v4049_v16  ;;  %v4460_v44 = vrot.slane %v4459_v22, 1  ;;  %v4603_v37 = vrot.slane %v4602_v42, 4  ;;  %v4465_v49 = vrot.slane %v4464_v47, 2  ;;  %v5484_v52 = vpop.f32.mrf.mxu0  ;;  %v5524_v21 = vpop.f32.mrf.mxu1 }
 0x151   :  { %v4470_v50 = vrot.slane %v4469_v0, 4  ;;  %v4807_v5 = vsel %vm4806_vm6, %v4440_v23, %v4805_v27  ;;  %v2472_v17 = vadd.f32 %v5521_v1, %v6145_v12  ;;  %v4090_v23 = vrot.slane %v4083_v14, %v6135_v63 }
 0x152   :  { %v4609_v19 = vsel %vm4419_vm4, %v4050_v58, -inf  ;;  %v4461_v29 = vmax.f32 %v4459_v22, %v4460_v44  ;;  %v4809_v59 = vsel %vm4808_vm7, %v4447_v34, %v4807_v5  ;;  %v4604_v40 = vmax.f32 %v4602_v42, %v4603_v37 }
 0x153   :  { %v4610_v57 = vrot.slane %v4609_v19, 4  ;;  %v4466_v2 = vmax.f32 %v4464_v47, %v4465_v49  ;;  %v4471_v4 = vmax.f32 %v4469_v0, %v4470_v50  ;;  %v4811_v16 = vsel %vm4810_vm8, %v4454_v24, %v4809_v59  ;;  %v2476_v59 = vpop.f32.mrf.mxu1 }
 0x154   :  { %v2950_v15 = vcombine.high %v2472_v17, %v2472_v17  ;;  %v2957_v11 = vrot.slane %v2472_v17, %v6135_v63  ;;  %v4605_v39 = vrot.slane %v4604_v40, 2  ;;  %v4813_v58 = vsel %vm4812_vm9, %v4461_v29, %v4811_v16 }
 0x155   :  { %v4611_v22 = vmax.f32 %v4609_v19, %v4610_v57  ;;  %v4467_v27 = vrot.slane %v4466_v2, 1  ;;  %v4472_v34 = vrot.slane %v4471_v4, 2  ;;  %v4600_v47 = vrot.slane %v6371_v20, 1 }
 0x156   :  { %v2964_v1 = vrot.slane %v2950_v15, %v6135_v63  ;;  %v2965_v42 = vcombine.high %v2957_v11, %v2957_v11  ;;  %v3407_v44 = vmax.f32 %v2957_v11, 0.0  ;;  %v4606_v0 = vmax.f32 %v4604_v40, %v4605_v39 }
 0x157   :  { %v4468_v24 = vmax.f32 %v4466_v2, %v4467_v27  ;;  %v4473_v37 = vmax.f32 %v4471_v4, %v4472_v34  ;;  %v4612_v17 = vrot.slane %v4611_v22, 2  ;;  %v2464_v11 = vadd.f32 %v2463_v38, %v6147_v13 }
 0x158   :  { %v2966_v49 = vcombine.high %v2964_v1, %v2964_v1  ;;  %v3408_v50 = vmax.f32 %v2965_v42, 0.0  ;;  %v3409_v5 = vmax.f32 %v2964_v1, 0.0  ;;  %v4097_v14 = vrot.slane %v3407_v44, %v6135_v63 }
 0x159   :  { %v4607_v19 = vrot.slane %v4606_v0, 1  ;;  %v4474_v52 = vrot.slane %v4473_v37, 1  ;;  %v4815_v29 = vsel %vm4814_vm10, %v4468_v24, %v4813_v58  ;;  %v6416_v40 = vmax.f32 %v6371_v20, %v4600_v47 }
 0x15a   :  { %v3410_v57 = vmax.f32 %v2966_v49, 0.0  ;;  %v4098_v16 = vcombine.low %v4090_v23, %v4097_v14  ;;  %v4099_v15 = vcombine.low %v3408_v50, %v3409_v5  ;;  %v2485_v4 = vadd.f32 %v5524_v21, %v6145_v12 }
 0x15b   :  { %v4475_v2 = vmax.f32 %v4473_v37, %v4474_v52  ;;  %v2477_v39 = vadd.f32 %v2476_v59, %v6147_v13  ;;  %v2916_v58 = vcombine.high %v2464_v11, %v2464_v11  ;;  %v6423_v42 = vmax.f32 %v4611_v22, %v4612_v17 }
 0x15c   :  { %v4106_v27 = vrot.slane %v4099_v15, %v6135_v63  ;;  %v4113_v34 = vrot.slane %v3410_v57, %v6135_v63  ;;  %v4630_v1 = vsel %vm4419_vm4, %v4098_v16, -inf  ;;  %v2923_v38 = vrot.slane %v2464_v11, %v6135_v63  ;;  %v5525_v57 = vpop.f32.mrf.mxu1 }
 0x15d   :  { %v4817_v23 = vsel %vm4816_vm11, %v4475_v2, %v4815_v29  ;;  %v3001_v20 = vcombine.high %v2485_v4, %v2485_v4  ;;  %v6427_v44 = vmax.f32 %v4606_v0, %v4607_v19  ;;  %v4631_v21 = vrot.slane %v4630_v1, 4 }
 0x15e   :  { %4853 = vrot.lane.b32.xlu0 %v4817_v23, %s5658_s0  ;;  %v2930_v47 = vrot.slane %v2916_v58, %v6135_v63  ;;  %v3008_v24 = vrot.slane %v2485_v4, %v6135_v63  ;;  %v6432_v37 = vcombine.low %v4106_v27, %v4113_v34  ;;  %v2931_v49 = vcombine.high %v2923_v38, %v2923_v38 }
 0x15f   :  { %v3015_v22 = vrot.slane %v3001_v20, %v6135_v63  ;;  %v2967_v50 = vcombine.high %v2477_v39, %v2477_v39  ;;  %v3399_v14 = vmax.f32 %v2923_v38, 0.0  ;;  %v2974_v29 = vrot.slane %v2477_v39, %v6135_v63 }
 0x160   :  { %v2932_v5 = vcombine.high %v2930_v47, %v2930_v47  ;;  %v3401_v59 = vmax.f32 %v2930_v47, 0.0  ;;  %v3016_v17 = vcombine.high %v3008_v24, %v3008_v24  ;;  %v3400_v0 = vmax.f32 %v2931_v49, 0.0 }
 0x161   :  { %v3017_v19 = vcombine.high %v3015_v22, %v3015_v22  ;;  %v3421_v52 = vmax.f32 %v3015_v22, 0.0  ;;  %v6436_v16 = vmax.f32 %v4630_v1, %v4631_v21  ;;  %v3419_v11 = vmax.f32 %v3008_v24, 0.0 }
 0x162   :  { %v3402_v15 = vmax.f32 %v2932_v5, 0.0  ;;  %v3420_v2 = vmax.f32 %v3016_v17, 0.0  ;;  %v4051_v4 = vcombine.low %v3399_v14, %v3400_v0  ;;  %v2981_v34 = vrot.slane %v2967_v50, %v6135_v63 }
 0x163   :  { %v3422_v27 = vmax.f32 %v3017_v19, 0.0  ;;  %v2982_v58 = vcombine.high %v2974_v29, %v2974_v29  ;;  %v4065_v23 = vrot.slane %v3401_v59, %v6135_v63  ;;  %v2488_v47 = vadd.f32 %v5525_v57, %v6147_v13 }
 0x164   :  { %v4067_v38 = vcombine.low %v3402_v15, %v3403_v60  ;;  %v4163_v20 = vcombine.low %v3420_v2, %v3421_v52  ;;  %v4058_v39 = vrot.slane %v4051_v4, %v6135_v63  ;;  %v3411_v21 = vmax.f32 %v2974_v29, 0.0 }
 0x165   :  { %v4177_v1 = vrot.slane %v3422_v27, %v6135_v63  ;;  %v3412_v24 = vmax.f32 %v2982_v58, 0.0  ;;  %v3413_v50 = vmax.f32 %v2981_v34, 0.0  ;;  %v3018_v5 = vcombine.high %v2488_v47, %v2488_v47 }
 0x166   :  { %v4074_v49 = vrot.slane %v4067_v38, %v6135_v63  ;;  %v4170_v22 = vrot.slane %v4163_v20, %v6135_v63  ;;  %v4066_v14 = vcombine.low %v4058_v39, %v4065_v23  ;;  %v6448_v59 = vrot.slane %v3419_v11, %v6135_v63  ;;  %v2479_v11 = vpop.f32.mrf.mxu1 }
 0x167   :  { %v4115_v33 = vcombine.low %v3411_v21, %v3412_v24  ;;  %v3025_v60 = vrot.slane %v2488_v47, %v6135_v63  ;;  %v2983_v19 = vcombine.high %v2981_v34, %v2981_v34  ;;  %v3032_v52 = vrot.slane %v3018_v5, %v6135_v63 }
 0x168   :  { %v4082_v17 = vcombine.low %v4074_v49, %v4081_v32  ;;  %v4178_v0 = vcombine.low %v4170_v22, %v4177_v1  ;;  %v4616_v29 = vsel %vm4419_vm4, %v4066_v14, -inf  ;;  %v4129_v15 = vrot.slane %v3413_v50, %v6135_v63 }
 0x169   :  { %v4122_v57 = vrot.slane %v4115_v33, %v6135_v63  ;;  %v3033_v2 = vcombine.high %v3025_v60, %v3025_v60  ;;  %v4617_v4 = vrot.slane %v4616_v29, 4  ;;  %v3034_v48 = vcombine.high %v3032_v52, %v3032_v52 }
 0x16a   :  { %v6459_v27 = vsel %vm4419_vm4, %v4082_v17, -inf  ;;  %v4665_v58 = vsel %vm4419_vm4, %v4178_v0, -inf  ;;  %v3423_v34 = vmax.f32 %v3025_v60, 0.0  ;;  %v3414_v47 = vmax.f32 %v2983_v19, 0.0 }
 0x16b   :  { %v4666_v32 = vrot.slane %v4665_v58, 4  ;;  %v4130_v23 = vcombine.low %v4122_v57, %v4129_v15  ;;  %v3424_v38 = vmax.f32 %v3033_v2, 0.0  ;;  %v6462_v20 = vmax.f32 %v4616_v29, %v4617_v4 }
 0x16c   :  { %v3425_v39 = vmax.f32 %v3032_v52, 0.0  ;;  %v2480_v1 = vadd.f32 %v2479_v11, %v6153_v25  ;;  %v4624_v21 = vrot.slane %v6459_v27, 4  ;;  %v6467_v5 = vmax.f32 %v3034_v48, 0.0  ;;  %v5528_v48 = vpop.f32.mrf.mxu1 }
 0x16d   :  { %v4667_v24 = vmax.f32 %v4665_v58, %v4666_v32  ;;  %v4644_v49 = vsel %vm4419_vm4, %v4130_v23, -inf  ;;  %v4179_v22 = vcombine.low %v3423_v34, %v3424_v38  ;;  %v4502_v33 = vrot.slane %v6279_v35, 1 }
 0x16e   :  { %v4645_v50 = vrot.slane %v4644_v49, 4  ;;  %v2984_v14 = vcombine.high %v2480_v1, %v2480_v1  ;;  %v4619_v60 = vrot.slane %v6462_v20, 2  ;;  %v4193_v0 = vrot.slane %v3425_v39, %v6135_v63 }
 0x16f   :  { %v4186_v17 = vrot.slane %v4179_v22, %v6135_v63  ;;  %v2991_v19 = vrot.slane %v2480_v1, %v6135_v63  ;;  %v4508_v57 = vmax.f32 %v6285_v61, %v4507_v45  ;;  %v4513_v15 = vmax.f32 %v6282_v36, %v4512_v56 }
 0x170   :  { %v4646_v52 = vmax.f32 %v4644_v49, %v4645_v50  ;;  %v2998_v29 = vrot.slane %v2984_v14, %v6135_v63  ;;  %v4668_v2 = vrot.slane %v4667_v24, 2  ;;  %v4503_v34 = vmax.f32 %v6279_v35, %v4502_v33 }
 0x171   :  { %v4194_v11 = vcombine.low %v4186_v17, %v4193_v0  ;;  %v2999_v4 = vcombine.high %v2991_v19, %v2991_v19  ;;  %v3415_v58 = vmax.f32 %v2991_v19, 0.0  ;;  %v4509_v38 = vrot.slane %v4508_v57, 1  ;;  %v2492_v19 = vpop.f32.mrf.mxu1 }
 0x172   :  { %v4647_v32 = vrot.slane %v4646_v52, 2  ;;  %v3000_v23 = vcombine.high %v2998_v29, %v2998_v29  ;;  %v4514_v22 = vrot.slane %v4513_v15, 2  ;;  %v3417_v50 = vmax.f32 %v2998_v29, 0.0 }
 0x173   :  { %v4672_v39 = vsel %vm4419_vm4, %v4194_v11, -inf  ;;  %v3416_v1 = vmax.f32 %v2999_v4, 0.0  ;;  %v4131_v49 = vcombine.low %v3414_v47, %v3415_v58  ;;  %v4521_v0 = vrot.slane %v6270_v3, 2 }
 0x174   :  { %v6483_v61 = vmax.f32 %v4646_v52, %v4647_v32  ;;  %v4673_v45 = vrot.slane %v4672_v39, 4  ;;  %v3418_v36 = vmax.f32 %v3000_v23, 0.0  ;;  %v4515_v17 = vmax.f32 %v4513_v15, %v4514_v22  ;;  %v6492_v52 = vpop.f32.mrf.mxu0  ;;  %v5529_v22 = vpop.f32.mrf.mxu1 }
 0x175   :  { %v4138_v56 = vrot.slane %v4131_v49, %v6135_v63  ;;  %v4145_v14 = vrot.slane %v3416_v1, %v6135_v63  ;;  %v6488_v35 = vmax.f32 %v4667_v24, %v4668_v2  ;;  %v4510_v11 = vmax.f32 %v4508_v57, %v4509_v38 }
 0x176   :  { %v4147_v33 = vcombine.low %v3417_v50, %v3418_v36  ;;  %v4525_v47 = vsel %vm4419_vm4, %v6260_v55, -inf  ;;  %v4516_v29 = vrot.slane %v4515_v17, 1  ;;  %v4522_v58 = vmax.f32 %v6270_v3, %v4521_v0  ;;  %v5485_v57 = vpop.f32.mrf.mxu0  ;;  %v5602_v36 = vld [vmem:[%s6872_s5] sm:$0xff]  }
 0x177   :  { %v4146_v4 = vcombine.low %v4138_v56, %v4145_v14  ;;  %v4526_v32 = vrot.slane %v4525_v47, 4  ;;  %v4649_v23 = vrot.slane %v6483_v61, 1  ;;  %v6496_v15 = vmax.f32 %v4672_v39, %v4673_v45  ;;  %5535 = vmatpush3.bf16.msra.mxu0 %v5602_v36 }
 0x178   :  { %v4154_v1 = vrot.slane %v4147_v33, %v6135_v63  ;;  %v4818_v24 = vsel %vm4804_vm5, %v6258_v54, %v6225_v18  ;;  %v4517_v2 = vmax.f32 %v4515_v17, %v4516_v29  ;;  %v4523_v38 = vrot.slane %v4522_v58, 1  ;;  %v2495_v29 = vpop.f32.mrf.mxu1  ;;  %5548 = vmatprep.subr.bf16.mxu0 %v5655_v10 }
 0x179   :  { %v4651_v55 = vsel %vm4419_vm4, %v4146_v4, -inf  ;;  %v4527_v49 = vmax.f32 %v4525_v47, %v4526_v32  ;;  %v4819_v39 = vsel %vm4806_vm6, %v6272_v7, %v4818_v24  ;;  %v2501_v45 = vadd.f32 %v5528_v48, %v6147_v13 }
 0x17a   :  { %v4162_v3 = vcombine.low %v4154_v1, %v6448_v59  ;;  %v4652_v50 = vrot.slane %v4651_v55, 4  ;;  %v4524_v18 = vmax.f32 %v4522_v58, %v4523_v38  ;;  %v4820_v56 = vsel %vm4808_vm7, %v4503_v34, %v4819_v39  ;;  %v5532_v36 = vpop.f32.mrf.mxu1 }
 0x17b   :  { %v4528_v54 = vrot.slane %v4527_v49, 2  ;;  %v2493_v14 = vadd.f32 %v2492_v19, %v6153_v25  ;;  %v4821_v59 = vsel %vm4810_vm8, %v4510_v11, %v4820_v56  ;;  %v3069_v33 = vcombine.high %v2501_v45, %v2501_v45 }
 0x17c   :  { %v4653_v17 = vmax.f32 %v4651_v55, %v4652_v50  ;;  %v4658_v0 = vsel %vm4419_vm4, %v4162_v3, -inf  ;;  %v4822_v48 = vsel %vm4812_vm9, %v4517_v2, %v4821_v59  ;;  %v3076_v4 = vrot.slane %v2501_v45, %v6135_v63 }
 0x17d   :  { %v4659_v7 = vrot.slane %v4658_v0, 4  ;;  %v4529_v47 = vmax.f32 %v4527_v49, %v4528_v54  ;;  %v4823_v34 = vsel %vm4814_vm10, %v4524_v18, %v4822_v48  ;;  %v3083_v19 = vrot.slane %v3069_v33, %v6135_v63 }
 0x17e   :  { %v4654_v58 = vrot.slane %v4653_v17, 2  ;;  %v3035_v32 = vcombine.high %v2493_v14, %v2493_v14  ;;  %v3084_v11 = vcombine.high %v3076_v4, %v3076_v4  ;;  %v3435_v57 = vmax.f32 %v3076_v4, 0.0 }
 0x17f   :  { %v4660_v1 = vmax.f32 %v4658_v0, %v4659_v7  ;;  %v4530_v24 = vrot.slane %v4529_v47, 1  ;;  %v3085_v38 = vcombine.high %v3083_v19, %v3083_v19  ;;  %v3437_v49 = vmax.f32 %v3083_v19, 0.0 }
 0x180   :  { %v4655_v55 = vmax.f32 %v4653_v17, %v4654_v58  ;;  %v3042_v2 = vrot.slane %v2493_v14, %v6135_v63  ;;  %v3436_v39 = vmax.f32 %v3084_v11, 0.0  ;;  %v3049_v45 = vrot.slane %v3035_v32, %v6135_v63 }
 0x181   :  { %v4661_v3 = vrot.slane %v4660_v1, 2  ;;  %v4531_v50 = vmax.f32 %v4529_v47, %v4530_v24  ;;  %v6522_v18 = vmax.f32 %v6483_v61, %v4649_v23  ;;  %v4675_v54 = vrot.slane %v6496_v15, 2 }
 0x182   :  { %v4656_v56 = vrot.slane %v4655_v55, 1  ;;  %v3050_v0 = vcombine.high %v3042_v2, %v3042_v2  ;;  %v3438_v17 = vmax.f32 %v3085_v38, 0.0  ;;  %v4243_v33 = vcombine.low %v3435_v57, %v3436_v39 }
 0x183   :  { %v4824_v59 = vsel %vm4816_vm11, %v4531_v50, %v4823_v34  ;;  %v3051_v7 = vcombine.high %v3049_v45, %v3049_v45  ;;  %v6526_v48 = vmax.f32 %v4660_v1, %v4661_v3  ;;  %v4257_v14 = vrot.slane %v3437_v49, %v6135_v63  ;;  %v2508_v34 = vpop.f32.mrf.mxu1 }
 0x184   :  { %4855 = vrot.lane.b32.xlu0 %v4824_v59, %s5658_s0  ;;  %v3427_v47 = vmax.f32 %v3042_v2, 0.0  ;;  %v3428_v4 = vmax.f32 %v3050_v0, 0.0  ;;  %v6530_v58 = vmax.f32 %v4655_v55, %v4656_v56  ;;  %v4250_v61 = vrot.slane %v4243_v33, %v6135_v63 }
 0x185   :  { %v2504_v23 = vadd.f32 %v5529_v22, %v6153_v25  ;;  %v2496_v19 = vadd.f32 %v2495_v29, %v6145_v12  ;;  %v3429_v32 = vmax.f32 %v3049_v45, 0.0  ;;  %v3430_v24 = vmax.f32 %v3051_v7, 0.0 }
 0x186   :  { %v4195_v1 = vcombine.low %v6467_v5, %v3427_v47  ;;  %v4209_v11 = vrot.slane %v3428_v4, %v6135_v63  ;;  %v4258_v57 = vcombine.low %v4250_v61, %v4257_v14  ;;  %v2517_v55 = vadd.f32 %v5532_v36, %v6153_v25 }
 0x187   :  { %v3086_v38 = vcombine.high %v2504_v23, %v2504_v23  ;;  %v3093_v49 = vrot.slane %v2504_v23, %v6135_v63  ;;  %v3052_v3 = vcombine.high %v2496_v19, %v2496_v19  ;;  %v3059_v22 = vrot.slane %v2496_v19, %v6135_v63 }
 0x188   :  { %v4202_v2 = vrot.slane %v4195_v1, %v6135_v63  ;;  %v2509_v29 = vadd.f32 %v2508_v34, %v6145_v12  ;;  %v4700_v50 = vsel %vm4419_vm4, %v4258_v57, -inf  ;;  %v4211_v7 = vcombine.low %v3429_v32, %v3430_v24 }
 0x189   :  { %v3100_v39 = vrot.slane %v3086_v38, %v6135_v63  ;;  %v3101_v5 = vcombine.high %v3093_v49, %v3093_v49  ;;  %v3439_v45 = vmax.f32 %v3093_v49, 0.0  ;;  %v4701_v56 = vrot.slane %v4700_v50, 4 }
 0x18a   :  { %v4210_v0 = vcombine.low %v4202_v2, %v4209_v11  ;;  %v3066_v59 = vrot.slane %v3052_v3, %v6135_v63  ;;  %v3067_v33 = vcombine.high %v3059_v22, %v3059_v22  ;;  %v3431_v23 = vmax.f32 %v3059_v22, 0.0 }
 0x18b   :  { %v3102_v25 = vcombine.high %v3100_v39, %v3100_v39  ;;  %v3440_v36 = vmax.f32 %v3101_v5, 0.0  ;;  %v4259_v14 = vcombine.low %v3438_v17, %v3439_v45  ;;  %v4702_v47 = vmax.f32 %v4700_v50, %v4701_v56 }
 0x18c   :  { %v4679_v4 = vsel %vm4419_vm4, %v4210_v0, -inf  ;;  %v3068_v61 = vcombine.high %v3066_v59, %v3066_v59  ;;  %v3137_v57 = vcombine.high %v2517_v55, %v2517_v55  ;;  %v3432_v11 = vmax.f32 %v3067_v33, 0.0 }
 0x18d   :  { %v4680_v19 = vrot.slane %v4679_v4, 4  ;;  %v4266_v34 = vrot.slane %v4259_v14, %v6135_v63  ;;  %v4273_v1 = vrot.slane %v3440_v36, %v6135_v63  ;;  %v4703_v38 = vrot.slane %v4702_v47, 2 }
 0x18e   :  { %v3433_v49 = vmax.f32 %v3066_v59, 0.0  ;;  %v3434_v2 = vmax.f32 %v3068_v61, 0.0  ;;  %v3442_v32 = vmax.f32 %v3102_v25, 0.0  ;;  %v4218_v17 = vrot.slane %v4211_v7, %v6135_v63 }
 0x18f   :  { %v6548_v3 = vmax.f32 %v4679_v4, %v4680_v19  ;;  %v4274_v24 = vcombine.low %v4266_v34, %v4273_v1  ;;  %v4704_v50 = vmax.f32 %v4702_v47, %v4703_v38  ;;  %v3441_v5 = vmax.f32 %v3100_v39, 0.0 }
 0x190   :  { %v4225_v22 = vrot.slane %v3431_v23, %v6135_v63  ;;  %v4227_v45 = vcombine.low %v3432_v11, %v3433_v49  ;;  %v4241_v0 = vrot.slane %v3434_v2, %v6135_v63  ;;  %v6555_v36 = vrot.slane %v2517_v55, %v6135_v63 }
 0x191   :  { %v4707_v56 = vsel %vm4419_vm4, %v4274_v24, -inf  ;;  %v3151_v59 = vrot.slane %v3137_v57, %v6135_v63  ;;  %v4705_v33 = vrot.slane %v4704_v50, 1  ;;  %v4682_v7 = vrot.slane %v6548_v3, 2 }
 0x192   :  { %v4708_v14 = vrot.slane %v4707_v56, 4  ;;  %v4226_v25 = vcombine.low %v4218_v17, %v4225_v22  ;;  %v4234_v4 = vrot.slane %v4227_v45, %v6135_v63  ;;  %v4275_v39 = vcombine.low %v3441_v5, %v3442_v32 }
 0x193   :  { %v3152_v47 = vcombine.high %v6555_v36, %v6555_v36  ;;  %v3153_v61 = vcombine.high %v3151_v59, %v3151_v59  ;;  %v3451_v55 = vmax.f32 %v6555_v36, 0.0  ;;  %v3453_v34 = vmax.f32 %v3151_v59, 0.0 }
 0x194   :  { %v4709_v23 = vmax.f32 %v4707_v56, %v4708_v14  ;;  %v4686_v19 = vsel %vm4419_vm4, %v4226_v25, -inf  ;;  %v3103_v11 = vcombine.high %v2509_v29, %v2509_v29  ;;  %v6566_v49 = vmax.f32 %v4704_v50, %v4705_v33 }
 0x195   :  { %v4687_v1 = vrot.slane %v4686_v19, 4  ;;  %v6564_v57 = vmax.f32 %v3152_v47, 0.0  ;;  %v3454_v38 = vmax.f32 %v3153_v61, 0.0  ;;  %v6568_v24 = vcombine.low %v4234_v4, %v4241_v0 }
 0x196   :  { %v4710_v2 = vrot.slane %v4709_v23, 2  ;;  %v3110_v32 = vrot.slane %v2509_v29, %v6135_v63  ;;  %v3117_v5 = vrot.slane %v3103_v11, %v6135_v63  ;;  %v4282_v22 = vrot.slane %v4275_v39, %v6135_v63 }
 0x197   :  { %v6571_v17 = vmax.f32 %v4686_v19, %v4687_v1  ;;  %v4551_v45 = vrot.slane %v6337_v51, 1  ;;  %v4337_v56 = vrot.slane %v6564_v57, %v6135_v63  ;;  %v6578_v59 = vcombine.low %v3453_v34, %v3454_v38 }
 0x198   :  { %v3118_v50 = vcombine.high %v3110_v32, %v3110_v32  ;;  %v3443_v33 = vmax.f32 %v3110_v32, 0.0  ;;  %v3119_v14 = vcombine.high %v3117_v5, %v3117_v5  ;;  %v3445_v0 = vmax.f32 %v3117_v5, 0.0  ;;  %v5533_v5 = vpop.f32.mrf.mxu1 }
 0x199   :  { %v4557_v29 = vmax.f32 %v6306_v41, %v4556_v9  ;;  %v4564_v25 = vmax.f32 %v6314_v31, %v4563_v53  ;;  %v6586_v4 = vmax.f32 %v4709_v23, %v4710_v2  ;;  %v4570_v61 = vrot.slane %v6346_v8, 2 }
 0x19a   :  { %v3444_v39 = vmax.f32 %v3118_v50, 0.0  ;;  %v4289_v47 = vrot.slane %v3443_v33, %v6135_v63  ;;  %v3446_v19 = vmax.f32 %v3119_v14, 0.0  ;;  %v4576_v38 = vmax.f32 %v6368_v26, %v4575_v46  ;;  %v6600_v46 = vpop.f32.mrf.mxu0 }
 0x19b   :  { %v4558_v34 = vrot.slane %v4557_v29, 1  ;;  %v4565_v1 = vrot.slane %v4564_v25, 1  ;;  %v4552_v9 = vmax.f32 %v6337_v51, %v4551_v45  ;;  %v4571_v31 = vmax.f32 %v6346_v8, %v4570_v61 }
 0x19c   :  { %v4290_v11 = vcombine.low %v4282_v22, %v4289_v47  ;;  %v4291_v41 = vcombine.low %v3444_v39, %v3445_v0  ;;  %v4305_v53 = vrot.slane %v3446_v19, %v6135_v63  ;;  %v4577_v32 = vrot.slane %v4576_v38, 2  ;;  %v5488_v47 = vpop.f32.mrf.mxu0 }
 0x19d   :  { %v4559_v23 = vmax.f32 %v4557_v29, %v4558_v34  ;;  %v4566_v2 = vmax.f32 %v4564_v25, %v4565_v1  ;;  %v4572_v14 = vrot.slane %v4571_v31, 1  ;;  %v4581_v26 = vsel %vm4419_vm4, %v6375_v30, -inf }
 0x19e   :  { %v4298_v50 = vrot.slane %v4291_v41, %v6135_v63  ;;  %v4714_v33 = vsel %vm4419_vm4, %v4290_v11, -inf  ;;  %v4578_v51 = vmax.f32 %v4576_v38, %v4577_v32  ;;  %v4582_v45 = vrot.slane %v4581_v26, 4 }
 0x19f   :  { %v4715_v22 = vrot.slane %v4714_v33, 4  ;;  %v4825_v8 = vsel %vm4804_vm5, %v6335_v6, %v6330_v43  ;;  %v4573_v29 = vmax.f32 %v4571_v31, %v4572_v14  ;;  %v2520_v39 = vadd.f32 %v5533_v5, %v6145_v12 }
 0x1a0   :  { %v4306_v0 = vcombine.low %v4298_v50, %v4305_v53  ;;  %v4826_v25 = vsel %vm4806_vm6, %v4552_v9, %v4825_v8  ;;  %v4579_v19 = vrot.slane %v4578_v51, 1  ;;  %v4583_v34 = vmax.f32 %v4581_v26, %v4582_v45 }
 0x1a1   :  { %v4716_v61 = vmax.f32 %v4714_v33, %v4715_v22  ;;  %v4827_v30 = vsel %vm4808_vm7, %v4559_v23, %v4826_v25  ;;  %v3154_v11 = vcombine.high %v2520_v39, %v2520_v39  ;;  %v3161_v41 = vrot.slane %v2520_v39, %v6135_v63 }
 0x1a2   :  { %v4721_v1 = vsel %vm4419_vm4, %v4306_v0, -inf  ;;  %v4828_v38 = vsel %vm4810_vm8, %v4566_v2, %v4827_v30  ;;  %v4580_v31 = vmax.f32 %v4578_v51, %v4579_v19  ;;  %v4584_v53 = vrot.slane %v4583_v34, 2  ;;  %v2511_v2 = vpop.f32.mrf.mxu1 }
 0x1a3   :  { %v4717_v43 = vrot.slane %v4716_v61, 2  ;;  %v4722_v6 = vrot.slane %v4721_v1, 4  ;;  %v4829_v9 = vsel %vm4812_vm9, %v4573_v29, %v4828_v38  ;;  %v3168_v12 = vrot.slane %v3154_v11, %v6135_v63 }
 0x1a4   :  { %v3169_v32 = vcombine.high %v3161_v41, %v3161_v41  ;;  %v3455_v5 = vmax.f32 %v3161_v41, 0.0  ;;  %v4712_v50 = vrot.slane %v6586_v4, 1  ;;  %v4585_v14 = vmax.f32 %v4583_v34, %v4584_v53 }
 0x1a5   :  { %v6614_v23 = vmax.f32 %v4716_v61, %v4717_v43  ;;  %v4723_v33 = vmax.f32 %v4721_v1, %v4722_v6  ;;  %v3170_v26 = vcombine.high %v3168_v12, %v3168_v12  ;;  %v3457_v45 = vmax.f32 %v3168_v12, 0.0 }
 0x1a6   :  { %v3456_v22 = vmax.f32 %v3169_v32, 0.0  ;;  %v4346_v51 = vrot.slane %v6578_v59, %v6135_v63  ;;  %v4586_v0 = vrot.slane %v4585_v14, 1  ;;  %v4830_v29 = vsel %vm4814_vm10, %v4580_v31, %v4829_v9 }
 0x1a7   :  { %v4724_v8 = vrot.slane %v4723_v33, 2  ;;  %v4353_v25 = vrot.slane %v3455_v5, %v6135_v63  ;;  %v3458_v39 = vmax.f32 %v3170_v26, 0.0  ;;  %v2512_v61 = vadd.f32 %v2511_v2, %v6147_v13 }
 0x1a8   :  { %v4355_v47 = vcombine.low %v3456_v22, %v3457_v45  ;;  %v4614_v19 = vrot.slane %v6423_v42, 1  ;;  %v6623_v34 = vmax.f32 %v6586_v4, %v4712_v50  ;;  %v4719_v30 = vrot.slane %v6614_v23, 1 }
 0x1a9   :  { %v4587_v1 = vmax.f32 %v4585_v14, %v4586_v0  ;;  %v4354_v38 = vcombine.low %v4346_v51, %v4353_v25  ;;  %v4369_v11 = vrot.slane %v3458_v39, %v6135_v63  ;;  %v3120_v41 = vcombine.high %v2512_v61, %v2512_v61 }
 0x1aa   :  { %v4362_v59 = vrot.slane %v4355_v47, %v6135_v63  ;;  %v3127_v43 = vrot.slane %v2512_v61, %v6135_v63  ;;  %v6629_v6 = vmax.f32 %v4723_v33, %v4724_v8  ;;  %v4620_v4 = vmax.f32 %v6462_v20, %v4619_v60  ;;  %v6650_v8 = vpop.f32.mrf.mxu0 }
 0x1ab   :  { %v4831_v13 = vsel %vm4816_vm11, %v4587_v1, %v4830_v29  ;;  %v4742_v31 = vsel %vm4419_vm4, %v4354_v38, -inf  ;;  %v3134_v9 = vrot.slane %v3120_v41, %v6135_v63  ;;  %v4615_v32 = vmax.f32 %v6423_v42, %v4614_v19 }
 0x1ac   :  { %4857 = vrot.lane.b32.xlu1 %v4831_v13, %s5658_s0  ;;  %v4743_v53 = vrot.slane %v4742_v31, 4  ;;  %v3135_v12 = vcombine.high %v3127_v43, %v3127_v43  ;;  %v6639_v5 = vcombine.low %v4362_v59, %v4369_v11  ;;  %v4621_v50 = vrot.slane %v4620_v4, 1  ;;  %v5489_v19 = vpop.f32.mrf.mxu0 }
 0x1ad   :  { %v4625_v33 = vmax.f32 %v6459_v27, %v4624_v21  ;;  %v4633_v14 = vrot.slane %v6436_v16, 2  ;;  %v3136_v2 = vcombine.high %v3134_v9, %v3134_v9  ;;  %v3447_v26 = vmax.f32 %v3127_v43, 0.0 }
 0x1ae   :  { %v3448_v20 = vmax.f32 %v3135_v12, 0.0  ;;  %v3449_v60 = vmax.f32 %v3134_v9, 0.0  ;;  %v6645_v22 = vmax.f32 %v4742_v31, %v4743_v53  ;;  %v4637_v42 = vsel %vm4419_vm4, %v6432_v37, -inf }
 0x1af   :  { %v4626_v45 = vrot.slane %v4625_v33, 2  ;;  %v4634_v51 = vmax.f32 %v6436_v16, %v4633_v14  ;;  %v3450_v0 = vmax.f32 %v3136_v2, 0.0  ;;  %v4622_v25 = vmax.f32 %v4620_v4, %v4621_v50 }
 0x1b0   :  { %v4307_v29 = vcombine.low %v3447_v26, %v3448_v20  ;;  %v4638_v27 = vrot.slane %v4637_v42, 4  ;;  %v4321_v21 = vrot.slane %v3449_v60, %v6135_v63  ;;  %v4832_v61 = vsel %vm4804_vm5, %v6416_v40, %v6360_v28 }
 0x1b1   :  { %v4627_v39 = vmax.f32 %v4625_v33, %v4626_v45  ;;  %v4635_v47 = vrot.slane %v4634_v51, 1  ;;  %v4323_v37 = vcombine.low %v3450_v0, %v3451_v55  ;;  %v4833_v38 = vsel %vm4806_vm6, %v6427_v44, %v4832_v61 }
 0x1b2   :  { %v4314_v16 = vrot.slane %v4307_v29, %v6135_v63  ;;  %v4639_v1 = vmax.f32 %v4637_v42, %v4638_v27  ;;  %v4834_v41 = vsel %vm4808_vm7, %v4615_v32, %v4833_v38  ;;  %v4663_v43 = vrot.slane %v6526_v48, 1 }
 0x1b3   :  { %v4628_v59 = vrot.slane %v4627_v39, 1  ;;  %v4636_v11 = vmax.f32 %v4634_v51, %v4635_v47  ;;  %v4330_v31 = vrot.slane %v4323_v37, %v6135_v63  ;;  %v4835_v40 = vsel %vm4810_vm8, %v4622_v25, %v4834_v41  ;;  %v6688_v51 = vpop.f32.mrf.mxu0 }
 0x1b4   :  { %v4322_v13 = vcombine.low %v4314_v16, %v4321_v21  ;;  %v4640_v28 = vrot.slane %v4639_v1, 2  ;;  %v4670_v36 = vrot.slane %v6488_v35, 1  ;;  %v4676_v55 = vmax.f32 %v6496_v15, %v4675_v54 }
 0x1b5   :  { %v4629_v4 = vmax.f32 %v4627_v39, %v4628_v59  ;;  %v4683_v44 = vmax.f32 %v6548_v3, %v4682_v7  ;;  %v4338_v53 = vcombine.low %v4330_v31, %v4337_v56  ;;  %v4689_v32 = vrot.slane %v6571_v17, 2  ;;  %v5492_v39 = vpop.f32.mrf.mxu0 }
 0x1b6   :  { %v4728_v9 = vsel %vm4419_vm4, %v4322_v13, -inf  ;;  %v4641_v12 = vmax.f32 %v4639_v1, %v4640_v28  ;;  %v4664_v14 = vmax.f32 %v6526_v48, %v4663_v43  ;;  %v4677_v2 = vrot.slane %v4676_v55, 1 }
 0x1b7   :  { %v4729_v50 = vrot.slane %v4728_v9, 4  ;;  %v4836_v33 = vsel %vm4812_vm9, %v4629_v4, %v4835_v40  ;;  %v4735_v15 = vsel %vm4419_vm4, %v4338_v53, -inf  ;;  %v4671_v7 = vmax.f32 %v6488_v35, %v4670_v36  ;;  %v137_v1 = vpop.f32.mrf.mxu0 }
 0x1b8   :  { %v4642_v54 = vrot.slane %v4641_v12, 1  ;;  %v4837_v3 = vsel %vm4814_vm10, %v4636_v11, %v4836_v33  ;;  %v4736_v57 = vrot.slane %v4735_v15, 4  ;;  %v4684_v56 = vrot.slane %v4683_v44, 1 }
 0x1b9   :  { %v4730_v63 = vmax.f32 %v4728_v9, %v4729_v50  ;;  %v4690_v26 = vmax.f32 %v6571_v17, %v4689_v32  ;;  %v4678_v60 = vmax.f32 %v4676_v55, %v4677_v2  ;;  %v4693_v45 = vsel %vm4419_vm4, %v6568_v24, -inf  ;;  %v5493_v31 = vpop.f32.mrf.mxu0 }
 0x1ba   :  { %v4643_v20 = vmax.f32 %v4641_v12, %v4642_v54  ;;  %v4839_v48 = vsel %vm4804_vm5, %v6530_v58, %v6522_v18  ;;  %v4694_v29 = vrot.slane %v4693_v45, 4  ;;  %v4726_v27 = vrot.slane %v6629_v6, 1 }
 0x1bb   :  { %v4731_v42 = vrot.slane %v4730_v63, 2  ;;  %v4691_v0 = vrot.slane %v4690_v26, 1  ;;  %v4840_v35 = vsel %vm4806_vm6, %v4664_v14, %v4839_v48  ;;  %v4737_v21 = vmax.f32 %v4735_v15, %v4736_v57 }
 0x1bc   :  { %v4838_v25 = vsel %vm4816_vm11, %v4643_v20, %v4837_v3  ;;  %v4841_v17 = vsel %vm4808_vm7, %v4671_v7, %v4840_v35  ;;  %v4720_v24 = vmax.f32 %v6614_v23, %v4719_v30  ;;  %v4685_v18 = vmax.f32 %v4683_v44, %v4684_v56  ;;  %v5605_v35 = vld [vmem:[%s6875_s9] sm:$0xff]  }
 0x1bd   :  { %4859 = vrot.lane.b32.xlu1 %v4838_v25, %s5658_s0  ;;  %v4695_v58 = vmax.f32 %v4693_v45, %v4694_v29  ;;  %v4732_v47 = vmax.f32 %v4730_v63, %v4731_v42  ;;  %v4842_v61 = vsel %vm4810_vm8, %v4678_v60, %v4841_v17  ;;  %v4727_v19 = vmax.f32 %v6629_v6, %v4726_v27 }
 0x1be   :  { %v4738_v16 = vrot.slane %v4737_v21, 2  ;;  %v4745_v37 = vrot.slane %v6645_v22, 2  ;;  %v4692_v38 = vmax.f32 %v4690_v26, %v4691_v0  ;;  %v4749_v41 = vsel %vm4419_vm4, %v6639_v5, -inf  ;;  %v5603_v26 = vld [vmem:[%s6873_s7] sm:$0xff]  }
 0x1bf   :  { %v4696_v59 = vrot.slane %v4695_v58, 2  ;;  %v4733_v11 = vrot.slane %v4732_v47, 1  ;;  %v4750_v43 = vrot.slane %v4749_v41, 4  ;;  %v4846_v13 = vsel %vm4804_vm5, %v6623_v34, %v6566_v49 }
 0x1c0   :  { %v4739_v23 = vmax.f32 %v4737_v21, %v4738_v16  ;;  %v4746_v30 = vmax.f32 %v6645_v22, %v4745_v37  ;;  %v4843_v28 = vsel %vm4812_vm9, %v4685_v18, %v4842_v61  ;;  %v4847_v4 = vsel %vm4806_vm6, %v4720_v24, %v4846_v13  ;;  %v5413_v37 = vld [vmem:[%s6876_s8] ss:$0 sm:$0xff] }
 0x1c1   :  { %v4697_v6 = vmax.f32 %v4695_v58, %v4696_v59  ;;  %v4734_v40 = vmax.f32 %v4732_v47, %v4733_v11  ;;  %v4751_v55 = vmax.f32 %v4749_v41, %v4750_v43  ;;  %v4848_v44 = vsel %vm4808_vm7, %v4727_v19, %v4847_v4 }
 0x1c2   :  { %v4740_v36 = vrot.slane %v4739_v23, 1  ;;  %v4747_v53 = vrot.slane %v4746_v30, 1  ;;  %v4844_v9 = vsel %vm4814_vm10, %v4692_v38, %v4843_v28 }
 0x1c3   :  { %v4698_v5 = vrot.slane %v4697_v6, 1  ;;  %v4849_v22 = vsel %vm4810_vm8, %v4734_v40, %v4848_v44  ;;  %v4752_v32 = vrot.slane %v4751_v55, 2 }
 0x1c4   :  { %v4741_v12 = vmax.f32 %v4739_v23, %v4740_v36  ;;  %v4748_v14 = vmax.f32 %v4746_v30, %v4747_v53 }
 0x1c5   :  { %v4699_v49 = vmax.f32 %v4697_v6, %v4698_v5  ;;  %v4753_v34 = vmax.f32 %v4751_v55, %v4752_v32 }
 0x1c6   :  { %v4850_v50 = vsel %vm4812_vm9, %v4741_v12, %v4849_v22 }
 0x1c7   :  { %v4845_v33 = vsel %vm4816_vm11, %v4699_v49, %v4844_v9  ;;  %v4754_v2 = vrot.slane %v4753_v34, 1  ;;  %v4851_v15 = vsel %vm4814_vm10, %v4748_v14, %v4850_v50 }
 0x1c8   :  { %4861 = vrot.lane.b32.xlu0 %v4845_v33, %s5658_s0 }
 0x1c9   :  { %v4755_v54 = vmax.f32 %v4753_v34, %v4754_v2 }
 0x1cb   :  { %v4852_v3 = vsel %vm4816_vm11, %v4755_v54, %v4851_v15 }
 0x1cc   :  { %4863 = vrot.lane.b32.xlu1 %v4852_v3, %s5658_s0 }
 0x1d0   :  { %v4854_v7 = vpop.permute.xlu0 %4853 }
 0x1d1   :  { %v6720_v57 = vsel %vm4871_vm12, %v6400_v62, %v4854_v7  ;;  %v5408_v7 = vld [vmem:[%s6877_s6] ss:$0 sm:$0xff] }
 0x1f6   :  { %v4856_v63 = vpop.permute.xlu0 %4855 }
 0x1f7   :  { %v6724_v56 = vsel %vm4871_vm12, %v6492_v52, %v4856_v63 }
 0x1f8   :  { %v4878_v20 = vpack.c.bf16 %v6724_v56, %v6720_v57 }
 0x1fa   :  { %5537 = vmatmul.mubr.msk.bf16.vlgmr.msra.gmra.mxu0 %vm74_vm3, %v4878_v20 }
 0x1fb   :  { %5540 = vmatprep.mubr.msk.bf16.mxu0 %vm5656_vm1, %v5655_v10  ;;  %5549 = vmatpush3.bf16.msra.mxu0 %v5603_v26 }
 0x1fc   :  { %5562 = vmatprep.subr.bf16.mxu0 %v5655_v10 }
 0x21e   :  { %v4858_v62 = vpop.permute.xlu1 %4857 }
 0x21f   :  { %v6737_v52 = vsel %vm4871_vm12, %v6600_v46, %v4858_v62 }
 0x22f   :  { %v4860_v60 = vpop.permute.xlu1 %4859 }
 0x230   :  { %v6741_v45 = vsel %vm4871_vm12, %v6650_v8, %v4860_v60 }
 0x231   :  { %v4879_v48 = vpack.c.bf16 %v6741_v45, %v6737_v52 }
 0x233   :  { %5541 = vmatmul.mubr.msk.bf16.gmra.mxu0 %vm74_vm3, %v4879_v48 }
 0x234   :  { %5544 = vmatprep.mubr.msk.bf16.mxu0 %vm5656_vm1, %v5655_v10 }
 0x23a   :  { %v4862_v42 = vpop.permute.xlu0 %4861 }
 0x23b   :  { %v6750_v29 = vsel %vm4871_vm12, %v6688_v51, %v4862_v42  ;;  %v5604_v51 = vld [vmem:[%s6874_s11] sm:$0xff]  }
 0x23c   :  { %5577 = vmatpush3.bf16.msra.mxu1 %v5604_v51 }
 0x23e   :  { %v4864_v0 = vpop.permute.xlu1 %4863 }
 0x23f   :  { %v6753_v46 = vsel %vm4871_vm12, %v137_v1, %v4864_v0 }
 0x240   :  { %v4880_v8 = vpack.c.bf16 %v6753_v46, %v6750_v29 }
 0x242   :  { %5545 = vmatmul.mubr.msk.bf16.gmra.mxu0 %vm74_vm3, %v4880_v8 }
 0x243   :  { %5550 = vmatprep.mubr.msk.bf16.mxu0 %vm5656_vm1, %v5655_v10 }
 0x24a   :  { %5551 = vmatmul.mubr.msk.bf16.vlgmr.msra.gmra.mxu0 %vm74_vm3, %v4878_v20 }
 0x24b   :  { %5554 = vmatprep.mubr.msk.bf16.mxu0 %vm5656_vm1, %v5655_v10  ;;  %5563 = vmatpush3.bf16.msra.mxu0 %v5605_v35 }
 0x252   :  { %5555 = vmatmul.mubr.msk.bf16.gmra.mxu0 %vm74_vm3, %v4879_v48 }
 0x253   :  { %5558 = vmatprep.mubr.msk.bf16.mxu0 %vm5656_vm1, %v5655_v10 }
 0x25a   :  { %5559 = vmatmul.mubr.msk.bf16.gmra.mxu0 %vm74_vm3, %v4880_v8 }
 0x25b   :  { %5564 = vmatprep.mubr.msk.bf16.mxu0 %vm5656_vm1, %v5655_v10 }
 0x2ba   :  { %v4939_v25 = vpop.f32.mrf.mxu0 }
 0x2bb   :  { %v4940_v20 = vadd.f32 %v5408_v7, %v4939_v25 }
 0x2bc   :  { %v5538_v17 = vpop.f32.mrf.mxu0 }
 0x2bd   :  { %v4962_v8 = vmax.f32 %v4940_v20, 0.0 }
 0x2be   :  { %v4942_v27 = vpop.f32.mrf.mxu0 }
 0x2bf   :  { %v4943_v62 = vadd.f32 %v5408_v7, %v4942_v27 }
 0x2c0   :  { %v5539_v21 = vpop.f32.mrf.mxu0 }
 0x2c1   :  { %v4963_v51 = vmax.f32 %v4943_v62, 0.0 }
 0x2f3   :  { %v6775_v39 = vpop.f32.mrf.mxu0 }
 0x2f5   :  { %v5542_v24 = vpop.f32.mrf.mxu0 }
 0x2f7   :  { %v6777_v18 = vpop.f32.mrf.mxu0 }
 0x2f8   :  { %v4951_v25 = vadd.f32 %v5408_v7, %v6777_v18 }
 0x2f9   :  { %v5543_v58 = vpop.f32.mrf.mxu0 }
 0x302   :  { %v6779_v47 = vpop.f32.mrf.mxu0 }
 0x304   :  { %v5546_v61 = vpop.f32.mrf.mxu0 }
 0x306   :  { %v6781_v19 = vpop.f32.mrf.mxu0 }
 0x308   :  { %v5547_v16 = vpop.f32.mrf.mxu0 }
 0x30a   :  { %v5017_v1 = vpop.f32.mrf.mxu0 }
 0x30b   :  { %v5018_v38 = vadd.f32 %v5413_v37, %v5017_v1 }
 0x30c   :  { %v5552_v59 = vpop.f32.mrf.mxu0 }
 0x30d   :  { %v5418_v11 = vmul.f32 -1.442695, %v5018_v38 }
 0x30e   :  { %v5020_v41 = vpop.f32.mrf.mxu0 }
 0x30f   :  { %5606 = vpow2.f32 %v5418_v11  ;;  %v5021_v23 = vadd.f32 %v5413_v37, %v5020_v41  ;;  %v4965_v41 = vmax.f32 %v4951_v25, 0.0 }
 0x310   :  { %v5553_v30 = vpop.f32.mrf.mxu0 }
 0x311   :  { %v5419_v43 = vmul.f32 -1.442695, %v5021_v23 }
 0x312   :  { %v5025_v13 = vpop.f32.mrf.mxu0 }
 0x313   :  { %5608 = vpow2.f32 %v5419_v43  ;;  %v5026_v31 = vadd.f32 %v5413_v37, %v5025_v13 }
 0x314   :  { %v5556_v6 = vpop.f32.mrf.mxu0 }
 0x315   :  { %v5420_v28 = vmul.f32 -1.442695, %v5026_v31  ;;  %v4956_v6 = vadd.f32 %v5408_v7, %v6779_v47 }
 0x316   :  { %v5028_v40 = vpop.f32.mrf.mxu0 }
 0x317   :  { %5610 = vpow2.f32 %v5420_v28  ;;  %v5029_v4 = vadd.f32 %v5413_v37, %v5028_v40  ;;  %v4959_v28 = vadd.f32 %v5408_v7, %v6781_v19 }
 0x318   :  { %v5557_v36 = vpop.f32.mrf.mxu0 }
 0x319   :  { %v5421_v55 = vmul.f32 -1.442695, %v5029_v4  ;;  %v4966_v36 = vmax.f32 %v4956_v6, 0.0 }
 0x31a   :  { %v5033_v44 = vpop.f32.mrf.mxu0 }
 0x31b   :  { %5612 = vpow2.f32 %v5421_v55  ;;  %v5034_v5 = vadd.f32 %v5413_v37, %v5033_v44 }
 0x31c   :  { %v5607_v53 = vpop.eup %5606  ;;  %v5560_v22 = vpop.f32.mrf.mxu0 }
 0x31d   :  { %v5058_v9 = vadd.f32 1.0, %v5607_v53  ;;  %v5422_v12 = vmul.f32 -1.442695, %v5034_v5 }
 0x31e   :  { %v5036_v32 = vpop.f32.mrf.mxu0 }
 0x31f   :  { %5614 = vrcp.f32 %v5058_v9  ;;  %v5037_v49 = vadd.f32 %v5413_v37, %v5036_v32  ;;  %v4948_v37 = vadd.f32 %v5408_v7, %v6775_v39 }
 0x320   :  { %v5609_v34 = vpop.eup %5608  ;;  %5616 = vpow2.f32 %v5422_v12  ;;  %v5561_v50 = vpop.f32.mrf.mxu0 }
 0x321   :  { %v5059_v33 = vadd.f32 1.0, %v5609_v34  ;;  %v5423_v14 = vmul.f32 -1.442695, %v5037_v49  ;;  %v4964_v11 = vmax.f32 %v4948_v37, 0.0 }
 0x323   :  { %5618 = vrcp.f32 %v5059_v33 }
 0x324   :  { %v5611_v2 = vpop.eup %5610  ;;  %5620 = vpow2.f32 %v5423_v14 }
 0x325   :  { %v5060_v15 = vadd.f32 1.0, %v5611_v2 }
 0x327   :  { %5622 = vrcp.f32 %v5060_v15 }
 0x328   :  { %v5613_v54 = vpop.eup %5612 }
 0x329   :  { %v5061_v3 = vadd.f32 1.0, %v5613_v54 }
 0x32b   :  { %5624 = vrcp.f32 %v5061_v3 }
 0x32c   :  { %v5615_v63 = vpop.eup %5614 }
 0x32d   :  { %v5617_v26 = vpop.eup %5616  ;;  %v5082_v60 = vsub.f32 1.0, %v5615_v63  ;;  %v5076_v24 = vmul.f32 %v5615_v63, %v4962_v8 }
 0x32e   :  { %v5062_v48 = vadd.f32 1.0, %v5617_v26 }
 0x32f   :  { %v5088_v17 = vmul.f32 %v5082_v60, %v6720_v57 }
 0x330   :  { %v5619_v42 = vpop.eup %5618  ;;  %5626 = vrcp.f32 %v5062_v48 }
 0x331   :  { %v5621_v0 = vpop.eup %5620  ;;  %v5083_v35 = vsub.f32 1.0, %v5619_v42  ;;  %v5077_v58 = vmul.f32 %v5619_v42, %v4963_v51  ;;  %v6793_v27 = vadd.f32 %v5088_v17, %v5076_v24 }
 0x332   :  { %v5063_v21 = vadd.f32 1.0, %v5621_v0 }
 0x333   :  { %v5089_v61 = vmul.f32 %v5083_v35, %v6724_v56 }
 0x334   :  { %v5623_v16 = vpop.eup %5622  ;;  %5628 = vrcp.f32 %v5063_v21 }
 0x335   :  { %v6795_v1 = vadd.f32 %v5089_v61, %v5077_v58  ;;  %v5084_v38 = vsub.f32 1.0, %v5623_v16  ;;  %v5078_v18 = vmul.f32 %v5623_v16, %v4964_v11 }
 0x337   :  { %v5100_v59 = vpack.c.bf16 %v6795_v1, %v6793_v27  ;;  %v5090_v39 = vmul.f32 %v5084_v38, %v6737_v52 }
 0x338   :  { %v5625_v57 = vpop.eup %5624 }
 0x339   :  { %5565 = vmatmul.mubr.msk.bf16.vlgmr.msra.gmra.mxu0 %vm74_vm3, %v5100_v59  ;;  %5579 = vmatmul.mubr.msk.bf16.vlgmr.msra.gmra.mxu1 %vm74_vm3, %v5100_v59  ;;  %v5085_v56 = vsub.f32 1.0, %v5625_v57  ;;  %v5079_v23 = vmul.f32 %v5625_v57, %v4965_v41  ;;  %v6807_v13 = vadd.f32 %v5090_v39, %v5078_v18 }
 0x33a   :  { %5568 = vmatprep.mubr.msk.bf16.mxu0 %vm5656_vm1, %v5655_v10  ;;  %5582 = vmatprep.mubr.msk.bf16.mxu1 %vm5656_vm1, %v5655_v10 }
 0x33b   :  { %v5091_v30 = vmul.f32 %v5085_v56, %v6741_v45  ;;  %v4967_v45 = vmax.f32 %v4959_v28, 0.0 }
 0x33d   :  { %v5627_v43 = vpop.eup %5626  ;;  %v6809_v31 = vadd.f32 %v5091_v30, %v5079_v23  ;;  %v5424_v30 = vld [vmem:[%s6879_s10] ss:$0 sm:$0xff] }
 0x33e   :  { %v5086_v52 = vsub.f32 1.0, %v5627_v43  ;;  %v5080_v55 = vmul.f32 %v5627_v43, %v4966_v36 }
 0x33f   :  { %v5101_v40 = vpack.c.bf16 %v6809_v31, %v6807_v13 }
 0x340   :  { %v5092_v19 = vmul.f32 %v5086_v52, %v6750_v29 }
 0x341   :  { %v5629_v4 = vpop.eup %5628  ;;  %5569 = vmatmul.mubr.msk.bf16.gmra.mxu0 %vm74_vm3, %v5101_v40  ;;  %5583 = vmatmul.mubr.msk.bf16.gmra.mxu1 %vm74_vm3, %v5101_v40 }
 0x342   :  { %5572 = vmatprep.mubr.msk.bf16.mxu0 %vm5656_vm1, %v5655_v10  ;;  %5586 = vmatprep.mubr.msk.bf16.mxu1 %vm5656_vm1, %v5655_v10  ;;  %v5087_v47 = vsub.f32 1.0, %v5629_v4  ;;  %v5081_v44 = vmul.f32 %v5629_v4, %v4967_v45  ;;  %v6823_v53 = vadd.f32 %v5092_v19, %v5080_v55  ;;  %v5429_v10 = vld [vmem:[%s6878_s12] ss:$0 sm:$0xff] }
 0x344   :  { %v5093_v5 = vmul.f32 %v5087_v47, %v6753_v46 }
 0x346   :  { %v6825_v22 = vadd.f32 %v5093_v5, %v5081_v44 }
 0x348   :  { %v5102_v9 = vpack.c.bf16 %v6825_v22, %v6823_v53 }
 0x34a   :  { %5573 = vmatmul.mubr.msk.bf16.gmra.mxu0 %vm74_vm3, %v5102_v9  ;;  %5587 = vmatmul.mubr.msk.bf16.gmra.mxu1 %vm74_vm3, %v5102_v9 }
 0x3f9   :  { %v5161_v29 = vpop.f32.mrf.mxu0  ;;  %v5239_v12 = vpop.f32.mrf.mxu1 }
 0x3fa   :  { %v5240_v32 = vadd.f32 %v5429_v10, %v5239_v12  ;;  %v5162_v6 = vadd.f32 %v5424_v30, %v5161_v29 }
 0x3fb   :  { %v5566_v49 = vpop.f32.mrf.mxu0  ;;  %v5580_v46 = vpop.f32.mrf.mxu1 }
 0x3fc   :  { %v5434_v34 = vmul.f32 -1.442695, %v5240_v32  ;;  %v5184_v4 = vmax.f32 %v5162_v6, 0.0 }
 0x3fd   :  { %v5164_v50 = vpop.f32.mrf.mxu0  ;;  %v5242_v33 = vpop.f32.mrf.mxu1 }
 0x3fe   :  { %5630 = vpow2.f32 %v5434_v34  ;;  %v5243_v14 = vadd.f32 %v5429_v10, %v5242_v33  ;;  %v5165_v45 = vadd.f32 %v5424_v30, %v5164_v50 }
 0x3ff   :  { %v5567_v2 = vpop.f32.mrf.mxu0  ;;  %v5581_v15 = vpop.f32.mrf.mxu1 }
 0x400   :  { %v5435_v54 = vmul.f32 -1.442695, %v5243_v14 }
 0x401   :  { %v5169_v3 = vpop.f32.mrf.mxu0  ;;  %v5247_v7 = vpop.f32.mrf.mxu1 }
 0x402   :  { %5632 = vpow2.f32 %v5435_v54  ;;  %v5248_v63 = vadd.f32 %v5429_v10, %v5247_v7  ;;  %v5170_v32 = vadd.f32 %v5424_v30, %v5169_v3 }
 0x403   :  { %v5570_v26 = vpop.f32.mrf.mxu0  ;;  %v5584_v20 = vpop.f32.mrf.mxu1 }
 0x404   :  { %v5436_v62 = vmul.f32 -1.442695, %v5248_v63 }
 0x405   :  { %v5172_v60 = vpop.f32.mrf.mxu0  ;;  %v5250_v48 = vpop.f32.mrf.mxu1 }
 0x406   :  { %5634 = vpow2.f32 %v5436_v62  ;;  %v5251_v42 = vadd.f32 %v5429_v10, %v5250_v48  ;;  %v5173_v14 = vadd.f32 %v5424_v30, %v5172_v60 }
 0x407   :  { %v5571_v0 = vpop.f32.mrf.mxu0  ;;  %v5585_v8 = vpop.f32.mrf.mxu1 }
 0x408   :  { %v5437_v51 = vmul.f32 -1.442695, %v5251_v42  ;;  %v5187_v7 = vmax.f32 %v5173_v14, 0.0 }
 0x40a   :  { %5636 = vpow2.f32 %v5437_v51  ;;  %v5177_v35 = vpop.f32.mrf.mxu0  ;;  %v5255_v17 = vpop.f32.mrf.mxu1 }
 0x40b   :  { %v5631_v21 = vpop.eup %5630  ;;  %v5256_v24 = vadd.f32 %v5429_v10, %v5255_v17  ;;  %v5178_v26 = vadd.f32 %v5424_v30, %v5177_v35 }
 0x40c   :  { %v5280_v58 = vadd.f32 1.0, %v5631_v21  ;;  %v5574_v61 = vpop.f32.mrf.mxu0  ;;  %v5588_v16 = vpop.f32.mrf.mxu1 }
 0x40d   :  { %v5438_v37 = vmul.f32 -1.442695, %v5256_v24  ;;  %v5188_v48 = vmax.f32 %v5178_v26, 0.0 }
 0x40e   :  { %5638 = vrcp.f32 %v5280_v58  ;;  %v5180_v25 = vpop.f32.mrf.mxu0  ;;  %v5258_v38 = vpop.f32.mrf.mxu1 }
 0x40f   :  { %v5633_v59 = vpop.eup %5632  ;;  %5640 = vpow2.f32 %v5438_v37  ;;  %v5259_v57 = vadd.f32 %v5429_v10, %v5258_v38  ;;  %v5185_v10 = vmax.f32 %v5165_v45, 0.0  ;;  %v5181_v0 = vadd.f32 %v5424_v30, %v5180_v25 }
 0x410   :  { %v5281_v11 = vadd.f32 1.0, %v5633_v59  ;;  %v5575_v41 = vpop.f32.mrf.mxu0  ;;  %v5589_v56 = vpop.f32.mrf.mxu1 }
 0x411   :  { %v5439_v39 = vmul.f32 -1.442695, %v5259_v57  ;;  %v5189_v17 = vmax.f32 %v5181_v0, 0.0 }
 0x412   :  { %5642 = vrcp.f32 %v5281_v11 }
 0x413   :  { %v5635_v18 = vpop.eup %5634  ;;  %5644 = vpow2.f32 %v5439_v39 }
 0x414   :  { %v5282_v23 = vadd.f32 1.0, %v5635_v18 }
 0x416   :  { %5646 = vrcp.f32 %v5282_v23 }
 0x417   :  { %v5637_v43 = vpop.eup %5636 }
 0x418   :  { %v5283_v28 = vadd.f32 1.0, %v5637_v43 }
 0x41a   :  { %5648 = vrcp.f32 %v5283_v28 }
 0x41b   :  { %v5639_v52 = vpop.eup %5638 }
 0x41c   :  { %v5641_v40 = vpop.eup %5640  ;;  %v5304_v36 = vsub.f32 1.0, %v5639_v52  ;;  %v5298_v19 = vmul.f32 %v5639_v52, %v5184_v4 }
 0x41d   :  { %v5284_v47 = vadd.f32 1.0, %v5641_v40 }
 0x41e   :  { %v5310_v55 = vmul.f32 %v5304_v36, %v6793_v27  ;;  %v5186_v27 = vmax.f32 %v5170_v32, 0.0 }
 0x41f   :  { %v5643_v44 = vpop.eup %5642  ;;  %5650 = vrcp.f32 %v5284_v47 }
 0x420   :  { %v5645_v5 = vpop.eup %5644  ;;  %v5316_v9 = vadd.f32 %v5310_v55, %v5298_v19  ;;  %v5305_v12 = vsub.f32 1.0, %v5643_v44  ;;  %v5299_v29 = vmul.f32 %v5643_v44, %v5185_v10 }
 0x421   :  { %v5285_v49 = vadd.f32 1.0, %v5645_v5 }
 0x422   :  { %5322 = vst.msk [vmem:[%s6880_s13] sm:$0xff] %vm74_vm3, %v5316_v9  ;;  %v5311_v46 = vmul.f32 %v5305_v12, %v6795_v1 }
 0x423   :  { %v5647_v34 = vpop.eup %5646  ;;  %5652 = vrcp.f32 %v5285_v49 }
 0x424   :  { %v5317_v50 = vadd.f32 %v5311_v46, %v5299_v29  ;;  %v5306_v33 = vsub.f32 1.0, %v5647_v34  ;;  %v5300_v2 = vmul.f32 %v5647_v34, %v5186_v27 }
 0x426   :  { %5323 = vst.msk [vmem:[%s6880_s13 + $0x8] sm:$0xff] %vm74_vm3, %v5317_v50  ;;  %v5312_v15 = vmul.f32 %v5306_v33, %v6807_v13 }
 0x427   :  { %v5649_v54 = vpop.eup %5648 }
 0x428   :  { %v5318_v3 = vadd.f32 %v5312_v15, %v5300_v2  ;;  %v5307_v63 = vsub.f32 1.0, %v5649_v54  ;;  %v5301_v1 = vmul.f32 %v5649_v54, %v5187_v7 }
 0x42a   :  { %5324 = vst.msk [vmem:[%s6880_s13 + $0x10] sm:$0xff] %vm74_vm3, %v5318_v3  ;;  %v5313_v20 = vmul.f32 %v5307_v63, %v6809_v31 }
 0x42c   :  { %v5651_v62 = vpop.eup %5650  ;;  %v5319_v60 = vadd.f32 %v5313_v20, %v5301_v1 }
 0x42d   :  { %v5308_v42 = vsub.f32 1.0, %v5651_v62  ;;  %v5302_v13 = vmul.f32 %v5651_v62, %v5188_v48 }
 0x42e   :  { %5325 = vst.msk [vmem:[%s6880_s13 + $0x18] sm:$0xff] %vm74_vm3, %v5319_v60 }
 0x42f   :  { %v5314_v8 = vmul.f32 %v5308_v42, %v6823_v53 }
 0x430   :  { %v5653_v51 = vpop.eup %5652 }
 0x431   :  { %v5320_v35 = vadd.f32 %v5314_v8, %v5302_v13  ;;  %v5309_v21 = vsub.f32 1.0, %v5653_v51  ;;  %v5303_v31 = vmul.f32 %v5653_v51, %v5189_v17 }
 0x433   :  { %5326 = vst.msk [vmem:[%s6880_s13 + $0x20] sm:$0xff] %vm74_vm3, %v5320_v35  ;;  %v5315_v24 = vmul.f32 %v5309_v21, %v6825_v22 }
 0x435   :  { %v5321_v58 = vadd.f32 %v5315_v24, %v5303_v31 }
 0x437   :  { %5327 = vst.msk [vmem:[%s6880_s13 + $0x28] sm:$0xff] %vm74_vm3, %v5321_v58 }

// kernel: _lambda_.19
= control target key start
LH: loop header
LB: loop body
LE: loop exit
PB: predicated region body
PF: predicated region fallthrough
CT: control target
= control target key end

     0   :  { %vm52_vm0 = vcmask 261120   ;;  %s186_s1 = inlined_call_operand.vmem [shape: bf16[32,128], index: 1, kind: input, shape index: {}]   ;;  %s187_s0 = inlined_call_operand.vmem [shape: bf16[32,32], index: 0, kind: input, shape index: {}]   ;;  %s188_s2 = inlined_call_operand.vmem [shape: f32[1,128], index: 2, kind: input, shape index: {}]   ;;  %s189_s3 = inlined_call_operand.vmem [shape: f32[32,128], index: 3, kind: output, shape index: {}]  }
   0x1   :  { %v135_v0 = vld [vmem:[%s186_s1 + $0x8] sm:$0xff]   ;;  %v136_v1 = vld [vmem:[%s186_s1] sm:$0xff]  }
   0x2   :  { %127 = vmatprep.subr.bf16.mxu0 %v135_v0  ;;  %v137_v2 = vld [vmem:[%s187_s0] sm:$0xff]   ;;  %v138_v3 = vld [vmem:[%s187_s0 + $0x8] sm:$0xff]  }
   0x3   :  { %128 = vmatpush3.bf16.msra.mxu0 %v135_v0  ;;  %131 = vmatprep.mubr.msk.bf16.mxu0 %vm52_vm0, %v137_v2  ;;  %v116_v4 = vld [vmem:[%s188_s2] ss:$0 sm:$0xff] }
   0x4   :  { %129 = vmatprep.subr.bf16.mxu0 %v136_v1 }
   0x7   :  { %130 = vmatpush3.bf16.msra.mxu0 %v136_v1 }
   0xa   :  { %132 = vmatmul.mubr.msk.bf16.vlgmr.msra.gmra.mxu0 %vm52_vm0, %v138_v3 }
  0xca   :  { %v133_v5 = vpop.f32.mrf.mxu0 }
  0xcb   :  { %v102_v6 = vadd.f32 %v133_v5, %v116_v4 }
  0xcc   :  { %v93_v7 = vpop.f32.mrf.mxu0 }
  0xcd   :  { %110 = vst [vmem:[%s189_s3 + $0x10] sm:$0xff] %v102_v6  ;;  %v94_v8 = vadd.f32 %v116_v4, %v93_v7 }
  0xce   :  { %v134_v9 = vpop.f32.mrf.mxu0 }
  0xcf   :  { %108 = vst [vmem:[%s189_s3] sm:$0xff] %v94_v8  ;;  %v105_v10 = vadd.f32 %v134_v9, %v116_v4 }
  0xd0   :  { %v96_v11 = vpop.f32.mrf.mxu0 }
  0xd1   :  { %111 = vst [vmem:[%s189_s3 + $0x18] sm:$0xff] %v105_v10  ;;  %v97_v12 = vadd.f32 %v116_v4, %v96_v11 }
  0xd3   :  { %109 = vst [vmem:[%s189_s3 + $0x8] sm:$0xff] %v97_v12 }

// kernel: _lambda_.23
= control target key start
LH: loop header
LB: loop body
LE: loop exit
PB: predicated region body
PF: predicated region fallthrough
CT: control target
= control target key end

     0   :  { %s722_s30 = smov 0   ;;  %s780_s0 = inlined_call_operand.vmem [shape: f32[2,16,128], index: 0, kind: input, shape index: {}]   ;;  %s781_s1 = inlined_call_operand.vmem [shape: f32[2,16,32], index: 1, kind: input, shape index: {}]   ;;  %s782_s2 = inlined_call_operand.vmem [shape: f32[2,16,32], index: 2, kind: input, shape index: {}]   ;;  %s783_s3 = inlined_call_operand.vmem [shape: f32[2,16,1], index: 3, kind: input, shape index: {}]   ;;  %s784_s4 = inlined_call_operand.vmem [shape: f32[1,128], index: 4, kind: input, shape index: {}]   ;;  %s785_s5 = inlined_call_operand.vmem [shape: f32[1,32], index: 5, kind: input, shape index: {}]   ;;  %s786_s6 = inlined_call_operand.vmem [shape: f32[1,128], index: 6, kind: input, shape index: {}]   ;;  %s787_s7 = inlined_call_operand.vmem [shape: f32[1,32], index: 7, kind: input, shape index: {}]   ;;  %s788_s8 = inlined_call_operand.vmem [shape: f32[1,2], index: 8, kind: input, shape index: {}]   ;;  %s789_s9 = inlined_call_operand.vmem [shape: f32[2,16,2], index: 9, kind: output, shape index: {}]  }
   0x1 LB: > { %s614_s10 = sadd.s32 4294967295, %s668_s30   ;;  %p618_p0 = scmp.ge.s32.totalorder %s668_s30, 1  ;;  %s668_s30 = sphi %s722_s30, %s19_s30  }
   0x2   : > { %p317_p1 = scmp.lt.s32.totalorder %s668_s30, 3 }
   0x4   : > { %p318_p2 = pnand %p618_p0, %p317_p1 }
   0x5   : > { %p368_p3 = scmp.lt.s32.totalorder (!%p318_p2), %s614_s10, 1  ;;  %s670_s13 = smov (!%p318_p2), 127  }
   0x6   : > { %321 = sbr.rel (%p318_p2) target bundleno = 259 (0x103), region = 56 }
   0xb   : > { %v432_v0 = vld [vmem:[%s788_s8] sm:$0x1]  ;;  %s791_s10 = smov (!%p368_p3, %s614_s10), 1  ;;  %v671_v1 = vmov 0   ;;  %vm423_vm0 = vcmask 261120   ;;  %vm475_vm3 = vcmask 7168  }
   0xc   : > { %468 = vrot.lane.b32.xlu0 %v432_v0, %s670_s13  ;;  %640 = vpush %v432_v0  ;;  %654 = vset.pattern.permute.xlu1 %v671_v1  ;;  %s733_s14 = sshll.u32 %s791_s10, 4  ;;  %v629_v2 = vld [vmem:[%s784_s4] ss:$0 sm:$0xff]  ;;  %vm492_vm5 = vcmask 15360  }
   0xd   : > { %655 = vset.pattern.permute.xlu0 %v671_v1  ;;  %v630_v3 = vld [vmem:[%s785_s5] ss:$0 sm:$0xff]  ;;  %s372_s21 = scalar_lea.vmem %s780_s0, %s733_s14  ;;  %s377_s24 = scalar_lea.vmem %s781_s1, %s733_s14 }
   0xe   : > { %v394_v4 = vld [vmem:[%s372_s21 + $0x8] sm:$0xff]  ;;  %v395_v5 = vld [vmem:[%s377_s24] sm:$0xff]  ;;  %s382_s29 = scalar_lea.vmem %s782_s2, %s733_s14  ;;  %s387_s15 = scalar_lea.vmem %s783_s3, %s733_s14 }
   0xf   : > { %v409_v6 = vmul.f32 %v629_v2, %v394_v4  ;;  %v421_v7 = vmul.f32 %v630_v3, %v395_v5  ;;  %v396_v8 = vld [vmem:[%s377_s24 + $0x8] sm:$0xff]  ;;  %v393_v12 = vld [vmem:[%s372_s21] sm:$0xff]  ;;  %s392_s20 = scalar_lea.vmem %s789_s9, %s733_s14 }
  0x10   : > { %v422_v10 = vmul.f32 %v630_v3, %v396_v8  ;;  %v631_v13 = vld [vmem:[%s786_s6] ss:$0 sm:$0xff]  ;;  %v398_v19 = vld [vmem:[%s382_s29 + $0x8] sm:$0xff]  ;;  %v408_v22 = vmul.f32 %v629_v2, %v393_v12 }
  0x11   : > { %412 = vadd.xlane.f32.xlu1 %v409_v6  ;;  %v424_v9 = vsel %vm423_vm0, %v421_v7, 0.0  ;;  %v444_v14 = vmul.f32 %v631_v13, %v393_v12  ;;  %v397_v15 = vld [vmem:[%s382_s29] sm:$0xff]  ;;  %v445_v17 = vmul.f32 %v631_v13, %v394_v4  ;;  %v400_v25 = vld [vmem:[%s387_s15 + $0x8] sm:$0xff] }
  0x12   : > { %v427_v11 = vsel %vm423_vm0, %v422_v10, 0.0  ;;  %v632_v16 = vld [vmem:[%s787_s7] ss:$0 sm:$0xff]  ;;  %vm479_vm2 = vcmp.gt.f32.partialorder %v400_v25, 0.0 }
  0x13   : > { %v457_v18 = vmul.f32 %v632_v16, %v397_v15  ;;  %v458_v21 = vmul.f32 %v632_v16, %v398_v19  ;;  %v399_v24 = vld [vmem:[%s387_s15] sm:$0xff]  ;;  %v481_v27 = vsel %vm479_vm2, 1, %v671_v1 }
  0x14   : > { %vm478_vm1 = vcmp.gt.f32.partialorder %v399_v24, 0.0 }
  0x15   : > { %425 = vadd.xlane.f32.xlu1 %v424_v9  ;;  %v459_v20 = vsel %vm423_vm0, %v457_v18, 0.0  ;;  %v462_v23 = vsel %vm423_vm0, %v458_v21, 0.0  ;;  %v480_v26 = vsel %vm478_vm1, 1, %v671_v1 }
  0x19   : > { %428 = vadd.xlane.f32.xlu1 %v427_v11 }
  0x1d   : > { %446 = vadd.xlane.f32.xlu1 %v444_v14 }
  0x21   : > { %448 = vadd.xlane.f32.xlu1 %v445_v17 }
  0x25   : > { %460 = vadd.xlane.f32.xlu1 %v459_v20 }
  0x29   : > { %463 = vadd.xlane.f32.xlu1 %v462_v23 }
  0x2b   : > { %410 = vadd.xlane.f32.xlu0 %v408_v22 }
  0x3a   : > { %483 = vperm.xlu1 %654, %v480_v26  }
  0x3d   : > { %s641_s16 = spop %640 }
  0x3e   : > { %v434_v39 = vstv %s641_s16 }
  0x41   : > { %486 = vperm.xlu0 %655, %v481_v27  }
  0x7e   : > { %v469_v28 = vpop.permute.xlu0 %468 }
  0x7f   : > { %642 = vpush %v469_v28 }
  0x9a   : > { %v413_v29 = vpop.xlane.xlu1 %412 }
  0x9e   : > { %v426_v30 = vpop.xlane.xlu1 %425 }
  0xa2   : > { %v429_v31 = vpop.xlane.xlu1 %428 }
  0xa3   : > { %v431_v42 = vadd.f32 %v429_v31, %v413_v29 }
  0xa5   : > { %v436_v48 = vadd.f32 %v434_v39, %v431_v42 }
  0xa6   : > { %v447_v32 = vpop.xlane.xlu1 %446 }
  0xaa   : > { %v449_v33 = vpop.xlane.xlu1 %448 }
  0xae   : > { %v461_v34 = vpop.xlane.xlu1 %460 }
  0xaf   : > { %v465_v35 = vadd.f32 %v461_v34, %v447_v32 }
  0xb0   : > { %s643_s17 = spop %642 }
  0xb1   : > { %v472_v40 = vstv %s643_s17 }
  0xb2   : > { %v464_v38 = vpop.xlane.xlu1 %463  ;;  %v473_v43 = vadd.f32 %v472_v40, %v465_v35 }
  0xb3   : > { %v466_v41 = vadd.f32 %v464_v38, %v449_v33 }
  0xb4   : > { %v411_v36 = vpop.xlane.xlu0 %410 }
  0xb5   : > { %v430_v37 = vadd.f32 %v426_v30, %v411_v36  ;;  %v474_v45 = vadd.f32 %v472_v40, %v466_v41 }
  0xb6   : > { %v484_v46 = vpop.permute.xlu1 %483 }
  0xb7   : > { %v435_v44 = vadd.f32 %v434_v39, %v430_v37  ;;  %vm488_vm4 = vcmp.eq.s32.totalorder %v484_v46, 1  ;;  %v477_v51 = vsel %vm475_vm3, %v436_v48, %v474_v45 }
  0xb9   : > { %v476_v47 = vsel %vm475_vm3, %v435_v44, %v473_v43 }
  0xba   : > { %v490_v49 = vsel %vm488_vm4, %v476_v47, -1e+30 }
  0xbb   : > { %v493_v53 = vsel %vm492_vm5, %v490_v49, -inf }
  0xbc   : > { %v487_v50 = vpop.permute.xlu0 %486 }
  0xbd   : > { %vm489_vm6 = vcmp.eq.s32.totalorder %v487_v50, 1 }
  0xbe   : > { %v491_v52 = vsel %vm489_vm6, %v477_v51, -1e+30 }
  0xbf   : > { %v494_v54 = vsel %vm492_vm5, %v491_v52, -inf }
  0xc0   : > { %v495_v55 = vmax.f32 %v493_v53, %v494_v54 }
  0xc2   : > { %v496_v56 = vrot.slane %v495_v55, 4 }
  0xc4   : > { %v497_v57 = vmax.f32 %v495_v55, %v496_v56 }
  0xc6   : > { %v498_v58 = vrot.slane %v497_v57, 2 }
  0xc8   : > { %v499_v59 = vmax.f32 %v497_v57, %v498_v58 }
  0xca   : > { %v500_v60 = vrot.slane %v499_v59, 1 }
  0xcc   : > { %v501_v61 = vmax.f32 %v499_v59, %v500_v60 }
  0xce   : > { %v502_v62 = vsub.f32 %v490_v49, %v501_v61  ;;  %v503_v63 = vsub.f32 %v491_v52, %v501_v61 }
  0xd0   : > { %v504_v0 = vmul.f32 1.442695, %v502_v62  ;;  %v506_v1 = vmul.f32 1.442695, %v503_v63 }
  0xd2   : > { %656 = vpow2.f32 %v504_v0 }
  0xd3   : > { %658 = vpow2.f32 %v506_v1 }
  0xdf   : > { %v657_v2 = vpop.eup %656 }
  0xe0   : > { %v659_v3 = vpop.eup %658  ;;  %v508_v4 = vsel %vm492_vm5, %v657_v2, 0.0 }
  0xe1   : > { %v509_v5 = vsel %vm492_vm5, %v659_v3, 0.0 }
  0xe2   : > { %v510_v6 = vadd.f32 %v509_v5, %v508_v4 }
  0xe4   : > { %v511_v7 = vrot.slane %v510_v6, 4 }
  0xe6   : > { %v512_v8 = vadd.f32 %v511_v7, %v510_v6 }
  0xe8   : > { %v513_v9 = vrot.slane %v512_v8, 2 }
  0xea   : > { %v514_v10 = vadd.f32 %v513_v9, %v512_v8 }
  0xec   : > { %v515_v11 = vrot.slane %v514_v10, 1 }
  0xee   : > { %v516_v12 = vadd.f32 %v515_v11, %v514_v10 }
  0xf0   : > { %660 = vlog2.f32 %v516_v12 }
  0xfd   : > { %v661_v13 = vpop.eup %660 }
  0xfe   : > { %v518_v14 = vmul.f32 0.6931472, %v661_v13 }
 0x100   : > { %v519_v15 = vsub.f32 %v502_v62, %v518_v14  ;;  %v520_v16 = vsub.f32 %v503_v63, %v518_v14 }
 0x102   : > { %521 = vst.msk [vmem:[%s392_s20] sm:$0xff] %vm492_vm5, %v519_v15  ;;  %522 = vst.msk [vmem:[%s392_s20 + $0x8] sm:$0xff] %vm492_vm5, %v520_v16 }
 0x103 PF: > { %s19_s30 = sadd.s32 1, %s668_s30  }
 0x104   : > { %p16_p4 = scmp.ge.s32.totalorder %s19_s30, 4  }
 0x106   :  { %18 = sbr.rel (!%p16_p4) target bundleno = 1 (0x1), region = 95 }

</bundles_post_ra>
